<compile_context>
chip_gen: v7x
topology: tpu7x:2x2x1
jax: 0.10.0
libtpu: 0.0.40
codegen_flags: <defaults>
</compile_context>

<pallas_src>
import functools

import jax
import jax.numpy as jnp
from jax.experimental import pallas as pl
from jax.experimental.pallas import tpu as pltpu


# ----------------------------- Pallas kernel --------------------------------
def _g2l_kernel(det_ref, ctx_ref,
                wqT_ref, bq_ref, wkvT_ref, bkv_ref, wfT_ref, bf_ref,
                out_ref,
                *, num_head, head_dim, dim):
    # per-grid-step: one batch element x one query tile, channels-first layout
    det = det_ref[0]                    # (Cd,  TQ)   f32, lanes = query positions
    ctx = ctx_ref[0]                    # (Ck,  HWc)  f32, lanes = key positions

    # 1x1 convs == left matmuls over channels (scale already folded into wq/bq)
    q = jnp.dot(wqT_ref[...], det, preferred_element_type=jnp.float32) + bq_ref[...]    # (D,  TQ)
    kv = jnp.dot(wkvT_ref[...], ctx, preferred_element_type=jnp.float32) + bkv_ref[...]  # (2D, HWc)
    k = kv[:dim, :]                     # (D, HWc)
    v = kv[dim:, :]                     # (D, HWc)

    # dot_general dimension numbers:
    #   TN: contract the channel (sublane) dim of both operands
    #   NT: contract the key (lane) dim of both operands
    dn_tn = (((0,), (0,)), ((), ()))
    dn_nt = (((1,), (1,)), ((), ()))

    head_outs = []
    for h in range(num_head):           # static unrolled loop (num_head small)
        sl = slice(h * head_dim, (h + 1) * head_dim)   # sublane slice (8-aligned)
        # scores: (TQ, HWc)  =  q_h^T @ k_h
        s = jax.lax.dot_general(q[sl], k[sl], dn_tn,
                                preferred_element_type=jnp.float32)
        s = s - jnp.max(s, axis=-1, keepdims=True)
        p = jnp.exp(s)
        p = p * pl.reciprocal(jnp.sum(p, axis=-1, keepdims=True), approx=True)
        # head output in channels-first layout: (hd, TQ) = v_h @ p^T
        head_outs.append(jax.lax.dot_general(v[sl], p, dn_nt,
                                             preferred_element_type=jnp.float32))
    attn = jnp.concatenate(head_outs, axis=0)          # (D, TQ) sublane concat

    # fuse conv (+ folded BN) + ReLU, residual add
    fused = jnp.dot(wfT_ref[...], attn, preferred_element_type=jnp.float32) + bf_ref[...]
    out_ref[0] = det + jnp.maximum(fused, 0.0)         # (Cd, TQ): lane-dense store


# ------------------------------- wrapper -------------------------------------
def global2local_forward(context_nchw, detail_nchw, params, *, num_head, q_tile=None):
    """params: dict of wq,bq,wk,bk,wv,bv,wf,bf,bn_gamma,bn_beta,bn_mean,bn_var.

    Weights are stored as (in_ch, out_ch); eval-mode BN is folded into the fuse
    conv here (pure-JAX parameter glue, done once at trace time).
    """
    B, Cd, Hd, Wd = detail_nchw.shape
    _, Ck, Hc, Wc = context_nchw.shape
    D = params["wq"].shape[1]
    head_dim = D // num_head
    scale = float(head_dim) ** (-0.5)

    HWd, HWc = Hd * Wd, Hc * Wc

    # NCHW -> channels-on-sublanes / spatial-on-lanes: a pure reshape, no transpose.
    det = detail_nchw.reshape(B, Cd, HWd)
    ctx = context_nchw.reshape(B, Ck, HWc)

    # fold eval-mode BatchNorm into the fuse conv
    eps = 1e-5
    bn_scale = params["bn_gamma"] / jnp.sqrt(params["bn_var"] + eps)          # (Cd,)
    wf_eff = params["wf"] * bn_scale[None, :]                                 # (D, Cd)
    bf_eff = (params["bf"] - params["bn_mean"]) * bn_scale + params["bn_beta"]

    # fold the attention scale into the q projection; fuse K|V into one weight;
    # pre-transpose everything for the channels-first (left-matmul) kernel.
    wqT = jnp.transpose(params["wq"] * scale)                                 # (D, Cd)
    bq = (params["bq"] * scale).reshape(D, 1)
    wkvT = jnp.transpose(jnp.concatenate([params["wk"], params["wv"]], axis=1))  # (2D, Ck)
    bkv = jnp.concatenate([params["bk"], params["bv"]]).reshape(2 * D, 1)
    wfT = jnp.transpose(wf_eff)                                               # (Cd, D)
    bf = bf_eff.reshape(Cd, 1)

    # query tiling: default = one tile (minimal grid overhead on single-TC
    # chips); set q_tile (multiple of 128) to shard queries across v7x cores
    # when B alone does not fill both TensorCores.
    tq = HWd if q_tile is None else q_tile
    assert HWd % tq == 0 and (tq == HWd or tq % 128 == 0)
    nqt = HWd // tq

    kernel = functools.partial(_g2l_kernel, num_head=num_head,
                               head_dim=head_dim, dim=D)

    def const_spec(shape):
        return pl.BlockSpec(shape, lambda b, t: tuple(0 for _ in shape))

    cost = pl.CostEstimate(
        flops=2 * B * (HWd * Cd * D            # q projection
                       + HWc * Ck * 2 * D      # fused k|v projection
                       + 2 * HWd * HWc * D     # scores + attn @ v (all heads)
                       + HWd * D * Cd),        # fuse conv
        transcendentals=B * num_head * HWd * HWc,
        bytes_accessed=4 * (2 * B * Cd * HWd + B * Ck * HWc
                            + D * Cd + 2 * D * Ck + Cd * D + 4 * D + Cd),
    )

    out = pl.pallas_call(
        kernel,
        out_shape=jax.ShapeDtypeStruct((B, Cd, HWd), jnp.float32),
        grid_spec=pltpu.PrefetchScalarGridSpec(
            num_scalar_prefetch=0,
            grid=(B, nqt),
            in_specs=[
                pl.BlockSpec((1, Cd, tq), lambda b, t: (b, 0, t)),    # detail
                pl.BlockSpec((1, Ck, HWc), lambda b, t: (b, 0, 0)),   # context
                const_spec(wqT.shape), const_spec(bq.shape),
                const_spec(wkvT.shape), const_spec(bkv.shape),
                const_spec(wfT.shape), const_spec(bf.shape),
            ],
            out_specs=pl.BlockSpec((1, Cd, tq), lambda b, t: (b, 0, t)),
        ),
        compiler_params=pltpu.CompilerParams(
            dimension_semantics=("parallel", "parallel")),
        cost_estimate=cost,
    )(det, ctx, wqT, bq, wkvT, bkv, wfT, bf)

    # (B, Cd, HWd) -> NCHW: again a pure reshape.
    return out.reshape(B, Cd, Hd, Wd)


# --------------------------- pure-JAX reference -------------------------------
def _reference(context_nchw, detail_nchw, params, *, num_head):
    B, Cd, Hd, Wd = detail_nchw.shape
    _, Ck, Hc, Wc = context_nchw.shape
    D = params["wq"].shape[1]
    hd = D // num_head
    scale = float(hd) ** (-0.5)
    det = jnp.transpose(detail_nchw, (0, 2, 3, 1)).reshape(B, Hd * Wd, Cd)
    ctx = jnp.transpose(context_nchw, (0, 2, 3, 1)).reshape(B, Hc * Wc, Ck)
    q = det @ params["wq"] + params["bq"]
    k = ctx @ params["wk"] + params["bk"]
    v = ctx @ params["wv"] + params["bv"]
    q = q.reshape(B, -1, num_head, hd).transpose(0, 2, 1, 3)
    k = k.reshape(B, -1, num_head, hd).transpose(0, 2, 1, 3)
    v = v.reshape(B, -1, num_head, hd).transpose(0, 2, 1, 3)
    attn = jax.nn.softmax((q @ jnp.swapaxes(k, -1, -2)) * scale, axis=-1)
    o = (attn @ v).transpose(0, 2, 1, 3).reshape(B, Hd * Wd, D)
    eps = 1e-5
    bn_scale = params["bn_gamma"] / jnp.sqrt(params["bn_var"] + eps)
    f = o @ params["wf"] + params["bf"]
    f = (f - params["bn_mean"]) * bn_scale + params["bn_beta"]
    f = jnp.maximum(f, 0.0)
    out = det + f
    return jnp.transpose(out.reshape(B, Hd, Wd, Cd), (0, 3, 1, 2))


# --------------------------------- main ---------------------------------------
if __name__ == "__main__":
    # module config: stage=3, planes=4, num_head=4, dim=32
    stage, planes, num_head, dim = 3, 4, 4, 32
    kv_dim = planes * 4 if stage == 3 else planes * 8     # stage 3
    Cd = 2 * planes                                        # detail channels

    B, Hd, Wd = 2, 16, 16
    Hc, Wc = 8, 8

    key = jax.random.PRNGKey(0)
    ks = jax.random.split(key, 8)

    def kaiming(k, fan_in, shape):
        return (jax.random.normal(k, shape, jnp.float32) *
                jnp.sqrt(2.0 / fan_in)).astype(jnp.float32)

    # weights stored as (in_ch, out_ch) so the reference computes x @ W
    params = {
        "wq": kaiming(ks[0], Cd, (Cd, dim)),         "bq": jnp.zeros((dim,), jnp.float32),
        "wk": kaiming(ks[1], kv_dim, (kv_dim, dim)), "bk": jnp.zeros((dim,), jnp.float32),
        "wv": kaiming(ks[2], kv_dim, (kv_dim, dim)), "bv": jnp.zeros((dim,), jnp.float32),
        "wf": kaiming(ks[3], dim, (dim, Cd)),        "bf": jnp.zeros((Cd,), jnp.float32),
        # BatchNorm2d (eval mode): gamma=1 (default), beta=0 (weight_init),
        # running stats at their defaults.
        "bn_gamma": jnp.ones((Cd,), jnp.float32),
        "bn_beta": jnp.zeros((Cd,), jnp.float32),
        "bn_mean": jnp.zeros((Cd,), jnp.float32),
        "bn_var": jnp.ones((Cd,), jnp.float32),
    }

    detail = jax.random.normal(ks[4], (B, Cd, Hd, Wd), jnp.float32)
    context = jax.random.normal(ks[5], (B, kv_dim, Hc, Wc), jnp.float32)

    out = global2local_forward(context, detail, params, num_head=num_head)
    out = jax.block_until_ready(out)

    ref = _reference(context, detail, params, num_head=num_head)
    assert out.shape == detail.shape
    assert jnp.allclose(out, ref, atol=1e-2, rtol=1e-2), "mismatch vs reference"

    print("KERNEL_OK")
</pallas_src>

<mosaic_0001>
module attributes {stable_mosaic.version = 11 : i64} {
  func.func @_g2l_kernel(%arg0: i32, %arg1: i32, %arg2: memref<1x8x256xf32, #tpu.memory_space<vmem>>, %arg3: memref<1x16x64xf32, #tpu.memory_space<vmem>>, %arg4: memref<32x8xf32, #tpu.memory_space<vmem>>, %arg5: memref<32x1xf32, #tpu.memory_space<vmem>>, %arg6: memref<64x16xf32, #tpu.memory_space<vmem>>, %arg7: memref<64x1xf32, #tpu.memory_space<vmem>>, %arg8: memref<8x32xf32, #tpu.memory_space<vmem>>, %arg9: memref<8x1xf32, #tpu.memory_space<vmem>>, %arg10: memref<1x8x256xf32, #tpu.memory_space<vmem>>) attributes {dimension_semantics = [#tpu.dimension_semantics<parallel>, #tpu.dimension_semantics<parallel>], iteration_bounds = array<i64: 2, 1>, scalar_prefetch = 0 : i64, scratch_operands = 0 : i64, tpu.core_type = #tpu.core_type<tc>, window_params = [{transform_indices = @transform_0, window_bounds = array<i64: 1, 8, 256>}, {transform_indices = @transform_1, window_bounds = array<i64: 1, 16, 64>}, {pipeline_mode = #tpu.pipeline_mode<synchronous>, transform_indices = @transform_2, window_bounds = array<i64: 32, 8>}, {pipeline_mode = #tpu.pipeline_mode<synchronous>, transform_indices = @transform_3, window_bounds = array<i64: 32, 1>}, {pipeline_mode = #tpu.pipeline_mode<synchronous>, transform_indices = @transform_4, window_bounds = array<i64: 64, 16>}, {pipeline_mode = #tpu.pipeline_mode<synchronous>, transform_indices = @transform_5, window_bounds = array<i64: 64, 1>}, {pipeline_mode = #tpu.pipeline_mode<synchronous>, transform_indices = @transform_6, window_bounds = array<i64: 8, 32>}, {pipeline_mode = #tpu.pipeline_mode<synchronous>, transform_indices = @transform_7, window_bounds = array<i64: 8, 1>}, {transform_indices = @transform_8, window_bounds = array<i64: 1, 8, 256>}]} {
    %c0 = arith.constant 0 : index
    %c0_0 = arith.constant 0 : index
    %c0_1 = arith.constant 0 : index
    %0 = vector.load %arg2[%c0, %c0_0, %c0_1] : memref<1x8x256xf32, #tpu.memory_space<vmem>>, vector<1x8x256xf32>
    %1 = vector.shape_cast %0 : vector<1x8x256xf32> to vector<8x256xf32>
    %c0_2 = arith.constant 0 : index
    %c0_3 = arith.constant 0 : index
    %c0_4 = arith.constant 0 : index
    %2 = vector.load %arg3[%c0_2, %c0_3, %c0_4] : memref<1x16x64xf32, #tpu.memory_space<vmem>>, vector<1x16x64xf32>
    %3 = vector.shape_cast %2 : vector<1x16x64xf32> to vector<16x64xf32>
    %c0_5 = arith.constant 0 : index
    %c0_6 = arith.constant 0 : index
    %4 = vector.load %arg4[%c0_5, %c0_6] : memref<32x8xf32, #tpu.memory_space<vmem>>, vector<32x8xf32>
    %cst = arith.constant dense<0.000000e+00> : vector<32x256xf32>
    %5 = tpu.matmul %4, %1, %cst {dimension_numbers = #tpu.dot_dimension_numbers<[1], [0], [0], [1], [0, 0, 1, 1], [], []>} : vector<32x8xf32>, vector<8x256xf32>, vector<32x256xf32> -> vector<32x256xf32>
    %c0_7 = arith.constant 0 : index
    %c0_8 = arith.constant 0 : index
    %6 = vector.load %arg5[%c0_7, %c0_8] : memref<32x1xf32, #tpu.memory_space<vmem>>, vector<32x1xf32>
    %7 = vector.broadcast %6 : vector<32x1xf32> to vector<32x256xf32>
    %8 = arith.addf %5, %7 : vector<32x256xf32>
    %c0_9 = arith.constant 0 : index
    %c0_10 = arith.constant 0 : index
    %9 = vector.load %arg6[%c0_9, %c0_10] : memref<64x16xf32, #tpu.memory_space<vmem>>, vector<64x16xf32>
    %cst_11 = arith.constant dense<0.000000e+00> : vector<64x64xf32>
    %10 = tpu.matmul %9, %3, %cst_11 {dimension_numbers = #tpu.dot_dimension_numbers<[1], [0], [0], [1], [0, 0, 1, 1], [], []>} : vector<64x16xf32>, vector<16x64xf32>, vector<64x64xf32> -> vector<64x64xf32>
    %c0_12 = arith.constant 0 : index
    %c0_13 = arith.constant 0 : index
    %11 = vector.load %arg7[%c0_12, %c0_13] : memref<64x1xf32, #tpu.memory_space<vmem>>, vector<64x1xf32>
    %12 = vector.broadcast %11 : vector<64x1xf32> to vector<64x64xf32>
    %13 = arith.addf %10, %12 : vector<64x64xf32>
    %14 = vector.extract_strided_slice %13 {offsets = [0, 0], sizes = [32, 64], strides = [1, 1]} : vector<64x64xf32> to vector<32x64xf32>
    %15 = vector.extract_strided_slice %13 {offsets = [32, 0], sizes = [32, 64], strides = [1, 1]} : vector<64x64xf32> to vector<32x64xf32>
    %16 = vector.extract_strided_slice %8 {offsets = [0, 0], sizes = [8, 256], strides = [1, 1]} : vector<32x256xf32> to vector<8x256xf32>
    %17 = vector.extract_strided_slice %14 {offsets = [0, 0], sizes = [8, 64], strides = [1, 1]} : vector<32x64xf32> to vector<8x64xf32>
    %cst_14 = arith.constant dense<0.000000e+00> : vector<256x64xf32>
    %18 = tpu.matmul %16, %17, %cst_14 {dimension_numbers = #tpu.dot_dimension_numbers<[0], [0], [1], [1], [0, 1, 1, 1], [], []>} : vector<8x256xf32>, vector<8x64xf32>, vector<256x64xf32> -> vector<256x64xf32>
    %cst_15 = arith.constant dense<0xFF800000> : vector<256xf32>
    %19 = vector.multi_reduction <maximumf>, %18, %cst_15 [1] : vector<256x64xf32> to vector<256xf32>
    %20 = vector.shape_cast %19 : vector<256xf32> to vector<256x1xf32>
    %21 = vector.broadcast %20 : vector<256x1xf32> to vector<256x64xf32>
    %22 = arith.subf %18, %21 : vector<256x64xf32>
    %23 = math.exp %22 : vector<256x64xf32>
    %cst_16 = arith.constant dense<0.000000e+00> : vector<256xf32>
    %24 = vector.multi_reduction <add>, %23, %cst_16 [1] : vector<256x64xf32> to vector<256xf32>
    %25 = vector.shape_cast %24 : vector<256xf32> to vector<256x1xf32>
    %26 = tpu.reciprocal %25 {approx = true} : vector<256x1xf32> -> vector<256x1xf32>
    %27 = vector.broadcast %26 : vector<256x1xf32> to vector<256x64xf32>
    %28 = arith.mulf %23, %27 : vector<256x64xf32>
    %29 = vector.extract_strided_slice %15 {offsets = [0, 0], sizes = [8, 64], strides = [1, 1]} : vector<32x64xf32> to vector<8x64xf32>
    %cst_17 = arith.constant dense<0.000000e+00> : vector<8x256xf32>
    %30 = tpu.matmul %29, %28, %cst_17 {dimension_numbers = #tpu.dot_dimension_numbers<[1], [1], [0], [0], [0, 0, 1, 0], [], []>} : vector<8x64xf32>, vector<256x64xf32>, vector<8x256xf32> -> vector<8x256xf32>
    %31 = vector.extract_strided_slice %8 {offsets = [8, 0], sizes = [8, 256], strides = [1, 1]} : vector<32x256xf32> to vector<8x256xf32>
    %32 = vector.extract_strided_slice %14 {offsets = [8, 0], sizes = [8, 64], strides = [1, 1]} : vector<32x64xf32> to vector<8x64xf32>
    %cst_18 = arith.constant dense<0.000000e+00> : vector<256x64xf32>
    %33 = tpu.matmul %31, %32, %cst_18 {dimension_numbers = #tpu.dot_dimension_numbers<[0], [0], [1], [1], [0, 1, 1, 1], [], []>} : vector<8x256xf32>, vector<8x64xf32>, vector<256x64xf32> -> vector<256x64xf32>
    %cst_19 = arith.constant dense<0xFF800000> : vector<256xf32>
    %34 = vector.multi_reduction <maximumf>, %33, %cst_19 [1] : vector<256x64xf32> to vector<256xf32>
    %35 = vector.shape_cast %34 : vector<256xf32> to vector<256x1xf32>
    %36 = vector.broadcast %35 : vector<256x1xf32> to vector<256x64xf32>
    %37 = arith.subf %33, %36 : vector<256x64xf32>
    %38 = math.exp %37 : vector<256x64xf32>
    %cst_20 = arith.constant dense<0.000000e+00> : vector<256xf32>
    %39 = vector.multi_reduction <add>, %38, %cst_20 [1] : vector<256x64xf32> to vector<256xf32>
    %40 = vector.shape_cast %39 : vector<256xf32> to vector<256x1xf32>
    %41 = tpu.reciprocal %40 {approx = true} : vector<256x1xf32> -> vector<256x1xf32>
    %42 = vector.broadcast %41 : vector<256x1xf32> to vector<256x64xf32>
    %43 = arith.mulf %38, %42 : vector<256x64xf32>
    %44 = vector.extract_strided_slice %15 {offsets = [8, 0], sizes = [8, 64], strides = [1, 1]} : vector<32x64xf32> to vector<8x64xf32>
    %cst_21 = arith.constant dense<0.000000e+00> : vector<8x256xf32>
    %45 = tpu.matmul %44, %43, %cst_21 {dimension_numbers = #tpu.dot_dimension_numbers<[1], [1], [0], [0], [0, 0, 1, 0], [], []>} : vector<8x64xf32>, vector<256x64xf32>, vector<8x256xf32> -> vector<8x256xf32>
    %46 = vector.extract_strided_slice %8 {offsets = [16, 0], sizes = [8, 256], strides = [1, 1]} : vector<32x256xf32> to vector<8x256xf32>
    %47 = vector.extract_strided_slice %14 {offsets = [16, 0], sizes = [8, 64], strides = [1, 1]} : vector<32x64xf32> to vector<8x64xf32>
    %cst_22 = arith.constant dense<0.000000e+00> : vector<256x64xf32>
    %48 = tpu.matmul %46, %47, %cst_22 {dimension_numbers = #tpu.dot_dimension_numbers<[0], [0], [1], [1], [0, 1, 1, 1], [], []>} : vector<8x256xf32>, vector<8x64xf32>, vector<256x64xf32> -> vector<256x64xf32>
    %cst_23 = arith.constant dense<0xFF800000> : vector<256xf32>
    %49 = vector.multi_reduction <maximumf>, %48, %cst_23 [1] : vector<256x64xf32> to vector<256xf32>
    %50 = vector.shape_cast %49 : vector<256xf32> to vector<256x1xf32>
    %51 = vector.broadcast %50 : vector<256x1xf32> to vector<256x64xf32>
    %52 = arith.subf %48, %51 : vector<256x64xf32>
    %53 = math.exp %52 : vector<256x64xf32>
    %cst_24 = arith.constant dense<0.000000e+00> : vector<256xf32>
    %54 = vector.multi_reduction <add>, %53, %cst_24 [1] : vector<256x64xf32> to vector<256xf32>
    %55 = vector.shape_cast %54 : vector<256xf32> to vector<256x1xf32>
    %56 = tpu.reciprocal %55 {approx = true} : vector<256x1xf32> -> vector<256x1xf32>
    %57 = vector.broadcast %56 : vector<256x1xf32> to vector<256x64xf32>
    %58 = arith.mulf %53, %57 : vector<256x64xf32>
    %59 = vector.extract_strided_slice %15 {offsets = [16, 0], sizes = [8, 64], strides = [1, 1]} : vector<32x64xf32> to vector<8x64xf32>
    %cst_25 = arith.constant dense<0.000000e+00> : vector<8x256xf32>
    %60 = tpu.matmul %59, %58, %cst_25 {dimension_numbers = #tpu.dot_dimension_numbers<[1], [1], [0], [0], [0, 0, 1, 0], [], []>} : vector<8x64xf32>, vector<256x64xf32>, vector<8x256xf32> -> vector<8x256xf32>
    %61 = vector.extract_strided_slice %8 {offsets = [24, 0], sizes = [8, 256], strides = [1, 1]} : vector<32x256xf32> to vector<8x256xf32>
    %62 = vector.extract_strided_slice %14 {offsets = [24, 0], sizes = [8, 64], strides = [1, 1]} : vector<32x64xf32> to vector<8x64xf32>
    %cst_26 = arith.constant dense<0.000000e+00> : vector<256x64xf32>
    %63 = tpu.matmul %61, %62, %cst_26 {dimension_numbers = #tpu.dot_dimension_numbers<[0], [0], [1], [1], [0, 1, 1, 1], [], []>} : vector<8x256xf32>, vector<8x64xf32>, vector<256x64xf32> -> vector<256x64xf32>
    %cst_27 = arith.constant dense<0xFF800000> : vector<256xf32>
    %64 = vector.multi_reduction <maximumf>, %63, %cst_27 [1] : vector<256x64xf32> to vector<256xf32>
    %65 = vector.shape_cast %64 : vector<256xf32> to vector<256x1xf32>
    %66 = vector.broadcast %65 : vector<256x1xf32> to vector<256x64xf32>
    %67 = arith.subf %63, %66 : vector<256x64xf32>
    %68 = math.exp %67 : vector<256x64xf32>
    %cst_28 = arith.constant dense<0.000000e+00> : vector<256xf32>
    %69 = vector.multi_reduction <add>, %68, %cst_28 [1] : vector<256x64xf32> to vector<256xf32>
    %70 = vector.shape_cast %69 : vector<256xf32> to vector<256x1xf32>
    %71 = tpu.reciprocal %70 {approx = true} : vector<256x1xf32> -> vector<256x1xf32>
    %72 = vector.broadcast %71 : vector<256x1xf32> to vector<256x64xf32>
    %73 = arith.mulf %68, %72 : vector<256x64xf32>
    %74 = vector.extract_strided_slice %15 {offsets = [24, 0], sizes = [8, 64], strides = [1, 1]} : vector<32x64xf32> to vector<8x64xf32>
    %cst_29 = arith.constant dense<0.000000e+00> : vector<8x256xf32>
    %75 = tpu.matmul %74, %73, %cst_29 {dimension_numbers = #tpu.dot_dimension_numbers<[1], [1], [0], [0], [0, 0, 1, 0], [], []>} : vector<8x64xf32>, vector<256x64xf32>, vector<8x256xf32> -> vector<8x256xf32>
    %76 = tpu.concatenate %30, %45, %60, %75 in 0 : vector<8x256xf32>, vector<8x256xf32>, vector<8x256xf32>, vector<8x256xf32> -> vector<32x256xf32>
    %c0_30 = arith.constant 0 : index
    %c0_31 = arith.constant 0 : index
    %77 = vector.load %arg8[%c0_30, %c0_31] : memref<8x32xf32, #tpu.memory_space<vmem>>, vector<8x32xf32>
    %cst_32 = arith.constant dense<0.000000e+00> : vector<8x256xf32>
    %78 = tpu.matmul %77, %76, %cst_32 {dimension_numbers = #tpu.dot_dimension_numbers<[1], [0], [0], [1], [0, 0, 1, 1], [], []>} : vector<8x32xf32>, vector<32x256xf32>, vector<8x256xf32> -> vector<8x256xf32>
    %c0_33 = arith.constant 0 : index
    %c0_34 = arith.constant 0 : index
    %79 = vector.load %arg9[%c0_33, %c0_34] : memref<8x1xf32, #tpu.memory_space<vmem>>, vector<8x1xf32>
    %80 = vector.broadcast %79 : vector<8x1xf32> to vector<8x256xf32>
    %81 = arith.addf %78, %80 : vector<8x256xf32>
    %cst_35 = arith.constant 0.000000e+00 : f32
    %82 = vector.broadcast %cst_35 : f32 to vector<8x256xf32>
    %83 = arith.maximumf %81, %82 : vector<8x256xf32>
    %84 = arith.addf %1, %83 : vector<8x256xf32>
    %c0_36 = arith.constant 0 : index
    %c0_37 = arith.constant 0 : index
    %c0_38 = arith.constant 0 : index
    %85 = vector.load %arg10[%c0_36, %c0_37, %c0_38] : memref<1x8x256xf32, #tpu.memory_space<vmem>>, vector<1x8x256xf32>
    %86 = vector.shape_cast %85 : vector<1x8x256xf32> to vector<8x256xf32>
    %87 = vector.shape_cast %84 : vector<8x256xf32> to vector<1x8x256xf32>
    tpu.vector_store %arg10[%c0_36, %c0_37, %c0_38], %87 {strides = array<i32>} : memref<1x8x256xf32, #tpu.memory_space<vmem>>, vector<1x8x256xf32>,
    return
  }
  func.func @transform_0(%arg0: i32, %arg1: i32) -> (i32, i32, i32) {
    %c0_i32 = arith.constant 0 : i32
    %c0_i32_0 = arith.constant 0 : i32
    return %arg0, %c0_i32, %arg1 : i32, i32, i32
  }
  func.func @transform_1(%arg0: i32, %arg1: i32) -> (i32, i32, i32) {
    %c0_i32 = arith.constant 0 : i32
    %c0_i32_0 = arith.constant 0 : i32
    %c0_i32_1 = arith.constant 0 : i32
    return %arg0, %c0_i32, %c0_i32_0 : i32, i32, i32
  }
  func.func @transform_2(%arg0: i32, %arg1: i32) -> (i32, i32) {
    %c0_i32 = arith.constant 0 : i32
    %c0_i32_0 = arith.constant 0 : i32
    %c0_i32_1 = arith.constant 0 : i32
    return %c0_i32, %c0_i32_0 : i32, i32
  }
  func.func @transform_3(%arg0: i32, %arg1: i32) -> (i32, i32) {
    %c0_i32 = arith.constant 0 : i32
    %c0_i32_0 = arith.constant 0 : i32
    %c0_i32_1 = arith.constant 0 : i32
    return %c0_i32, %c0_i32_0 : i32, i32
  }
  func.func @transform_4(%arg0: i32, %arg1: i32) -> (i32, i32) {
    %c0_i32 = arith.constant 0 : i32
    %c0_i32_0 = arith.constant 0 : i32
    %c0_i32_1 = arith.constant 0 : i32
    return %c0_i32, %c0_i32_0 : i32, i32
  }
  func.func @transform_5(%arg0: i32, %arg1: i32) -> (i32, i32) {
    %c0_i32 = arith.constant 0 : i32
    %c0_i32_0 = arith.constant 0 : i32
    %c0_i32_1 = arith.constant 0 : i32
    return %c0_i32, %c0_i32_0 : i32, i32
  }
  func.func @transform_6(%arg0: i32, %arg1: i32) -> (i32, i32) {
    %c0_i32 = arith.constant 0 : i32
    %c0_i32_0 = arith.constant 0 : i32
    %c0_i32_1 = arith.constant 0 : i32
    return %c0_i32, %c0_i32_0 : i32, i32
  }
  func.func @transform_7(%arg0: i32, %arg1: i32) -> (i32, i32) {
    %c0_i32 = arith.constant 0 : i32
    %c0_i32_0 = arith.constant 0 : i32
    %c0_i32_1 = arith.constant 0 : i32
    return %c0_i32, %c0_i32_0 : i32, i32
  }
  func.func @transform_8(%arg0: i32, %arg1: i32) -> (i32, i32, i32) {
    %c0_i32 = arith.constant 0 : i32
    %c0_i32_0 = arith.constant 0 : i32
    return %arg0, %c0_i32, %arg1 : i32, i32, i32
  }
}

</mosaic_0001>

<bundles_post_ra>
// kernel: tpu_custom_call.1
= control target key start
LH: loop header
LB: loop body
LE: loop exit
PB: predicated region body
PF: predicated region fallthrough
CT: control target
= control target key end

     0   :  { %13 = vsyncpa [#allocation3], 0  ;;  %s8108_s0 = inlined_call_operand.vmem [shape: f32[2,8,256], index: 0, kind: input, shape index: {}]   ;;  %s8109_s1 = inlined_call_operand.vmem [shape: f32[2,16,64], index: 1, kind: input, shape index: {}]   ;;  %s8110_s2 = inlined_call_operand.vmem [shape: f32[32,8], index: 2, kind: input, shape index: {}]   ;;  %s8111_s3 = inlined_call_operand.vmem [shape: f32[32,1], index: 3, kind: input, shape index: {}]   ;;  %s8112_s4 = inlined_call_operand.vmem [shape: f32[64,16], index: 4, kind: input, shape index: {}]   ;;  %s8113_s5 = inlined_call_operand.vmem [shape: f32[64,1], index: 5, kind: input, shape index: {}]   ;;  %s8114_s6 = inlined_call_operand.vmem [shape: f32[8,32], index: 6, kind: input, shape index: {}]   ;;  %s8115_s7 = inlined_call_operand.vmem [shape: f32[8,1], index: 7, kind: input, shape index: {}]   ;;  %s8116_s8 = inlined_call_operand.hbm [shape: f32[2,8,256], index: 8, kind: output, shape index: {}]  }
   0x1   :  { %15 = vsyncpa [#allocation3 + $0x1], 0  ;;  %s6187_s27 = smov 0   ;;  %s6189_s28 = smov 0  }
   0x2   :  { %s6191_s29 = smov 0   ;;  %s6193_s30 = smov 0  }
   0x3   :  { %s6195_s9 = smov 0   ;;  %s6197_s10 = smov 0  }
   0x4 LB: > { %s4497_s11 = sadd.s32 4294967295, %s6137_s10   ;;  %s4498_s12 = sadd.s32 4294967294, %s6137_s10   ;;  %s6137_s10 = sphi %s6197_s10, %s21_s10   ;;  %s6133_s9 = sphi %s6195_s9, %s8140_s9   ;;  %s6129_s30 = sphi %s6193_s30, %s8139_s30   ;;  %s6125_s29 = sphi %s6191_s29, %s8138_s29   ;;  %s6121_s28 = sphi %s6189_s28, %s8137_s28   ;;  %s6117_s27 = sphi %s6187_s27, %s8136_s27  }
   0x5   : > { %s33_s13 = sadd.s32 1, %s6133_s9  ;;  %s222_s14 = sadd.s32 1, %s6125_s29 }
   0x6   : > { %p35_p0 = scmp.ge.s32.totalorder %s33_s13, 2  ;;  %p232_p1 = scmp.ne.s32.totalorder %s6125_s29, %s6121_s28 }
   0x7   : > { %p233_p2 = scmp.eq.s32.totalorder %s4497_s11, 1  ;;  %p238_p3 = scmp.ne.s32.totalorder %s6121_s28, %s6117_s27 }
   0x8   : > { %s8142_s13 = smov (%p35_p0, %s33_s13), 0  ;;  %p239_p5 = scmp.eq.s32.totalorder %s4498_s12, 1 }
   0x9   : > { %8119 = sst [smem:[#allocation5_spill]] %s8142_s13  ;;  %p6227_p4 = por %p233_p2, %p232_p1 }
   0xa   : > { %s217_s16 = ssub.s32 %s6133_s9, %s8142_s13  ;;  %p4501_p6 = scmp.ge.s32.totalorder %s6137_s10, 1 }
   0xb   : > { %p220_p7 = scmp.eq.s32.totalorder %s217_s16, 0  ;;  %p6234_p8 = por %p239_p5, %p238_p3 }
   0xc   : > { %p296_p9 = scmp.lt.s32.totalorder %s6137_s10, 3 }
   0xd   : > { %s6240_s18 = scalar_select %p220_p7, %s6125_s29, %s222_s14  }
   0xe   : > { %p297_p10 = pnand %p4501_p6, %p296_p9 }
  0x10   : > { %300 = sbr.rel (%p297_p10) target bundleno = 3820 (0xeec), region = 52 }
  0x17   : > { %p340_p11 = scmp.lt.s32.totalorder %s6129_s30, 1  ;;  %v8118_v0 = vmov 0.0   ;;  %v6140_v1 = vmov 0   ;;  %v363_v2 = vld [vmem:[%s8111_s3] sm:$0xff]  ;;  %vm387_vm0 = vcmask 64512   ;;  %v360_v10 = vld [vmem:[%s8110_s2 + $0x8] sm:$0xff] }
  0x18   : > { %464 = vmatprep.mubr.f32.mxu0 %v8118_v0  ;;  %5543 = vset.pattern.permute.xlu0 %v6140_v1  ;;  %v497_v3 = vld [vmem:[%s8113_s5] sm:$0xff]  ;;  %v361_v11 = vld [vmem:[%s8110_s2 + $0x10] sm:$0xff]  ;;  %v362_v12 = vld [vmem:[%s8110_s2 + $0x18] sm:$0xff]  ;;  %vm545_vm1 = vcmask 130048   ;;  %vm1060_vm2 = vcmask 523264   ;;  %vm4311_vm4 = vcmask 261120  }
  0x19   : > { %s341_s19 = scalar_select %p340_p11, %s6129_s30, 1  ;;  %369 = vperm.xlu0 %5543, %v363_v2   ;;  %v359_v4 = vld [vmem:[%s8110_s2] sm:$0xff]  ;;  %v490_v14 = vld [vmem:[%s8112_s4 + $0x8] sm:$0xff]  ;;  %v491_v15 = vld [vmem:[%s8112_s4 + $0x10] sm:$0xff] }
  0x1a   : > { %v489_v13 = vld [vmem:[%s8112_s4] sm:$0xff]  ;;  %v492_v16 = vld [vmem:[%s8112_s4 + $0x18] sm:$0xff]  ;;  %v494_v18 = vld [vmem:[%s8112_s4 + $0x28] sm:$0xff] }
  0x1b   : > { %s4785_s22 = sshll.u32 %s341_s19, 4  ;;  %v493_v17 = vld [vmem:[%s8112_s4 + $0x20] sm:$0xff]  ;;  %v495_v19 = vld [vmem:[%s8112_s4 + $0x30] sm:$0xff]  ;;  %v496_v20 = vld [vmem:[%s8112_s4 + $0x38] sm:$0xff]  ;;  %s4787_s19 = sshll.u32 %s6129_s30, 8 }
  0x1c   : > { %s6255_s11 = scalar_lea.vmem %s8108_s0, %s4785_s22  ;;  %s353_s16 = scalar_lea.vmem %s8109_s1, %s4785_s22  ;;  %vm6678_vm3 = vmpackc.low %vm1060_vm2, %vm1060_vm2 }
  0x1d   : > { %v356_v5 = vld [vmem:[%s6255_s11 + $0x8] sm:$0xff]  ;;  %v357_v6 = vld [vmem:[%s353_s16] sm:$0xff]  ;;  %507 = vperm.xlu0 %5543, %v497_v3   ;;  %s8061_s24 = scalar_lea.hbm %s8116_s8, %s4787_s19 }
  0x1e   : > { %v358_v7 = vld [vmem:[%s353_s16 + $0x8] sm:$0xff]  ;;  %400 = vmatprep.subr.mxu0 %v356_v5  ;;  %v355_v8 = vld [vmem:[%s6255_s11] sm:$0xff]  ;;  %s336_s16 = sand.u32 1, %s6121_s28  }
  0x1f   : > { %v5282_v9 = vpack.c.bf16 %v358_v7, %v357_v6  ;;  %401 = vmatpush1.msra.mxu0 %v355_v8  ;;  %s4502_s20 = sshll.u32 %s336_s16, 4  ;;  %s4393_s30 = scalar_lea.sflag [#allocation3], %s336_s16 }
  0x20   : > { %4507 = vmatmul.mubr.msk.f32.vlgmr.msra.gmra.mrb[0].mxu0 %vm387_vm0, %v359_v4  ;;  %s338_s21 = scalar_lea.vmem [#allocation2], %s4502_s20 }
  0x21   : > { %5283 = vmatprep.subr.bf16.mxu0 %v5282_v9  ;;  %470 = vmatprep.mubr.f32.mxu0 %v8118_v0  ;;  %s4409_s13 = sshll.u32 %s338_s21, 4  ;;  %s8063_s13 = int_to_ptr.vmem [resolvable:$true] %s4409_s13 }
  0x22   : > { %5285 = vmatpush3.bf16.msra.mxu0 %v5282_v9  ;;  %s6059_s25 = scalar_lea.vmem %s8063_s13, 256 }
  0x23   : > { %p6060_p12 = scmp.ne.s32.totalorder %s8063_s13, %s6059_s25 }
  0x24   : > { %4508 = vmatmul.mubr.msk.f32.gmra.mrb[2].mxu0 %vm387_vm0, %v360_v10 }
  0x25   : > { %476 = vmatprep.mubr.f32.mxu0 %v8118_v0  ;;  %p6061_p13 = pnand %p6060_p12, %p6227_p4 }
  0x27   : > { %p6062_p0 = pneg %p6061_p13 }
  0x28   : > { %4509 = vmatmul.mubr.msk.f32.gmra.mrb[4].mxu0 %vm387_vm0, %v361_v11 }
  0x29   : > { %482 = vmatprep.mubr.f32.mxu0 %v8118_v0 }
  0x2c   : > { %4510 = vmatmul.mubr.msk.f32.gmra.mrb[6].mxu0 %vm387_vm0, %v362_v12 }
  0x2d   : > { %5070 = vmatprep.mubr.msk.f32.mxu0 %vm545_vm1, %v489_v13 }
  0x30   : > { %5071 = vmatmul.mubr.msk.f32.vlgmr.msra.gmra.mrb[8].mxu0 %vm545_vm1, %v490_v14 }
  0x31   : > { %5073 = vmatprep.mubr.msk.f32.mxu0 %vm545_vm1, %v491_v15 }
  0x34   : > { %5074 = vmatmul.mubr.msk.f32.gmra.mrb[10].mxu0 %vm545_vm1, %v492_v16 }
  0x35   : > { %5076 = vmatprep.mubr.msk.f32.mxu0 %vm545_vm1, %v493_v17 }
  0x38   : > { %5077 = vmatmul.mubr.msk.f32.gmra.mrb[12].mxu0 %vm545_vm1, %v494_v18 }
  0x39   : > { %5079 = vmatprep.mubr.msk.f32.mxu0 %vm545_vm1, %v495_v19 }
  0x3c   : > { %5080 = vmatmul.mubr.msk.f32.gmra.mrb[14].mxu0 %vm545_vm1, %v496_v20 }
  0x98   : > { %v370_v21 = vpop.permute.xlu0 %369 }
  0x9c   : > { %v508_v32 = vpop.permute.xlu0 %507 }
  0xf3   : > { %v466_v22 = vpop.f32.mrb[0].mxu0 }
  0xf4   : > { %v468_v23 = vpop.f32.mrb[1].mxu0  ;;  %v467_v24 = vadd.f32 %v466_v22, %v370_v21 }
  0xf5   : > { %v469_v35 = vadd.f32 %v468_v23, %v370_v21 }
  0xf6   : > { %675 = vxpose.xlu1.b32.start.end [1/1] (short) %v467_v24, 128 }
  0xf7   : > { %v6313_v25 = vpop.f32.mrb[2].mxu0 }
  0xf8   : > { %v6315_v26 = vpop.f32.mrb[3].mxu0 }
  0xfb   : > { %v6317_v27 = vpop.f32.mrb[4].mxu0 }
  0xfc   : > { %v6319_v28 = vpop.f32.mrb[5].mxu0 }
  0xff   : > { %v6321_v29 = vpop.f32.mrb[6].mxu0 }
 0x100   : > { %8122 = vst [vmem:[#allocation6_spill] sm:$0xff] %v6321_v29  ;;  %v6323_v30 = vpop.f32.mrb[7].mxu0 }
 0x101   : > { %8123 = vst [vmem:[#allocation7_spill] sm:$0xff] %v6323_v30 }
 0x103   : > { %v6325_v31 = vpop.f32.mrb[8].mxu0 }
 0x104   : > { %v636_v33 = vpop.f32.mrb[9].mxu0 }
 0x105   : > { %v637_v34 = vadd.f32 %v636_v33, %v508_v32 }
 0x107   : > { %5082 = vmatprep.subr.mxu0 %v637_v34  ;;  %v6333_v41 = vpop.f32.mrb[10].mxu0 }
 0x108   : > { %5083 = vmatpush3.msra.mxu0 %v637_v34  ;;  %8124 = vst [vmem:[#allocation8_spill] sm:$0xff] %v6333_v41  ;;  %v6335_v42 = vpop.f32.mrb[11].mxu0 }
 0x10b   : > { %v6338_v44 = vpop.f32.mrb[12].mxu0 }
 0x10c   : > { %v6340_v45 = vpop.f32.mrb[13].mxu0 }
 0x10f   : > { %v6343_v47 = vpop.f32.mrb[14].mxu0 }
 0x110   : > { %8125 = vst [vmem:[#allocation9_spill] sm:$0xff] %v6343_v47  ;;  %v6345_v48 = vpop.f32.mrb[15].mxu0 }
 0x111   : > { %8126 = vst [vmem:[#allocation10_spill] sm:$0xff] %v6345_v48 }
 0x133   : > { %707 = vxpose.xlu1.b32.start.end [1/1] (short) %v469_v35, 128 }
 0x151   : > { %5544 = vset.pattern.permute.xlu1 %v6140_v1 }
 0x176   : > { %v691_v36 = vpop.trf.xlu1 }
 0x177   : > { %5084 = vmatprep.mubr.msk.f32.mxu0 %vm387_vm0, %v691_v36 }
 0x17a   : > { %v692_v37 = vpop.trf.xlu1 }
 0x17b   : > { %5085 = vmatmul.mubr.msk.f32.vlgmr.msra.gmra.mrb[16].mxu0 %vm387_vm0, %v692_v37 }
 0x17e   : > { %v693_v38 = vpop.trf.xlu1 }
 0x17f   : > { %5087 = vmatprep.mubr.msk.f32.mxu0 %vm387_vm0, %v693_v38 }
 0x182   : > { %v694_v39 = vpop.trf.xlu1 }
 0x183   : > { %5088 = vmatmul.mubr.msk.f32.gmra.mrb[18].mxu0 %vm387_vm0, %v694_v39 }
 0x186   : > { %v695_v40 = vpop.trf.xlu1 }
 0x187   : > { %5090 = vmatprep.mubr.msk.f32.mxu0 %vm387_vm0, %v695_v40 }
 0x18a   : > { %v696_v43 = vpop.trf.xlu1 }
 0x18b   : > { %5091 = vmatmul.mubr.msk.f32.gmra.mrb[20].mxu0 %vm387_vm0, %v696_v43 }
 0x18e   : > { %v697_v46 = vpop.trf.xlu1 }
 0x18f   : > { %5093 = vmatprep.mubr.msk.f32.mxu0 %vm387_vm0, %v697_v46 }
 0x192   : > { %v698_v49 = vpop.trf.xlu1 }
 0x193   : > { %5094 = vmatmul.mubr.msk.f32.gmra.mrb[22].mxu0 %vm387_vm0, %v698_v49 }
 0x196   : > { %v699_v50 = vpop.trf.xlu1 }
 0x197   : > { %5096 = vmatprep.mubr.msk.f32.mxu0 %vm387_vm0, %v699_v50 }
 0x19a   : > { %v700_v51 = vpop.trf.xlu1 }
 0x19b   : > { %5097 = vmatmul.mubr.msk.f32.gmra.mrb[24].mxu0 %vm387_vm0, %v700_v51 }
 0x19e   : > { %v701_v52 = vpop.trf.xlu1 }
 0x19f   : > { %5099 = vmatprep.mubr.msk.f32.mxu0 %vm387_vm0, %v701_v52 }
 0x1a2   : > { %v702_v53 = vpop.trf.xlu1 }
 0x1a3   : > { %5100 = vmatmul.mubr.msk.f32.gmra.mrb[26].mxu0 %vm387_vm0, %v702_v53 }
 0x1a6   : > { %v703_v54 = vpop.trf.xlu1 }
 0x1a7   : > { %5102 = vmatprep.mubr.msk.f32.mxu0 %vm387_vm0, %v703_v54 }
 0x1aa   : > { %v704_v55 = vpop.trf.xlu1 }
 0x1ab   : > { %5103 = vmatmul.mubr.msk.f32.gmra.mrb[28].mxu0 %vm387_vm0, %v704_v55 }
 0x1ae   : > { %v705_v56 = vpop.trf.xlu1 }
 0x1af   : > { %5105 = vmatprep.mubr.msk.f32.mxu0 %vm387_vm0, %v705_v56 }
 0x1b2   : > { %v706_v57 = vpop.trf.xlu1 }
 0x1b3   : > { %5106 = vmatmul.mubr.msk.f32.gmra.mrb[30].mxu0 %vm387_vm0, %v706_v57 }
 0x1b6   : > { %v723_v58 = vpop.trf.xlu1 }
 0x1b7   : > { %5108 = vmatprep.mubr.msk.f32.mxu0 %vm387_vm0, %v723_v58 }
 0x1ba   : > { %v724_v59 = vpop.trf.xlu1 }
 0x1bb   : > { %5109 = vmatmul.mubr.msk.f32.gmra.mrb[32].mxu0 %vm387_vm0, %v724_v59 }
 0x1be   : > { %v725_v60 = vpop.trf.xlu1 }
 0x1bf   : > { %5111 = vmatprep.mubr.msk.f32.mxu0 %vm387_vm0, %v725_v60 }
 0x1c2   : > { %v726_v61 = vpop.trf.xlu1 }
 0x1c3   : > { %5112 = vmatmul.mubr.msk.f32.gmra.mrb[34].mxu0 %vm387_vm0, %v726_v61 }
 0x1c6   : > { %v727_v62 = vpop.trf.xlu1 }
 0x1c7   : > { %5114 = vmatprep.mubr.msk.f32.mxu0 %vm387_vm0, %v727_v62 }
 0x1ca   : > { %v728_v63 = vpop.trf.xlu1 }
 0x1cb   : > { %5115 = vmatmul.mubr.msk.f32.gmra.mrb[36].mxu0 %vm387_vm0, %v728_v63 }
 0x1ce   : > { %v729_v1 = vpop.trf.xlu1 }
 0x1cf   : > { %5117 = vmatprep.mubr.msk.f32.mxu0 %vm387_vm0, %v729_v1 }
 0x1d2   : > { %v730_v2 = vpop.trf.xlu1 }
 0x1d3   : > { %5118 = vmatmul.mubr.msk.f32.gmra.mrb[38].mxu0 %vm387_vm0, %v730_v2 }
 0x1d6   : > { %v731_v3 = vpop.trf.xlu1 }
 0x1d7   : > { %5120 = vmatprep.mubr.msk.f32.mxu0 %vm387_vm0, %v731_v3 }
 0x1da   : > { %v732_v4 = vpop.trf.xlu1 }
 0x1db   : > { %5121 = vmatmul.mubr.msk.f32.gmra.mrb[40].mxu0 %vm387_vm0, %v732_v4 }
 0x1de   : > { %v733_v5 = vpop.trf.xlu1 }
 0x1df   : > { %5123 = vmatprep.mubr.msk.f32.mxu0 %vm387_vm0, %v733_v5 }
 0x1e2   : > { %v734_v6 = vpop.trf.xlu1 }
 0x1e3   : > { %5124 = vmatmul.mubr.msk.f32.gmra.mrb[42].mxu0 %vm387_vm0, %v734_v6 }
 0x1e6   : > { %v735_v7 = vpop.trf.xlu1 }
 0x1e7   : > { %5126 = vmatprep.mubr.msk.f32.mxu0 %vm387_vm0, %v735_v7 }
 0x1ea   : > { %v736_v8 = vpop.trf.xlu1 }
 0x1eb   : > { %5127 = vmatmul.mubr.msk.f32.gmra.mrb[44].mxu0 %vm387_vm0, %v736_v8 }
 0x1ee   : > { %v737_v9 = vpop.trf.xlu1 }
 0x1ef   : > { %5129 = vmatprep.mubr.msk.f32.mxu0 %vm387_vm0, %v737_v9 }
 0x1f2   : > { %v738_v10 = vpop.trf.xlu1 }
 0x1f3   : > { %5130 = vmatmul.mubr.msk.f32.gmra.mrb[46].mxu0 %vm387_vm0, %v738_v10 }
 0x24e   : > { %v6372_v11 = vpop.f32.mrb[16].mxu0 }
 0x24f   : > { %v6374_v12 = vpop.f32.mrb[17].mxu0  ;;  %v1064_v13 = vsel %vm1060_vm2, %v6372_v11, -inf }
 0x250   : > { %1065 = vmax.xlane.f32.xlu0 %v1064_v13  ;;  %v1061_v14 = vsel %vm1060_vm2, %v6374_v12, -inf }
 0x254   : > { %1062 = vmax.xlane.f32.xlu0 %v1061_v14 }
 0x256   : > { %v6380_v15 = vpop.f32.mrb[18].mxu0 }
 0x257   : > { %v6382_v16 = vpop.f32.mrb[19].mxu0  ;;  %v1070_v17 = vsel %vm1060_vm2, %v6380_v15, -inf }
 0x258   : > { %1071 = vmax.xlane.f32.xlu0 %v1070_v17  ;;  %v1067_v18 = vsel %vm1060_vm2, %v6382_v16, -inf }
 0x25c   : > { %1068 = vmax.xlane.f32.xlu0 %v1067_v18 }
 0x25e   : > { %v6388_v19 = vpop.f32.mrb[20].mxu0 }
 0x25f   : > { %v6390_v20 = vpop.f32.mrb[21].mxu0  ;;  %v1076_v58 = vsel %vm1060_vm2, %v6388_v19, -inf }
 0x260   : > { %v1073_v56 = vsel %vm1060_vm2, %v6390_v20, -inf }
 0x266   : > { %v6392_v21 = vpop.f32.mrb[22].mxu0 }
 0x267   : > { %v6394_v22 = vpop.f32.mrb[23].mxu0  ;;  %v1082_v62 = vsel %vm1060_vm2, %v6392_v21, -inf }
 0x268   : > { %v1079_v60 = vsel %vm1060_vm2, %v6394_v22, -inf }
 0x26e   : > { %v6396_v23 = vpop.f32.mrb[24].mxu0 }
 0x26f   : > { %v6398_v24 = vpop.f32.mrb[25].mxu0  ;;  %v1088_v3 = vsel %vm1060_vm2, %v6396_v23, -inf }
 0x270   : > { %v1085_v1 = vsel %vm1060_vm2, %v6398_v24, -inf }
 0x276   : > { %v6400_v32 = vpop.f32.mrb[26].mxu0 }
 0x277   : > { %v6402_v33 = vpop.f32.mrb[27].mxu0  ;;  %v1094_v7 = vsel %vm1060_vm2, %v6400_v32, -inf }
 0x278   : > { %v1091_v5 = vsel %vm1060_vm2, %v6402_v33, -inf }
 0x27e   : > { %v6404_v34 = vpop.f32.mrb[28].mxu0 }
 0x27f   : > { %v6406_v35 = vpop.f32.mrb[29].mxu0  ;;  %v1100_v13 = vsel %vm1060_vm2, %v6404_v34, -inf }
 0x280   : > { %v1097_v9 = vsel %vm1060_vm2, %v6406_v35, -inf }
 0x286   : > { %v6408_v36 = vpop.f32.mrb[30].mxu0 }
 0x287   : > { %v6410_v37 = vpop.f32.mrb[31].mxu0 }
 0x288   : > { %v1103_v17 = vsel %vm1060_vm2, %v6410_v37, -inf }
 0x28e   : > { %v6412_v38 = vpop.f32.mrb[32].mxu0 }
 0x28f   : > { %v6414_v39 = vpop.f32.mrb[33].mxu0  ;;  %v1112_v40 = vsel %vm1060_vm2, %v6412_v38, -inf }
 0x290   : > { %1113 = vmax.xlane.f32.xlu0 %v1112_v40  ;;  %v1109_v43 = vsel %vm1060_vm2, %v6414_v39, -inf }
 0x294   : > { %1110 = vmax.xlane.f32.xlu0 %v1109_v43 }
 0x296   : > { %v6420_v46 = vpop.f32.mrb[34].mxu0 }
 0x297   : > { %v6422_v49 = vpop.f32.mrb[35].mxu0  ;;  %v1118_v50 = vsel %vm1060_vm2, %v6420_v46, -inf }
 0x298   : > { %1119 = vmax.xlane.f32.xlu0 %v1118_v50  ;;  %v1115_v51 = vsel %vm1060_vm2, %v6422_v49, -inf }
 0x29c   : > { %1116 = vmax.xlane.f32.xlu0 %v1115_v51 }
 0x29e   : > { %v6428_v52 = vpop.f32.mrb[36].mxu0 }
 0x29f   : > { %v6430_v53 = vpop.f32.mrb[37].mxu0  ;;  %v1124_v54 = vsel %vm1060_vm2, %v6428_v52, -inf }
 0x2a0   : > { %1125 = vmax.xlane.f32.xlu0 %v1124_v54  ;;  %v1121_v55 = vsel %vm1060_vm2, %v6430_v53, -inf }
 0x2a1   : > { %1122 = vmax.xlane.f32.xlu1 %v1121_v55 }
 0x2a4   : > { %1074 = vmax.xlane.f32.xlu0 %v1073_v56 }
 0x2a6   : > { %v6438_v57 = vpop.f32.mrb[38].mxu0 }
 0x2a7   : > { %v6442_v59 = vpop.f32.mrb[39].mxu0  ;;  %v1130_v18 = vsel %vm1060_vm2, %v6438_v57, -inf }
 0x2a8   : > { %1077 = vmax.xlane.f32.xlu0 %v1076_v58  ;;  %v1127_v40 = vsel %vm1060_vm2, %v6442_v59, -inf }
 0x2ac   : > { %1080 = vmax.xlane.f32.xlu0 %v1079_v60 }
 0x2ae   : > { %v6446_v61 = vpop.f32.mrb[40].mxu0 }
 0x2af   : > { %v6450_v63 = vpop.f32.mrb[41].mxu0  ;;  %v1136_v43 = vsel %vm1060_vm2, %v6446_v61, -inf }
 0x2b0   : > { %1083 = vmax.xlane.f32.xlu0 %v1082_v62  ;;  %v1133_v50 = vsel %vm1060_vm2, %v6450_v63, -inf }
 0x2b4   : > { %1086 = vmax.xlane.f32.xlu0 %v1085_v1 }
 0x2b6   : > { %v6454_v2 = vpop.f32.mrb[42].mxu0 }
 0x2b7   : > { %v6458_v4 = vpop.f32.mrb[43].mxu0  ;;  %v1142_v54 = vsel %vm1060_vm2, %v6454_v2, -inf }
 0x2b8   : > { %1089 = vmax.xlane.f32.xlu0 %v1088_v3  ;;  %v1139_v56 = vsel %vm1060_vm2, %v6458_v4, -inf }
 0x2bc   : > { %1092 = vmax.xlane.f32.xlu0 %v1091_v5 }
 0x2be   : > { %v6462_v6 = vpop.f32.mrb[44].mxu0 }
 0x2bf   : > { %v6466_v8 = vpop.f32.mrb[45].mxu0  ;;  %v1148_v3 = vsel %vm1060_vm2, %v6462_v6, -inf }
 0x2c0   : > { %1095 = vmax.xlane.f32.xlu0 %v1094_v7 }
 0x2c4   : > { %1098 = vmax.xlane.f32.xlu0 %v1097_v9  ;;  %v1145_v9 = vsel %vm1060_vm2, %v6466_v8, -inf }
 0x2c6   : > { %v6470_v10 = vpop.f32.mrb[46].mxu0 }
 0x2c7   : > { %v6474_v14 = vpop.f32.mrb[47].mxu0 }
 0x2c8   : > { %1101 = vmax.xlane.f32.xlu0 %v1100_v13 }
 0x2cc   : > { %1104 = vmax.xlane.f32.xlu0 %v1103_v17 }
 0x2d0   : > { %1131 = vmax.xlane.f32.xlu0 %v1130_v18 }
 0x2d4   : > { %1128 = vmax.xlane.f32.xlu0 %v1127_v40 }
 0x2d8   : > { %1137 = vmax.xlane.f32.xlu0 %v1136_v43 }
 0x2dc   : > { %1134 = vmax.xlane.f32.xlu0 %v1133_v50  ;;  %v1151_v50 = vsel %vm1060_vm2, %v6474_v14, -inf }
 0x2dd   : > { %v1066_v51 = vpop.xlane.xlu0 %1065 }
 0x2de   : > { %v1158_v62 = vsub.f32 %v6372_v11, %v1066_v51  ;;  %v1154_v11 = vsel %vm1060_vm2, %v6470_v10, -inf }
 0x2e0   : > { %1143 = vmax.xlane.f32.xlu0 %v1142_v54  ;;  %v1191_v5 = vmul.f32 1.442695, %v1158_v62 }
 0x2e1   : > { %v1063_v55 = vpop.xlane.xlu0 %1062 }
 0x2e2   : > { %v1157_v58 = vsub.f32 %v6374_v12, %v1063_v55 }
 0x2e4   : > { %v1189_v60 = vmul.f32 1.442695, %v1157_v58  ;;  %1140 = vmax.xlane.f32.xlu0 %v1139_v56 }
 0x2e5   : > { %v1072_v1 = vpop.xlane.xlu0 %1071 }
 0x2e6   : > { %5545 = vpow2.f32 %v1189_v60  ;;  %v1160_v13 = vsub.f32 %v6380_v15, %v1072_v1 }
 0x2e7   : > { %5547 = vpow2.f32 %v1191_v5 }
 0x2e8   : > { %1149 = vmax.xlane.f32.xlu0 %v1148_v3  ;;  %v1195_v18 = vmul.f32 1.442695, %v1160_v13 }
 0x2e9   : > { %v1069_v7 = vpop.xlane.xlu0 %1068 }
 0x2ea   : > { %v1159_v17 = vsub.f32 %v6382_v16, %v1069_v7  ;;  %v1106_v16 = vsel %vm1060_vm2, %v6408_v36, -inf }
 0x2ec   : > { %v1193_v12 = vmul.f32 1.442695, %v1159_v17  ;;  %1146 = vmax.xlane.f32.xlu0 %v1145_v9 }
 0x2ee   : > { %5549 = vpow2.f32 %v1193_v12 }
 0x2ef   : > { %5551 = vpow2.f32 %v1195_v18 }
 0x2f0   : > { %v6500_v40 = vpop.eup %5545  ;;  %1155 = vmax.xlane.f32.xlu0 %v1154_v11 }
 0x2f1   : > { %v1253_v43 = vsel %vm1060_vm2, %v6500_v40, 0.0  ;;  %v6506_v15 = vpop.eup %5547 }
 0x2f2   : > { %1254 = vadd.xlane.f32.xlu1 %v1253_v43  ;;  %v1256_v55 = vsel %vm1060_vm2, %v6506_v15, 0.0 }
 0x2f4   : > { %1152 = vmax.xlane.f32.xlu0 %v1151_v50 }
 0x2f8   : > { %v6510_v51 = vpop.eup %5549  ;;  %1107 = vmax.xlane.f32.xlu0 %v1106_v16 }
 0x2f9   : > { %v1259_v54 = vsel %vm1060_vm2, %v6510_v51, 0.0  ;;  %v6516_v56 = vpop.eup %5551 }
 0x2fa   : > { %1260 = vadd.xlane.f32.xlu1 %v1259_v54  ;;  %v1262_v58 = vsel %vm1060_vm2, %v6516_v56, 0.0 }
 0x2fc   : > { %1257 = vadd.xlane.f32.xlu0 %v1256_v55 }
 0x300   : > { %1263 = vadd.xlane.f32.xlu0 %v1262_v58 }
 0x31d   : > { %v1114_v60 = vpop.xlane.xlu0 %1113 }
 0x31e   : > { %v1174_v13 = vsub.f32 %v6412_v38, %v1114_v60 }
 0x320   : > { %v1223_v18 = vmul.f32 1.442695, %v1174_v13 }
 0x321   : > { %v1111_v62 = vpop.xlane.xlu0 %1110 }
 0x322   : > { %v1173_v43 = vsub.f32 %v6414_v39, %v1111_v62 }
 0x324   : > { %v1221_v55 = vmul.f32 1.442695, %v1173_v43 }
 0x325   : > { %v1120_v1 = vpop.xlane.xlu0 %1119 }
 0x329   : > { %v1117_v3 = vpop.xlane.xlu0 %1116 }
 0x32d   : > { %v1126_v5 = vpop.xlane.xlu0 %1125 }
 0x331   : > { %v1075_v7 = vpop.xlane.xlu0 %1074 }
 0x332   : > { %v1161_v9 = vsub.f32 %v6390_v20, %v1075_v7 }
 0x334   : > { %v1197_v17 = vmul.f32 1.442695, %v1161_v9 }
 0x335   : > { %v1078_v12 = vpop.xlane.xlu0 %1077 }
 0x336   : > { %5553 = vpow2.f32 %v1197_v17  ;;  %v1162_v11 = vsub.f32 %v6388_v19, %v1078_v12  ;;  %v1176_v19 = vsub.f32 %v6420_v46, %v1120_v1  ;;  %v1175_v1 = vsub.f32 %v6422_v49, %v1117_v3 }
 0x338   : > { %v1199_v50 = vmul.f32 1.442695, %v1162_v11  ;;  %v1227_v9 = vmul.f32 1.442695, %v1176_v19  ;;  %v1225_v49 = vmul.f32 1.442695, %v1175_v1 }
 0x339   : > { %v1081_v16 = vpop.xlane.xlu0 %1080 }
 0x33a   : > { %5555 = vpow2.f32 %v1199_v50  ;;  %v1163_v54 = vsub.f32 %v6394_v22, %v1081_v16 }
 0x33b   : > { %5557 = vpow2.f32 %v1223_v18 }
 0x33c   : > { %v1201_v58 = vmul.f32 1.442695, %v1163_v54 }
 0x33d   : > { %v1084_v0 = vpop.xlane.xlu0 %1083 }
 0x33e   : > { %5559 = vpow2.f32 %v1201_v58  ;;  %v1164_v20 = vsub.f32 %v6392_v21, %v1084_v0 }
 0x33f   : > { %5561 = vpow2.f32 %v1221_v55  ;;  %v1123_v55 = vpop.xlane.xlu1 %1122 }
 0x340   : > { %v6526_v38 = vpop.eup %5553  ;;  %v1203_v60 = vmul.f32 1.442695, %v1164_v20 }
 0x341   : > { %v1087_v7 = vpop.xlane.xlu0 %1086  ;;  %v1265_v39 = vsel %vm1060_vm2, %v6526_v38, 0.0 }
 0x342   : > { %v1165_v62 = vsub.f32 %v6398_v24, %v1087_v7  ;;  %1266 = vadd.xlane.f32.xlu1 %v1265_v39  ;;  %5563 = vpow2.f32 %v1203_v60  ;;  %v1178_v24 = vsub.f32 %v6428_v52, %v1126_v5 }
 0x344   : > { %v6532_v22 = vpop.eup %5555  ;;  %v1205_v13 = vmul.f32 1.442695, %v1165_v62  ;;  %v1231_v3 = vmul.f32 1.442695, %v1178_v24 }
 0x345   : > { %v1090_v17 = vpop.xlane.xlu0 %1089  ;;  %v1268_v0 = vsel %vm1060_vm2, %v6532_v22, 0.0  ;;  %v6536_v21 = vpop.eup %5557 }
 0x346   : > { %5565 = vpow2.f32 %v1205_v13  ;;  %v1166_v46 = vsub.f32 %v6396_v23, %v1090_v17  ;;  %1269 = vadd.xlane.f32.xlu0 %v1268_v0  ;;  %v1304_v50 = vsel %vm1060_vm2, %v6536_v21, 0.0 }
 0x347   : > { %5567 = vpow2.f32 %v1227_v9 }
 0x348   : > { %v6540_v12 = vpop.eup %5559  ;;  %v1207_v11 = vmul.f32 1.442695, %v1166_v46 }
 0x349   : > { %v1093_v18 = vpop.xlane.xlu0 %1092  ;;  %v1271_v43 = vsel %vm1060_vm2, %v6540_v12, 0.0  ;;  %v6547_v16 = vpop.eup %5561 }
 0x34a   : > { %v1167_v23 = vsub.f32 %v6402_v33, %v1093_v18  ;;  %1272 = vadd.xlane.f32.xlu1 %v1271_v43  ;;  %1305 = vadd.xlane.f32.xlu0 %v1304_v50  ;;  %5569 = vpow2.f32 %v1207_v11  ;;  %v1301_v5 = vsel %vm1060_vm2, %v6547_v16, 0.0  ;;  %v1177_v33 = vsub.f32 %v6430_v53, %v1123_v55 }
 0x34c   : > { %v1209_v54 = vmul.f32 1.442695, %v1167_v23  ;;  %v6552_v58 = vpop.eup %5563 }
 0x34d   : > { %v1096_v52 = vpop.xlane.xlu0 %1095  ;;  %v1274_v62 = vsel %vm1060_vm2, %v6552_v58, 0.0 }
 0x34e   : > { %5571 = vpow2.f32 %v1209_v54  ;;  %v1168_v20 = vsub.f32 %v6400_v32, %v1096_v52  ;;  %1302 = vadd.xlane.f32.xlu0 %v1301_v5  ;;  %v1229_v32 = vmul.f32 1.442695, %v1177_v33 }
 0x34f   : > { %5573 = vpow2.f32 %v1225_v49 }
 0x350   : > { %v6555_v19 = vpop.eup %5565  ;;  %5575 = vpow2.f32 %v1231_v3  ;;  %v1211_v60 = vmul.f32 1.442695, %v1168_v20 }
 0x351   : > { %v1099_v7 = vpop.xlane.xlu0 %1098  ;;  %v1277_v39 = vsel %vm1060_vm2, %v6555_v19, 0.0  ;;  %v6562_v9 = vpop.eup %5567 }
 0x352   : > { %v1169_v13 = vsub.f32 %v6406_v35, %v1099_v7  ;;  %1278 = vadd.xlane.f32.xlu1 %v1277_v39  ;;  %1275 = vadd.xlane.f32.xlu0 %v1274_v62  ;;  %5577 = vpow2.f32 %v1211_v60  ;;  %v1310_v53 = vsel %vm1060_vm2, %v6562_v9, 0.0 }
 0x354   : > { %v1213_v17 = vmul.f32 1.442695, %v1169_v13  ;;  %v6567_v46 = vpop.eup %5569 }
 0x355   : > { %v1102_v0 = vpop.xlane.xlu0 %1101  ;;  %v1280_v18 = vsel %vm1060_vm2, %v6567_v46, 0.0 }
 0x356   : > { %5579 = vpow2.f32 %v1213_v17  ;;  %1311 = vadd.xlane.f32.xlu0 %v1310_v53  ;;  %v1170_v50 = vsub.f32 %v6404_v34, %v1102_v0 }
 0x357   : > { %5581 = vpow2.f32 %v1229_v32 }
 0x358   : > { %v6569_v1 = vpop.eup %5571  ;;  %v1215_v5 = vmul.f32 1.442695, %v1170_v50 }
 0x359   : > { %v6571_v24 = vpop.eup %5573  ;;  %v1105_v11 = vpop.xlane.xlu0 %1104  ;;  %v1283_v35 = vsel %vm1060_vm2, %v6569_v1, 0.0 }
 0x35a   : > { %v6577_v43 = vpop.eup %5575  ;;  %1284 = vadd.xlane.f32.xlu1 %v1283_v35  ;;  %1281 = vadd.xlane.f32.xlu0 %v1280_v18  ;;  %v1307_v49 = vsel %vm1060_vm2, %v6571_v24, 0.0 }
 0x35b   : > { %v1316_v3 = vsel %vm1060_vm2, %v6577_v43, 0.0 }
 0x35c   : > { %v6584_v54 = vpop.eup %5577 }
 0x35d   : > { %v1132_v23 = vpop.xlane.xlu0 %1131  ;;  %v1286_v60 = vsel %vm1060_vm2, %v6584_v54, 0.0 }
 0x35e   : > { %v1180_v55 = vsub.f32 %v6438_v57, %v1132_v23  ;;  %1308 = vadd.xlane.f32.xlu1 %v1307_v49  ;;  %1317 = vadd.xlane.f32.xlu0 %v1316_v3  ;;  %v1171_v57 = vsub.f32 %v6410_v37, %v1105_v11 }
 0x360   : > { %v6587_v52 = vpop.eup %5579  ;;  %v1235_v20 = vmul.f32 1.442695, %v1180_v55  ;;  %v1217_v0 = vmul.f32 1.442695, %v1171_v57 }
 0x361   : > { %v1129_v33 = vpop.xlane.xlu0 %1128  ;;  %v1289_v34 = vsel %vm1060_vm2, %v6587_v52, 0.0  ;;  %v6593_v7 = vpop.eup %5581 }
 0x362   : > { %5583 = vpow2.f32 %v1235_v20  ;;  %v1179_v39 = vsub.f32 %v6442_v59, %v1129_v33  ;;  %1290 = vadd.xlane.f32.xlu1 %v1289_v34  ;;  %1287 = vadd.xlane.f32.xlu0 %v1286_v60  ;;  %v1313_v32 = vsel %vm1060_vm2, %v6593_v7, 0.0 }
 0x363   : > { %5585 = vpow2.f32 %v1215_v5 }
 0x364   : > { %v1233_v62 = vmul.f32 1.442695, %v1179_v39 }
 0x365   : > { %v1138_v13 = vpop.xlane.xlu0 %1137 }
 0x366   : > { %5587 = vpow2.f32 %v1233_v62  ;;  %v1182_v17 = vsub.f32 %v6446_v61, %v1138_v13  ;;  %1314 = vadd.xlane.f32.xlu1 %v1313_v32 }
 0x368   : > { %v1239_v53 = vmul.f32 1.442695, %v1182_v17 }
 0x369   : > { %v1135_v35 = vpop.xlane.xlu0 %1134 }
 0x36a   : > { %5589 = vpow2.f32 %v1239_v53  ;;  %v1181_v59 = vsub.f32 %v6450_v63, %v1135_v35 }
 0x36b   : > { %5591 = vpow2.f32 %v1217_v0 }
 0x36c   : > { %v6601_v18 = vpop.eup %5583  ;;  %v1237_v50 = vmul.f32 1.442695, %v1181_v59 }
 0x36d   : > { %v1144_v37 = vpop.xlane.xlu0 %1143  ;;  %v1322_v11 = vsel %vm1060_vm2, %v6601_v18, 0.0  ;;  %v6605_v23 = vpop.eup %5585 }
 0x36e   : > { %5593 = vpow2.f32 %v1237_v50  ;;  %v1184_v61 = vsub.f32 %v6454_v2, %v1144_v37  ;;  %1323 = vadd.xlane.f32.xlu0 %v1322_v11  ;;  %v1292_v63 = vsel %vm1060_vm2, %v6605_v23, 0.0 }
 0x370   : > { %v6608_v49 = vpop.eup %5587  ;;  %v1243_v3 = vmul.f32 1.442695, %v1184_v61  ;;  %v364_v61 = vld [vmem:[%s8111_s3 + $0x8] sm:$0xff] }
 0x371   : > { %v1141_v55 = vpop.xlane.xlu0 %1140  ;;  %v1319_v5 = vsel %vm1060_vm2, %v6608_v49, 0.0 }
 0x372   : > { %5595 = vpow2.f32 %v1243_v3  ;;  %1293 = vadd.xlane.f32.xlu0 %v1292_v63  ;;  %1320 = vadd.xlane.f32.xlu1 %v1319_v5 }
 0x374   : > { %v6614_v20 = vpop.eup %5589 }
 0x375   : > { %v1150_v33 = vpop.xlane.xlu0 %1149  ;;  %v1328_v2 = vsel %vm1060_vm2, %v6614_v20, 0.0  ;;  %v6618_v34 = vpop.eup %5591 }
 0x376   : > { %1329 = vadd.xlane.f32.xlu0 %v1328_v2  ;;  %v1295_v57 = vsel %vm1060_vm2, %v6618_v34, 0.0  ;;  %v1186_v53 = vsub.f32 %v6462_v6, %v1150_v33  ;;  %v1183_v33 = vsub.f32 %v6458_v4, %v1141_v55 }
 0x378   : > { %v6620_v60 = vpop.eup %5593  ;;  %v1247_v50 = vmul.f32 1.442695, %v1186_v53 }
 0x379   : > { %v1147_v39 = vpop.xlane.xlu0 %1146  ;;  %v1325_v62 = vsel %vm1060_vm2, %v6620_v60, 0.0 }
 0x37a   : > { %1296 = vadd.xlane.f32.xlu0 %v1295_v57  ;;  %1326 = vadd.xlane.f32.xlu1 %v1325_v62  ;;  %v1185_v62 = vsub.f32 %v6466_v8, %v1147_v39  ;;  %v498_v39 = vld [vmem:[%s8113_s5 + $0x8] sm:$0xff] }
 0x37c   : > { %v6626_v13 = vpop.eup %5595 }
 0x37d   : > { %v1156_v32 = vpop.xlane.xlu0 %1155  ;;  %v1334_v17 = vsel %vm1060_vm2, %v6626_v13, 0.0 }
 0x37e   : > { %1335 = vadd.xlane.f32.xlu0 %v1334_v17  ;;  %v1188_v37 = vsub.f32 %v6470_v10, %v1156_v32 }
 0x380   : > { %v1251_v3 = vmul.f32 1.442695, %v1188_v37 }
 0x381   : > { %v1153_v0 = vpop.xlane.xlu0 %1152 }
 0x382   : > { %v1187_v63 = vsub.f32 %v6474_v14, %v1153_v0  ;;  %v1241_v14 = vmul.f32 1.442695, %v1183_v33  ;;  %v1245_v0 = vmul.f32 1.442695, %v1185_v62 }
 0x384   : > { %v1249_v5 = vmul.f32 1.442695, %v1187_v63 }
 0x385   : > { %v1108_v35 = vpop.xlane.xlu0 %1107 }
 0x386   : > { %v1172_v59 = vsub.f32 %v6408_v36, %v1108_v35 }
 0x388   : > { %v1219_v11 = vmul.f32 1.442695, %v1172_v59  ;;  %v501_v59 = vld [vmem:[%s8113_s5 + $0x20] sm:$0xff] }
 0x38a   : > { %5597 = vpow2.f32 %v1219_v11  ;;  %v1255_v11 = vpop.xlane.xlu1 %1254 }
 0x38b   : > { %374 = vperm.xlu1 %5544, %v364_v61   ;;  %5599 = vpow2.f32 %v1247_v50  ;;  %v1258_v50 = vpop.xlane.xlu0 %1257 }
 0x38c   : > { %5601 = vpow2.f32 %v1251_v3 }
 0x38d   : > { %5603 = vpow2.f32 %v1249_v5 }
 0x38e   : > { %5605 = vpow2.f32 %v1241_v14  ;;  %v1261_v3 = vpop.xlane.xlu1 %1260 }
 0x38f   : > { %5607 = vpow2.f32 %v1245_v0  ;;  %v1264_v37 = vpop.xlane.xlu0 %1263 }
 0x390   : > { %5609 = vrcp.f32 %v1258_v50 }
 0x394   : > { %v6637_v6 = vpop.eup %5597 }
 0x395   : > { %v1298_v36 = vsel %vm1060_vm2, %v6637_v6, 0.0  ;;  %v6641_v10 = vpop.eup %5599 }
 0x396   : > { %1299 = vadd.xlane.f32.xlu0 %v1298_v36  ;;  %v1340_v2 = vsel %vm1060_vm2, %v6641_v10, 0.0  ;;  %v6646_v57 = vpop.eup %5601 }
 0x397   : > { %v1346_v32 = vsel %vm1060_vm2, %v6646_v57, 0.0  ;;  %v6651_v17 = vpop.eup %5603 }
 0x398   : > { %v1343_v4 = vsel %vm1060_vm2, %v6651_v17, 0.0  ;;  %v6655_v55 = vpop.eup %5605 }
 0x399   : > { %v1331_v53 = vsel %vm1060_vm2, %v6655_v55, 0.0  ;;  %v6659_v35 = vpop.eup %5607 }
 0x39a   : > { %1341 = vadd.xlane.f32.xlu0 %v1340_v2  ;;  %v1337_v8 = vsel %vm1060_vm2, %v6659_v35, 0.0  ;;  %v5610_v14 = vpop.eup %5609 }
 0x39e   : > { %1347 = vadd.xlane.f32.xlu0 %v1346_v32 }
 0x3a2   : > { %1344 = vadd.xlane.f32.xlu0 %v1343_v4 }
 0x3af   : > { %1332 = vadd.xlane.f32.xlu1 %v1331_v53 }
 0x3b3   : > { %1338 = vadd.xlane.f32.xlu1 %v1337_v8  ;;  %v1382_v8 = vmul.f32 %v5610_v14, %v6506_v15 }
 0x3b8   : > { %512 = vperm.xlu0 %5543, %v498_v39  }
 0x3c4   : > { %527 = vperm.xlu1 %5544, %v501_v59  }
 0x3cf   : > { %v1267_v5 = vpop.xlane.xlu1 %1266 }
 0x3d3   : > { %v1270_v61 = vpop.xlane.xlu0 %1269 }
 0x3d7   : > { %v1306_v63 = vpop.xlane.xlu0 %1305  ;;  %v1273_v33 = vpop.xlane.xlu1 %1272 }
 0x3d8   : > { %5611 = vrcp.f32 %v1306_v63 }
 0x3d9   : > { %5613 = vrcp.f32 %v1255_v11 }
 0x3db   : > { %v1303_v36 = vpop.xlane.xlu0 %1302 }
 0x3dc   : > { %5615 = vrcp.f32 %v1303_v36 }
 0x3dd   : > { %5617 = vrcp.f32 %v1264_v37 }
 0x3df   : > { %v1276_v2 = vpop.xlane.xlu0 %1275  ;;  %v6669_v62 = vpop.xlane.xlu1 %1278 }
 0x3e2   : > { %v5612_v0 = vpop.eup %5611 }
 0x3e3   : > { %v1312_v32 = vpop.xlane.xlu0 %1311  ;;  %v5614_v4 = vpop.eup %5613  ;;  %v1398_v50 = vmul.f32 %v5612_v0, %v6536_v21 }
 0x3e4   : > { %v1381_v63 = vmul.f32 %v5614_v4, %v6500_v40  ;;  %5619 = vrcp.f32 %v1312_v32 }
 0x3e5   : > { %5621 = vrcp.f32 %v1261_v3 }
 0x3e6   : > { %v5616_v53 = vpop.eup %5615  ;;  %v5289_v41 = vpack.c.bf16 %v1382_v8, %v1381_v63 }
 0x3e7   : > { %v6672_v39 = vpop.xlane.xlu1 %1284  ;;  %v1397_v59 = vmul.f32 %v5616_v53, %v6547_v16  ;;  %v1282_v36 = vpop.xlane.xlu0 %1281 }
 0x3e8   : > { %v5618_v14 = vpop.eup %5617 }
 0x3e9   : > { %v5286_v47 = vpack.c.bf16 %v1398_v50, %v1397_v59 }
 0x3eb   : > { %5288 = vmatprep.subr.msk.bf16.mxu1 %vm6678_vm3, %v5286_v47  ;;  %v1309_v15 = vpop.xlane.xlu1 %1308  ;;  %v1318_v21 = vpop.xlane.xlu0 %1317  ;;  %v1384_v47 = vmul.f32 %v5618_v14, %v6516_v56 }
 0x3ec   : > { %5291 = vmatpush3.bf16.xpose.msk.msra.mxu1 %vm6678_vm3, %v5289_v41  ;;  %5623 = vrcp.f32 %v1309_v15 }
 0x3ed   : > { %5625 = vrcp.f32 %v1270_v61 }
 0x3ee   : > { %5627 = vrcp.f32 %v1318_v21  ;;  %v5620_v37 = vpop.eup %5619 }
 0x3ef   : > { %v6687_v16 = vpop.xlane.xlu1 %1290  ;;  %5629 = vrcp.f32 %v1267_v5  ;;  %v5622_v32 = vpop.eup %5621  ;;  %v1400_v41 = vmul.f32 %v5620_v37, %v6562_v9 }
 0x3f0   : > { %v6689_v4 = vpop.xlane.xlu0 %1287  ;;  %v1383_v53 = vmul.f32 %v5622_v32, %v6510_v51 }
 0x3f2   : > { %v5295_v5 = vpack.c.bf16 %v1384_v47, %v1383_v53 }
 0x3f3   : > { %v1315_v40 = vpop.xlane.xlu1 %1314 }
 0x3f4   : > { %5631 = vrcp.f32 %v1315_v40 }
 0x3f5   : > { %5633 = vrcp.f32 %v1276_v2 }
 0x3f6   : > { %v5624_v0 = vpop.eup %5623 }
 0x3f7   : > { %v1399_v3 = vmul.f32 %v5624_v0, %v6571_v24  ;;  %v5626_v61 = vpop.eup %5625 }
 0x3f8   : > { %v5628_v50 = vpop.eup %5627  ;;  %v1386_v21 = vmul.f32 %v5626_v61, %v6532_v22 }
 0x3f9   : > { %v5292_v8 = vpack.c.bf16 %v1400_v41, %v1399_v3  ;;  %v5630_v63 = vpop.eup %5629  ;;  %v1402_v51 = vmul.f32 %v5628_v50, %v6577_v43 }
 0x3fa   : > { %v1385_v14 = vmul.f32 %v5630_v63, %v6526_v38 }
 0x3fb   : > { %v1324_v59 = vpop.xlane.xlu0 %1323  ;;  %5294 = vmatprep.subr.msk.bf16.mxu1 %vm6678_vm3, %v5292_v8 }
 0x3fc   : > { %5297 = vmatpush3.bf16.xpose.msk.msra.mxu1 %vm6678_vm3, %v5295_v5  ;;  %5635 = vrcp.f32 %v1324_v59  ;;  %v5301_v37 = vpack.c.bf16 %v1386_v21, %v1385_v14 }
 0x3fd   : > { %5637 = vrcp.f32 %v1273_v33 }
 0x3fe   : > { %v5632_v15 = vpop.eup %5631 }
 0x3ff   : > { %v1294_v56 = vpop.xlane.xlu0 %1293  ;;  %v1321_v24 = vpop.xlane.xlu1 %1320  ;;  %v1401_v9 = vmul.f32 %v5632_v15, %v6593_v7 }
 0x400   : > { %5639 = vrcp.f32 %v1321_v24  ;;  %v5634_v2 = vpop.eup %5633 }
 0x401   : > { %v5298_v40 = vpack.c.bf16 %v1402_v51, %v1401_v9  ;;  %5641 = vrcp.f32 %v1282_v36  ;;  %v1388_v38 = vmul.f32 %v5634_v2, %v6552_v58 }
 0x403   : > { %5300 = vmatprep.subr.msk.bf16.mxu1 %vm6678_vm3, %v5298_v40  ;;  %v1330_v32 = vpop.xlane.xlu0 %1329 }
 0x404   : > { %5303 = vmatpush3.bf16.xpose.msk.msra.mxu1 %vm6678_vm3, %v5301_v37  ;;  %5643 = vrcp.f32 %v1330_v32 }
 0x405   : > { %5645 = vrcp.f32 %v6669_v62 }
 0x406   : > { %v5636_v22 = vpop.eup %5635 }
 0x407   : > { %v1327_v7 = vpop.xlane.xlu1 %1326  ;;  %v5638_v43 = vpop.eup %5637  ;;  %v1404_v36 = vmul.f32 %v5636_v22, %v6601_v18 }
 0x408   : > { %5647 = vrcp.f32 %v1327_v7  ;;  %v1387_v53 = vmul.f32 %v5638_v43, %v6540_v12  ;;  %v1297_v63 = vpop.xlane.xlu0 %1296 }
 0x409   : > { %5649 = vrcp.f32 %v6689_v4 }
 0x40a   : > { %v5640_v33 = vpop.eup %5639  ;;  %v5307_v8 = vpack.c.bf16 %v1388_v38, %v1387_v53 }
 0x40b   : > { %v375_v0 = vpop.permute.xlu1 %374  ;;  %v1403_v41 = vmul.f32 %v5640_v33, %v6608_v49  ;;  %v5642_v61 = vpop.eup %5641 }
 0x40c   : > { %v473_v47 = vadd.f32 %v6313_v25, %v375_v0  ;;  %v475_v3 = vadd.f32 %v6315_v26, %v375_v0  ;;  %v1390_v58 = vmul.f32 %v5642_v61, %v6567_v46  ;;  %v1336_v15 = vpop.xlane.xlu0 %1335 }
 0x40d   : > { %v5304_v62 = vpack.c.bf16 %v1404_v36, %v1403_v41  ;;  %5651 = vrcp.f32 %v1336_v15 }
 0x40e   : > { %1615 = vxpose.xlu0.b32.start.end [1/1] (short) %v475_v3, 128  ;;  %1583 = vxpose.xlu1.b32.start.end [1/1] (short) %v473_v47, 128  ;;  %v5644_v59 = vpop.eup %5643  ;;  %5653 = vrcp.f32 %v6672_v39 }
 0x40f   : > { %5306 = vmatprep.subr.msk.bf16.mxu1 %vm6678_vm3, %v5304_v62  ;;  %v5646_v25 = vpop.eup %5645  ;;  %v1406_v12 = vmul.f32 %v5644_v59, %v6614_v20 }
 0x410   : > { %5309 = vmatpush3.bf16.xpose.msk.msra.mxu1 %vm6678_vm3, %v5307_v8  ;;  %v1389_v49 = vmul.f32 %v5646_v25, %v6555_v19 }
 0x412   : > { %v5648_v26 = vpop.eup %5647  ;;  %v5313_v50 = vpack.c.bf16 %v1390_v58, %v1389_v49 }
 0x413   : > { %v1405_v18 = vmul.f32 %v5648_v26, %v6620_v60  ;;  %v5650_v51 = vpop.eup %5649 }
 0x414   : > { %v1392_v39 = vmul.f32 %v5650_v51, %v6584_v54 }
 0x415   : > { %v5310_v5 = vpack.c.bf16 %v1406_v12, %v1405_v18 }
 0x417   : > { %5312 = vmatprep.subr.msk.bf16.mxu1 %vm6678_vm3, %v5310_v5  ;;  %v5652_v40 = vpop.eup %5651 }
 0x418   : > { %5315 = vmatpush3.bf16.xpose.msk.msra.mxu1 %vm6678_vm3, %v5313_v50  ;;  %v5654_v14 = vpop.eup %5653  ;;  %v1408_v7 = vmul.f32 %v5652_v40, %v6626_v13 }
 0x419   : > { %v1391_v2 = vmul.f32 %v5654_v14, %v6569_v1 }
 0x41b   : > { %v5319_v43 = vpack.c.bf16 %v1392_v39, %v1391_v2 }
 0x423   : > { %v1300_v24 = vpop.xlane.xlu0 %1299 }
 0x427   : > { %v1342_v9 = vpop.xlane.xlu0 %1341 }
 0x42b   : > { %v1348_v46 = vpop.xlane.xlu0 %1347 }
 0x42f   : > { %v1345_v19 = vpop.xlane.xlu0 %1344 }
 0x437   : > { %v513_v62 = vpop.permute.xlu0 %512 }
 0x43c   : > { %v1333_v20 = vpop.xlane.xlu1 %1332 }
 0x43d   : > { %5655 = vrcp.f32 %v1333_v20 }
 0x43e   : > { %5657 = vrcp.f32 %v1342_v9 }
 0x440   : > { %v1339_v60 = vpop.xlane.xlu1 %1338 }
 0x441   : > { %5659 = vrcp.f32 %v1339_v60 }
 0x442   : > { %5661 = vrcp.f32 %v1294_v56 }
 0x443   : > { %5663 = vrcp.f32 %v1345_v19 }
 0x444   : > { %5665 = vrcp.f32 %v6687_v16  ;;  %v528_v21 = vpop.permute.xlu1 %527 }
 0x445   : > { %5667 = vrcp.f32 %v1348_v46  ;;  %v657_v4 = vadd.f32 %v6340_v45, %v528_v21 }
 0x446   : > { %5669 = vrcp.f32 %v1300_v24 }
 0x447   : > { %v5656_v37 = vpop.eup %5655  ;;  %4863 = vmatprep.mubr.msk.f32.mxu1 %vm1060_vm2, %v657_v4  ;;  %5671 = vrcp.f32 %v1297_v63 }
 0x448   : > { %v1407_v32 = vmul.f32 %v5656_v37, %v6655_v55  ;;  %v5658_v56 = vpop.eup %5657 }
 0x449   : > { %v1410_v54 = vmul.f32 %v5658_v56, %v6641_v10 }
 0x44a   : > { %v5316_v16 = vpack.c.bf16 %v1408_v7, %v1407_v32 }
 0x44b   : > { %v5660_v22 = vpop.eup %5659 }
 0x44c   : > { %v5662_v33 = vpop.eup %5661  ;;  %5318 = vmatprep.subr.msk.bf16.mxu1 %vm6678_vm3, %v5316_v16  ;;  %v1409_v45 = vmul.f32 %v5660_v22, %v6659_v35 }
 0x44d   : > { %v5664_v0 = vpop.eup %5663  ;;  %5321 = vmatpush3.bf16.xpose.msk.msra.mxu1 %vm6678_vm3, %v5319_v43  ;;  %v1394_v38 = vmul.f32 %v5662_v33, %v6605_v23 }
 0x44e   : > { %v5666_v13 = vpop.eup %5665  ;;  %v5322_v55 = vpack.c.bf16 %v1410_v54, %v1409_v45  ;;  %v1411_v47 = vmul.f32 %v5664_v0, %v6651_v17 }
 0x44f   : > { %v5668_v1 = vpop.eup %5667  ;;  %v1393_v3 = vmul.f32 %v5666_v13, %v6587_v52  ;;  %v642_v52 = vadd.f32 %v6325_v31, %v513_v62 }
 0x450   : > { %5324 = vmatprep.subr.msk.bf16.mxu1 %vm6678_vm3, %v5322_v55  ;;  %v1412_v35 = vmul.f32 %v5668_v1, %v6646_v57  ;;  %v5670_v10 = vpop.eup %5669 }
 0x451   : > { %v5325_v41 = vpack.c.bf16 %v1394_v38, %v1393_v3  ;;  %v5672_v53 = vpop.eup %5671  ;;  %v1396_v23 = vmul.f32 %v5670_v10, %v6637_v6 }
 0x452   : > { %v5328_v36 = vpack.c.bf16 %v1412_v35, %v1411_v47  ;;  %v1395_v8 = vmul.f32 %v5672_v53, %v6618_v34 }
 0x454   : > { %v5331_v17 = vpack.c.bf16 %v1396_v23, %v1395_v8 }
 0x455   : > { %5327 = vmatpush3.bf16.xpose.msk.msra.mxu1 %vm6678_vm3, %v5325_v41 }
 0x456   : > { %5330 = vmatprep.subr.msk.bf16.mxu1 %vm6678_vm3, %v5328_v36 }
 0x45d   : > { %5333 = vmatpush3.bf16.xpose.msk.msra.mxu1 %vm6678_vm3, %v5331_v17 }
 0x45e   : > { %5132 = vmatprep.subr.mxu1 %v642_v52 }
 0x464   : > { %4864 = vmatmul.mubr.msk.f32.vlgmr.msra.gmra.mrb[0].mxu1 %vm1060_vm2, %v657_v4 }
 0x465   : > { %5133 = vmatpush3.msra.mxu1 %v642_v52 }
 0x48e   : > { %v1599_v57 = vpop.trf.xlu1  ;;  %v1631_v61 = vpop.trf.xlu0 }
 0x48f   : > { %5134 = vmatprep.mubr.msk.f32.mxu1 %vm387_vm0, %v1599_v57 }
 0x492   : > { %v1600_v59 = vpop.trf.xlu1  ;;  %v1632_v6 = vpop.trf.xlu0 }
 0x493   : > { %5135 = vmatmul.mubr.msk.f32.vlgmr.msra.gmra.mrb[2].mxu1 %vm387_vm0, %v1600_v59 }
 0x496   : > { %v1601_v25 = vpop.trf.xlu1  ;;  %v1633_v31 = vpop.trf.xlu0 }
 0x497   : > { %5137 = vmatprep.mubr.msk.f32.mxu1 %vm387_vm0, %v1601_v25 }
 0x49a   : > { %v1602_v34 = vpop.trf.xlu1  ;;  %v1634_v58 = vpop.trf.xlu0 }
 0x49b   : > { %5138 = vmatmul.mubr.msk.f32.gmra.mrb[4].mxu1 %vm387_vm0, %v1602_v34 }
 0x49e   : > { %v1603_v26 = vpop.trf.xlu1  ;;  %v1635_v49 = vpop.trf.xlu0 }
 0x49f   : > { %5140 = vmatprep.mubr.msk.f32.mxu1 %vm387_vm0, %v1603_v26 }
 0x4a2   : > { %v1604_v18 = vpop.trf.xlu1  ;;  %v1636_v50 = vpop.trf.xlu0 }
 0x4a3   : > { %5141 = vmatmul.mubr.msk.f32.gmra.mrb[6].mxu1 %vm387_vm0, %v1604_v18 }
 0x4a6   : > { %v1605_v12 = vpop.trf.xlu1  ;;  %v1637_v24 = vpop.trf.xlu0 }
 0x4a7   : > { %5143 = vmatprep.mubr.msk.f32.mxu1 %vm387_vm0, %v1605_v12 }
 0x4aa   : > { %v1606_v5 = vpop.trf.xlu1  ;;  %v1638_v46 = vpop.trf.xlu0 }
 0x4ab   : > { %5144 = vmatmul.mubr.msk.f32.gmra.mrb[8].mxu1 %vm387_vm0, %v1606_v5 }
 0x4ae   : > { %v1607_v63 = vpop.trf.xlu1  ;;  %v1639_v60 = vpop.trf.xlu0 }
 0x4af   : > { %5146 = vmatprep.mubr.msk.f32.mxu1 %vm387_vm0, %v1607_v63 }
 0x4b2   : > { %v1608_v15 = vpop.trf.xlu1  ;;  %v1640_v21 = vpop.trf.xlu0 }
 0x4b3   : > { %5147 = vmatmul.mubr.msk.f32.gmra.mrb[10].mxu1 %vm387_vm0, %v1608_v15 }
 0x4b6   : > { %v1609_v9 = vpop.trf.xlu1  ;;  %v1641_v14 = vpop.trf.xlu0 }
 0x4b7   : > { %5149 = vmatprep.mubr.msk.f32.mxu1 %vm387_vm0, %v1609_v9 }
 0x4ba   : > { %v1610_v20 = vpop.trf.xlu1  ;;  %v1642_v37 = vpop.trf.xlu0 }
 0x4bb   : > { %5150 = vmatmul.mubr.msk.f32.gmra.mrb[12].mxu1 %vm387_vm0, %v1610_v20 }
 0x4be   : > { %v1611_v19 = vpop.trf.xlu1  ;;  %v1643_v39 = vpop.trf.xlu0 }
 0x4bf   : > { %5152 = vmatprep.mubr.msk.f32.mxu1 %vm387_vm0, %v1611_v19 }
 0x4c2   : > { %v1612_v51 = vpop.trf.xlu1  ;;  %v1644_v32 = vpop.trf.xlu0 }
 0x4c3   : > { %5153 = vmatmul.mubr.msk.f32.gmra.mrb[14].mxu1 %vm387_vm0, %v1612_v51 }
 0x4c6   : > { %v1613_v40 = vpop.trf.xlu1  ;;  %v1645_v7 = vpop.trf.xlu0 }
 0x4c7   : > { %5155 = vmatprep.mubr.msk.f32.mxu1 %vm387_vm0, %v1613_v40 }
 0x4ca   : > { %v1614_v4 = vpop.trf.xlu1  ;;  %v1646_v56 = vpop.trf.xlu0 }
 0x4cb   : > { %5156 = vmatmul.mubr.msk.f32.gmra.mrb[16].mxu1 %vm387_vm0, %v1614_v4 }
 0x4cc   : > { %5158 = vmatprep.mubr.msk.f32.mxu1 %vm387_vm0, %v1631_v61 }
 0x4cf   : > { %5159 = vmatmul.mubr.msk.f32.gmra.mrb[18].mxu1 %vm387_vm0, %v1632_v6 }
 0x4d0   : > { %5161 = vmatprep.mubr.msk.f32.mxu1 %vm387_vm0, %v1633_v31 }
 0x4d3   : > { %5162 = vmatmul.mubr.msk.f32.gmra.mrb[20].mxu1 %vm387_vm0, %v1634_v58 }
 0x4d4   : > { %5164 = vmatprep.mubr.msk.f32.mxu1 %vm387_vm0, %v1635_v49 }
 0x4d7   : > { %5165 = vmatmul.mubr.msk.f32.gmra.mrb[22].mxu1 %vm387_vm0, %v1636_v50 }
 0x4d8   : > { %5167 = vmatprep.mubr.msk.f32.mxu1 %vm387_vm0, %v1637_v24 }
 0x4db   : > { %5168 = vmatmul.mubr.msk.f32.gmra.mrb[24].mxu1 %vm387_vm0, %v1638_v46 }
 0x4dc   : > { %5170 = vmatprep.mubr.msk.f32.mxu1 %vm387_vm0, %v1639_v60 }
 0x4df   : > { %5171 = vmatmul.mubr.msk.f32.gmra.mrb[26].mxu1 %vm387_vm0, %v1640_v21 }
 0x4e0   : > { %5173 = vmatprep.mubr.msk.f32.mxu1 %vm387_vm0, %v1641_v14 }
 0x4e3   : > { %5174 = vmatmul.mubr.msk.f32.gmra.mrb[28].mxu1 %vm387_vm0, %v1642_v37 }
 0x4e4   : > { %5176 = vmatprep.mubr.msk.f32.mxu1 %vm387_vm0, %v1643_v39 }
 0x4e7   : > { %5177 = vmatmul.mubr.msk.f32.gmra.mrb[30].mxu1 %vm387_vm0, %v1644_v32 }
 0x4e8   : > { %5179 = vmatprep.mubr.msk.f32.mxu1 %vm387_vm0, %v1645_v7 }
 0x4eb   : > { %5180 = vmatmul.mubr.msk.f32.gmra.mrb[32].mxu1 %vm387_vm0, %v1646_v56 }
 0x537   : > { %v6789_v2 = vpop.f32.mrb[0].mxu1 }
 0x538   : > { %v6791_v16 = vpop.f32.mrb[1].mxu1 }
 0x566   : > { %v6793_v22 = vpop.f32.mrb[2].mxu1 }
 0x567   : > { %v6795_v43 = vpop.f32.mrb[3].mxu1  ;;  %v1971_v33 = vsel %vm1060_vm2, %v6793_v22, -inf }
 0x568   : > { %1972 = vmax.xlane.f32.xlu1 %v1971_v33  ;;  %v1968_v45 = vsel %vm1060_vm2, %v6795_v43, -inf }
 0x56c   : > { %1969 = vmax.xlane.f32.xlu1 %v1968_v45 }
 0x56e   : > { %v6801_v54 = vpop.f32.mrb[4].mxu1 }
 0x56f   : > { %v6803_v0 = vpop.f32.mrb[5].mxu1  ;;  %v1977_v49 = vsel %vm1060_vm2, %v6801_v54, -inf }
 0x570   : > { %v1974_v61 = vsel %vm1060_vm2, %v6803_v0, -inf }
 0x576   : > { %v6805_v13 = vpop.f32.mrb[6].mxu1 }
 0x577   : > { %v6807_v55 = vpop.f32.mrb[7].mxu1  ;;  %v1983_v20 = vsel %vm1060_vm2, %v6805_v13, -inf }
 0x578   : > { %v1980_v34 = vsel %vm1060_vm2, %v6807_v55, -inf }
 0x57e   : > { %v6809_v1 = vpop.f32.mrb[8].mxu1 }
 0x57f   : > { %v6811_v38 = vpop.f32.mrb[9].mxu1  ;;  %v1989_v37 = vsel %vm1060_vm2, %v6809_v1, -inf }
 0x580   : > { %v1986_v18 = vsel %vm1060_vm2, %v6811_v38, -inf }
 0x586   : > { %v6813_v47 = vpop.f32.mrb[10].mxu1 }
 0x587   : > { %v6815_v3 = vpop.f32.mrb[11].mxu1  ;;  %v1995_v56 = vsel %vm1060_vm2, %v6813_v47, -inf }
 0x588   : > { %v1992_v9 = vsel %vm1060_vm2, %v6815_v3, -inf }
 0x58e   : > { %v6817_v35 = vpop.f32.mrb[12].mxu1 }
 0x58f   : > { %v6819_v41 = vpop.f32.mrb[13].mxu1 }
 0x590   : > { %v1998_v4 = vsel %vm1060_vm2, %v6819_v41, -inf }
 0x596   : > { %v6821_v10 = vpop.f32.mrb[14].mxu1 }
 0x597   : > { %v6823_v36 = vpop.f32.mrb[15].mxu1 }
 0x598   : > { %v2004_v7 = vsel %vm1060_vm2, %v6823_v36, -inf }
 0x59e   : > { %v6825_v53 = vpop.f32.mrb[16].mxu1 }
 0x59f   : > { %v6827_v23 = vpop.f32.mrb[17].mxu1 }
 0x5a2   : > { %v6829_v62 = vpop.f32.mrb[18].mxu1 }
 0x5a3   : > { %v6831_v8 = vpop.f32.mrb[19].mxu1  ;;  %v2019_v17 = vsel %vm1060_vm2, %v6829_v62, -inf }
 0x5a4   : > { %2020 = vmax.xlane.f32.xlu0 %v2019_v17  ;;  %v2016_v52 = vsel %vm1060_vm2, %v6831_v8, -inf  ;;  %v2010_v17 = vsel %vm1060_vm2, %v6827_v23, -inf }
 0x5a5   : > { %2017 = vmax.xlane.f32.xlu1 %v2016_v52  ;;  %v2001_v52 = vsel %vm1060_vm2, %v6817_v35, -inf }
 0x5a6   : > { %v6837_v57 = vpop.f32.mrb[20].mxu1 }
 0x5a7   : > { %v2025_v59 = vsel %vm1060_vm2, %v6837_v57, -inf  ;;  %v6843_v6 = vpop.f32.mrb[21].mxu1 }
 0x5a8   : > { %1975 = vmax.xlane.f32.xlu0 %v1974_v61  ;;  %v2022_v26 = vsel %vm1060_vm2, %v6843_v6, -inf }
 0x5a9   : > { %2026 = vmax.xlane.f32.xlu1 %v2025_v59 }
 0x5aa   : > { %v6845_v25 = vpop.f32.mrb[22].mxu1 }
 0x5ab   : > { %v6849_v31 = vpop.f32.mrb[23].mxu1  ;;  %v2031_v15 = vsel %vm1060_vm2, %v6845_v25, -inf }
 0x5ac   : > { %1981 = vmax.xlane.f32.xlu0 %v1980_v34  ;;  %v2028_v5 = vsel %vm1060_vm2, %v6849_v31, -inf }
 0x5ad   : > { %2023 = vmax.xlane.f32.xlu1 %v2022_v26  ;;  %v2007_v26 = vsel %vm1060_vm2, %v6821_v10, -inf }
 0x5ae   : > { %v6853_v58 = vpop.f32.mrb[24].mxu1 }
 0x5af   : > { %v6857_v12 = vpop.f32.mrb[25].mxu1  ;;  %v2037_v21 = vsel %vm1060_vm2, %v6853_v58, -inf }
 0x5b0   : > { %1987 = vmax.xlane.f32.xlu0 %v1986_v18  ;;  %v2034_v19 = vsel %vm1060_vm2, %v6857_v12, -inf }
 0x5b1   : > { %1978 = vmax.xlane.f32.xlu1 %v1977_v49  ;;  %v2013_v49 = vsel %vm1060_vm2, %v6825_v53, -inf }
 0x5b2   : > { %v6863_v50 = vpop.f32.mrb[26].mxu1 }
 0x5b3   : > { %v6865_v63 = vpop.f32.mrb[27].mxu1  ;;  %v2043_v32 = vsel %vm1060_vm2, %v6863_v50, -inf }
 0x5b4   : > { %2029 = vmax.xlane.f32.xlu0 %v2028_v5  ;;  %v2040_v39 = vsel %vm1060_vm2, %v6865_v63, -inf }
 0x5b5   : > { %2032 = vmax.xlane.f32.xlu1 %v2031_v15 }
 0x5b6   : > { %v6869_v24 = vpop.f32.mrb[28].mxu1 }
 0x5b7   : > { %v6873_v46 = vpop.f32.mrb[29].mxu1  ;;  %v2049_v45 = vsel %vm1060_vm2, %v6869_v24, -inf }
 0x5b8   : > { %1993 = vmax.xlane.f32.xlu0 %v1992_v9  ;;  %v2046_v33 = vsel %vm1060_vm2, %v6873_v46, -inf }
 0x5b9   : > { %1984 = vmax.xlane.f32.xlu1 %v1983_v20 }
 0x5ba   : > { %v6879_v60 = vpop.f32.mrb[30].mxu1 }
 0x5bb   : > { %v6881_v51 = vpop.f32.mrb[31].mxu1  ;;  %v2055_v59 = vsel %vm1060_vm2, %v6879_v60, -inf }
 0x5bc   : > { %2035 = vmax.xlane.f32.xlu0 %v2034_v19  ;;  %v2052_v61 = vsel %vm1060_vm2, %v6881_v51, -inf }
 0x5bd   : > { %2038 = vmax.xlane.f32.xlu1 %v2037_v21 }
 0x5be   : > { %v6885_v40 = vpop.f32.mrb[32].mxu1 }
 0x5bf   : > { %v6889_v14 = vpop.f32.mrb[33].mxu1  ;;  %v2061_v18 = vsel %vm1060_vm2, %v6885_v40, -inf }
 0x5c0   : > { %1999 = vmax.xlane.f32.xlu0 %v1998_v4  ;;  %v2058_v34 = vsel %vm1060_vm2, %v6889_v14, -inf }
 0x5c1   : > { %1990 = vmax.xlane.f32.xlu1 %v1989_v37 }
 0x5c4   : > { %2041 = vmax.xlane.f32.xlu0 %v2040_v39 }
 0x5c5   : > { %2044 = vmax.xlane.f32.xlu1 %v2043_v32 }
 0x5c8   : > { %2005 = vmax.xlane.f32.xlu0 %v2004_v7 }
 0x5c9   : > { %1996 = vmax.xlane.f32.xlu1 %v1995_v56 }
 0x5cc   : > { %2047 = vmax.xlane.f32.xlu0 %v2046_v33 }
 0x5cd   : > { %2050 = vmax.xlane.f32.xlu1 %v2049_v45 }
 0x5d0   : > { %2011 = vmax.xlane.f32.xlu0 %v2010_v17 }
 0x5d1   : > { %2002 = vmax.xlane.f32.xlu1 %v2001_v52 }
 0x5d4   : > { %2053 = vmax.xlane.f32.xlu0 %v2052_v61 }
 0x5d5   : > { %2056 = vmax.xlane.f32.xlu1 %v2055_v59 }
 0x5d8   : > { %2059 = vmax.xlane.f32.xlu0 %v2058_v34 }
 0x5d9   : > { %2008 = vmax.xlane.f32.xlu1 %v2007_v26 }
 0x5dd   : > { %2062 = vmax.xlane.f32.xlu1 %v2061_v18 }
 0x5e1   : > { %2014 = vmax.xlane.f32.xlu1 %v2013_v49 }
 0x5f5   : > { %v1973_v5 = vpop.xlane.xlu1 %1972 }
 0x5f6   : > { %v2065_v15 = vsub.f32 %v6793_v22, %v1973_v5 }
 0x5f8   : > { %v2098_v9 = vmul.f32 1.442695, %v2065_v15 }
 0x5f9   : > { %v1970_v20 = vpop.xlane.xlu1 %1969 }
 0x5fa   : > { %5673 = vpow2.f32 %v2098_v9  ;;  %v2064_v19 = vsub.f32 %v6795_v43, %v1970_v20 }
 0x5fc   : > { %v2096_v21 = vmul.f32 1.442695, %v2064_v19 }
 0x5fe   : > { %5675 = vpow2.f32 %v2096_v21 }
 0x604   : > { %v6923_v4 = vpop.eup %5673 }
 0x605   : > { %v2163_v37 = vsel %vm1060_vm2, %v6923_v4, 0.0 }
 0x606   : > { %2164 = vadd.xlane.f32.xlu1 %v2163_v37 }
 0x608   : > { %v6927_v39 = vpop.eup %5675 }
 0x609   : > { %v2160_v32 = vsel %vm1060_vm2, %v6927_v39, 0.0 }
 0x60a   : > { %2161 = vadd.xlane.f32.xlu0 %v2160_v32 }
 0x631   : > { %v6931_v22 = vpop.xlane.xlu0 %2020 }
 0x632   : > { %v6933_v7 = vpop.xlane.xlu1 %2017 }
 0x635   : > { %v1976_v56 = vpop.xlane.xlu0 %1975 }
 0x636   : > { %v2066_v43 = vsub.f32 %v6803_v0, %v1976_v56  ;;  %v6936_v33 = vpop.xlane.xlu1 %2026 }
 0x638   : > { %v2100_v45 = vmul.f32 1.442695, %v2066_v43 }
 0x639   : > { %v1982_v17 = vpop.xlane.xlu0 %1981 }
 0x63a   : > { %5677 = vpow2.f32 %v2100_v45  ;;  %v2068_v52 = vsub.f32 %v6807_v55, %v1982_v17  ;;  %v6939_v61 = vpop.xlane.xlu1 %2023 }
 0x63c   : > { %v2104_v59 = vmul.f32 1.442695, %v2068_v52 }
 0x63d   : > { %v1988_v34 = vpop.xlane.xlu0 %1987 }
 0x63e   : > { %5679 = vpow2.f32 %v2104_v59  ;;  %v2070_v26 = vsub.f32 %v6811_v38, %v1988_v34  ;;  %v1979_v18 = vpop.xlane.xlu1 %1978 }
 0x63f   : > { %v2067_v49 = vsub.f32 %v6801_v54, %v1979_v18 }
 0x640   : > { %v2108_v5 = vmul.f32 1.442695, %v2070_v26 }
 0x641   : > { %v2102_v15 = vmul.f32 1.442695, %v2067_v49  ;;  %v6943_v0 = vpop.xlane.xlu0 %2029 }
 0x642   : > { %5681 = vpow2.f32 %v2108_v5  ;;  %v6945_v9 = vpop.xlane.xlu1 %2032 }
 0x643   : > { %5683 = vpow2.f32 %v2102_v15 }
 0x644   : > { %v6947_v20 = vpop.eup %5677 }
 0x645   : > { %v1994_v55 = vpop.xlane.xlu0 %1993  ;;  %v2166_v19 = vsel %vm1060_vm2, %v6947_v20, 0.0 }
 0x646   : > { %v2072_v21 = vsub.f32 %v6815_v3, %v1994_v55  ;;  %2167 = vadd.xlane.f32.xlu0 %v2166_v19  ;;  %v1985_v38 = vpop.xlane.xlu1 %1984 }
 0x647   : > { %v2069_v54 = vsub.f32 %v6805_v13, %v1985_v38 }
 0x648   : > { %v6953_v37 = vpop.eup %5679  ;;  %v2112_v32 = vmul.f32 1.442695, %v2072_v21 }
 0x649   : > { %v2106_v56 = vmul.f32 1.442695, %v2069_v54  ;;  %v6955_v43 = vpop.xlane.xlu0 %2035  ;;  %v2172_v45 = vsel %vm1060_vm2, %v6953_v37, 0.0  ;;  %v2081_v54 = vsub.f32 %v6829_v62, %v6931_v22 }
 0x64a   : > { %5685 = vpow2.f32 %v2112_v32  ;;  %2173 = vadd.xlane.f32.xlu0 %v2172_v45  ;;  %v6959_v17 = vpop.xlane.xlu1 %2038 }
 0x64b   : > { %5687 = vpow2.f32 %v2106_v56  ;;  %v2130_v62 = vmul.f32 1.442695, %v2081_v54 }
 0x64c   : > { %v6961_v52 = vpop.eup %5681 }
 0x64d   : > { %v6963_v3 = vpop.eup %5683  ;;  %v2000_v59 = vpop.xlane.xlu0 %1999  ;;  %v2178_v13 = vsel %vm1060_vm2, %v6961_v52, 0.0 }
 0x64e   : > { %v2074_v34 = vsub.f32 %v6819_v41, %v2000_v59  ;;  %2179 = vadd.xlane.f32.xlu0 %v2178_v13  ;;  %v1991_v26 = vpop.xlane.xlu1 %1990  ;;  %v2169_v18 = vsel %vm1060_vm2, %v6963_v3, 0.0  ;;  %v2080_v41 = vsub.f32 %v6831_v8, %v6933_v7  ;;  %v2082_v7 = vsub.f32 %v6843_v6, %v6939_v61 }
 0x64f   : > { %v2071_v49 = vsub.f32 %v6809_v1, %v1991_v26  ;;  %2170 = vadd.xlane.f32.xlu1 %v2169_v18  ;;  %v2083_v6 = vsub.f32 %v6837_v57, %v6936_v33 }
 0x650   : > { %v2116_v5 = vmul.f32 1.442695, %v2074_v34  ;;  %v2128_v8 = vmul.f32 1.442695, %v2080_v41  ;;  %v2132_v18 = vmul.f32 1.442695, %v2082_v7 }
 0x651   : > { %v2110_v15 = vmul.f32 1.442695, %v2071_v49  ;;  %v2042_v55 = vpop.xlane.xlu0 %2041  ;;  %v2084_v49 = vsub.f32 %v6849_v31, %v6943_v0  ;;  %v2086_v0 = vsub.f32 %v6857_v12, %v6955_v43 }
 0x652   : > { %5689 = vpow2.f32 %v2116_v5  ;;  %v6971_v19 = vpop.xlane.xlu1 %2044 }
 0x653   : > { %5691 = vpow2.f32 %v2110_v15  ;;  %v2136_v31 = vmul.f32 1.442695, %v2084_v49 }
 0x654   : > { %v6973_v21 = vpop.eup %5685 }
 0x655   : > { %v6977_v38 = vpop.eup %5687  ;;  %v2006_v32 = vpop.xlane.xlu0 %2005  ;;  %v2184_v1 = vsel %vm1060_vm2, %v6973_v21, 0.0 }
 0x656   : > { %v2076_v56 = vsub.f32 %v6823_v36, %v2006_v32  ;;  %2185 = vadd.xlane.f32.xlu0 %v2184_v1  ;;  %v1997_v45 = vpop.xlane.xlu1 %1996  ;;  %v2175_v59 = vsel %vm1060_vm2, %v6977_v38, 0.0  ;;  %v2134_v32 = vmul.f32 1.442695, %v2083_v6 }
 0x657   : > { %v2073_v13 = vsub.f32 %v6813_v47, %v1997_v45  ;;  %2176 = vadd.xlane.f32.xlu1 %v2175_v59  ;;  %v2140_v45 = vmul.f32 1.442695, %v2086_v0  ;;  %v2088_v59 = vsub.f32 %v6865_v63, %v2042_v55 }
 0x658   : > { %v2120_v34 = vmul.f32 1.442695, %v2076_v56 }
 0x659   : > { %v2114_v22 = vmul.f32 1.442695, %v2073_v13  ;;  %v2048_v61 = vpop.xlane.xlu0 %2047  ;;  %v2085_v13 = vsub.f32 %v6845_v25, %v6945_v9  ;;  %v2144_v55 = vmul.f32 1.442695, %v2088_v59  ;;  %v2087_v9 = vsub.f32 %v6853_v58, %v6959_v17 }
 0x65a   : > { %5693 = vpow2.f32 %v2120_v34  ;;  %v6989_v26 = vpop.xlane.xlu1 %2050  ;;  %v2089_v17 = vsub.f32 %v6863_v50, %v6971_v19 }
 0x65b   : > { %5695 = vpow2.f32 %v2114_v22  ;;  %v2138_v25 = vmul.f32 1.442695, %v2085_v13  ;;  %v2142_v58 = vmul.f32 1.442695, %v2087_v9 }
 0x65c   : > { %v6991_v36 = vpop.eup %5689  ;;  %5697 = vpow2.f32 %v2128_v8  ;;  %v2146_v0 = vmul.f32 1.442695, %v2089_v17 }
 0x65d   : > { %v6995_v47 = vpop.eup %5691  ;;  %5699 = vpow2.f32 %v2130_v62  ;;  %v2190_v5 = vsel %vm1060_vm2, %v6991_v36, 0.0  ;;  %v7008_v33 = vpop.xlane.xlu0 %2011  ;;  %v2090_v62 = vsub.f32 %v6873_v46, %v2048_v61 }
 0x65e   : > { %2191 = vadd.xlane.f32.xlu0 %v2190_v5  ;;  %v2003_v15 = vpop.xlane.xlu1 %2002  ;;  %v2181_v41 = vsel %vm1060_vm2, %v6995_v47, 0.0  ;;  %5701 = vpow2.f32 %v2132_v18 }
 0x65f   : > { %v2075_v54 = vsub.f32 %v6817_v35, %v2003_v15  ;;  %2182 = vadd.xlane.f32.xlu1 %v2181_v41  ;;  %v2148_v5 = vmul.f32 1.442695, %v2090_v62 }
 0x661   : > { %v2118_v1 = vmul.f32 1.442695, %v2075_v54  ;;  %v2054_v22 = vpop.xlane.xlu0 %2053 }
 0x662   : > { %v7006_v57 = vpop.xlane.xlu1 %2056  ;;  %v2092_v46 = vsub.f32 %v6881_v51, %v2054_v22 }
 0x663   : > { %5703 = vpow2.f32 %v2118_v1 }
 0x664   : > { %v7010_v56 = vpop.eup %5693  ;;  %5705 = vpow2.f32 %v2136_v31  ;;  %v2152_v51 = vmul.f32 1.442695, %v2092_v46 }
 0x665   : > { %v7013_v35 = vpop.eup %5695  ;;  %5707 = vpow2.f32 %v2134_v32  ;;  %v2196_v12 = vsel %vm1060_vm2, %v7010_v56, 0.0  ;;  %v2091_v32 = vsub.f32 %v6869_v24, %v6989_v26 }
 0x666   : > { %v7019_v43 = vpop.eup %5697  ;;  %2197 = vadd.xlane.f32.xlu0 %v2196_v12  ;;  %v2009_v8 = vpop.xlane.xlu1 %2008  ;;  %v2187_v7 = vsel %vm1060_vm2, %v7013_v35, 0.0  ;;  %5709 = vpow2.f32 %v2140_v45  ;;  %v2093_v12 = vsub.f32 %v6879_v60, %v7006_v57 }
 0x667   : > { %v7023_v34 = vpop.eup %5699  ;;  %v2077_v63 = vsub.f32 %v6821_v10, %v2009_v8  ;;  %2188 = vadd.xlane.f32.xlu1 %v2187_v7  ;;  %v2208_v49 = vsel %vm1060_vm2, %v7019_v43, 0.0  ;;  %v2150_v13 = vmul.f32 1.442695, %v2091_v32 }
 0x668   : > { %v7031_v6 = vpop.eup %5701  ;;  %v2211_v10 = vsel %vm1060_vm2, %v7023_v34, 0.0 }
 0x669   : > { %v2122_v18 = vmul.f32 1.442695, %v2077_v63  ;;  %v2214_v15 = vsel %vm1060_vm2, %v7031_v6, 0.0  ;;  %v2078_v63 = vsub.f32 %v6827_v23, %v7008_v33 }
 0x66a   : > { %2209 = vadd.xlane.f32.xlu0 %v2208_v49  ;;  %v2063_v45 = vpop.xlane.xlu1 %2062 }
 0x66b   : > { %5711 = vpow2.f32 %v2122_v18  ;;  %2212 = vadd.xlane.f32.xlu1 %v2211_v10  ;;  %v2124_v22 = vmul.f32 1.442695, %v2078_v63 }
 0x66c   : > { %5713 = vpow2.f32 %v2144_v55  ;;  %v2154_v55 = vmul.f32 1.442695, %v2093_v12 }
 0x66d   : > { %v7036_v61 = vpop.eup %5703  ;;  %5715 = vpow2.f32 %v2138_v25 }
 0x66e   : > { %v7042_v41 = vpop.eup %5705  ;;  %2215 = vadd.xlane.f32.xlu0 %v2214_v15  ;;  %v2193_v54 = vsel %vm1060_vm2, %v7036_v61, 0.0  ;;  %5717 = vpow2.f32 %v2148_v5  ;;  %v2015_v62 = vpop.xlane.xlu1 %2014  ;;  %v2095_v5 = vsub.f32 %v6885_v40, %v2063_v45 }
 0x66f   : > { %v7046_v31 = vpop.eup %5707  ;;  %2194 = vadd.xlane.f32.xlu1 %v2193_v54  ;;  %5719 = vpow2.f32 %v2142_v58  ;;  %v2220_v50 = vsel %vm1060_vm2, %v7042_v41, 0.0  ;;  %v2079_v18 = vsub.f32 %v6825_v53, %v2015_v62  ;;  %v2060_v53 = vpop.xlane.xlu0 %2059  ;;  %v502_v62 = vld [vmem:[%s8113_s5 + $0x28] sm:$0xff] }
 0x670   : > { %v7052_v19 = vpop.eup %5709  ;;  %v2217_v1 = vsel %vm1060_vm2, %v7046_v31, 0.0  ;;  %5721 = vpow2.f32 %v2152_v51  ;;  %v2094_v54 = vsub.f32 %v6889_v14, %v2060_v53  ;;  %v2158_v51 = vmul.f32 1.442695, %v2095_v5 }
 0x671   : > { %5723 = vpow2.f32 %v2146_v0  ;;  %v2226_v24 = vsel %vm1060_vm2, %v7052_v19, 0.0  ;;  %v2126_v46 = vmul.f32 1.442695, %v2079_v18 }
 0x672   : > { %2221 = vadd.xlane.f32.xlu0 %v2220_v50  ;;  %5725 = vpow2.f32 %v2150_v13  ;;  %v2156_v32 = vmul.f32 1.442695, %v2094_v54 }
 0x673   : > { %2218 = vadd.xlane.f32.xlu1 %v2217_v1  ;;  %5727 = vpow2.f32 %v2154_v55  ;;  %v499_v55 = vld [vmem:[%s8113_s5 + $0x10] sm:$0xff] }
 0x674   : > { %5729 = vpow2.f32 %v2124_v22 }
 0x675   : > { %v7056_v59 = vpop.eup %5711  ;;  %5731 = vpow2.f32 %v2126_v46 }
 0x676   : > { %v7062_v26 = vpop.eup %5713  ;;  %2227 = vadd.xlane.f32.xlu0 %v2226_v24  ;;  %v2199_v8 = vsel %vm1060_vm2, %v7056_v59, 0.0  ;;  %5733 = vpow2.f32 %v2158_v51  ;;  %v365_v24 = vld [vmem:[%s8111_s3 + $0x10] sm:$0xff] }
 0x677   : > { %v7066_v7 = vpop.eup %5715  ;;  %2200 = vadd.xlane.f32.xlu1 %v2199_v8  ;;  %v2232_v60 = vsel %vm1060_vm2, %v7062_v26, 0.0  ;;  %5735 = vpow2.f32 %v2156_v32 }
 0x678   : > { %v7072_v57 = vpop.eup %5717  ;;  %v2223_v25 = vsel %vm1060_vm2, %v7066_v7, 0.0 }
 0x679   : > { %v7076_v9 = vpop.eup %5719  ;;  %v2238_v23 = vsel %vm1060_vm2, %v7072_v57, 0.0 }
 0x67a   : > { %2233 = vadd.xlane.f32.xlu0 %v2232_v60  ;;  %v7081_v33 = vpop.eup %5721  ;;  %v2229_v49 = vsel %vm1060_vm2, %v7076_v9, 0.0 }
 0x67b   : > { %2224 = vadd.xlane.f32.xlu1 %v2223_v25  ;;  %v7085_v10 = vpop.eup %5723  ;;  %v2244_v58 = vsel %vm1060_vm2, %v7081_v33, 0.0 }
 0x67c   : > { %v2235_v17 = vsel %vm1060_vm2, %v7085_v10, 0.0  ;;  %v7092_v15 = vpop.eup %5725 }
 0x67d   : > { %v2241_v0 = vsel %vm1060_vm2, %v7092_v15, 0.0  ;;  %v7097_v40 = vpop.eup %5727 }
 0x67e   : > { %2239 = vadd.xlane.f32.xlu0 %v2238_v23  ;;  %v2247_v50 = vsel %vm1060_vm2, %v7097_v40, 0.0  ;;  %v7101_v1 = vpop.eup %5729 }
 0x67f   : > { %2230 = vadd.xlane.f32.xlu1 %v2229_v49  ;;  %v2202_v14 = vsel %vm1060_vm2, %v7101_v1, 0.0  ;;  %v7105_v45 = vpop.eup %5731 }
 0x680   : > { %v2205_v13 = vsel %vm1060_vm2, %v7105_v45, 0.0  ;;  %v7109_v12 = vpop.eup %5733 }
 0x681   : > { %v2253_v8 = vsel %vm1060_vm2, %v7109_v12, 0.0  ;;  %v7116_v63 = vpop.eup %5735 }
 0x682   : > { %2245 = vadd.xlane.f32.xlu0 %v2244_v58  ;;  %v2250_v60 = vsel %vm1060_vm2, %v7116_v63, 0.0 }
 0x683   : > { %2236 = vadd.xlane.f32.xlu1 %v2235_v17 }
 0x687   : > { %2242 = vadd.xlane.f32.xlu1 %v2241_v0 }
 0x68b   : > { %2248 = vadd.xlane.f32.xlu1 %v2247_v50 }
 0x68f   : > { %2203 = vadd.xlane.f32.xlu1 %v2202_v14 }
 0x693   : > { %2206 = vadd.xlane.f32.xlu1 %v2205_v13  ;;  %v2165_v23 = vpop.xlane.xlu1 %2164 }
 0x697   : > { %2254 = vadd.xlane.f32.xlu1 %v2253_v8  ;;  %v2162_v25 = vpop.xlane.xlu0 %2161 }
 0x698   : > { %379 = vperm.xlu0 %5543, %v365_v24   ;;  %5737 = vrcp.f32 %v2162_v25 }
 0x699   : > { %5739 = vrcp.f32 %v2165_v23 }
 0x69b   : > { %2251 = vadd.xlane.f32.xlu1 %v2250_v60 }
 0x69c   : > { %517 = vperm.xlu0 %5543, %v499_v55  }
 0x6a2   : > { %v5738_v24 = vpop.eup %5737 }
 0x6a3   : > { %v5740_v55 = vpop.eup %5739  ;;  %v2288_v25 = vmul.f32 %v5738_v24, %v6927_v39 }
 0x6ac   : > { %532 = vperm.xlu1 %5544, %v502_v62  }
 0x6d3   : > { %v2168_v22 = vpop.xlane.xlu0 %2167 }
 0x6d7   : > { %v2174_v18 = vpop.xlane.xlu0 %2173 }
 0x6db   : > { %v2180_v49 = vpop.xlane.xlu0 %2179 }
 0x6dc   : > { %v2171_v5 = vpop.xlane.xlu1 %2170 }
 0x6e3   : > { %v7126_v46 = vpop.xlane.xlu0 %2185 }
 0x6e4   : > { %v2177_v58 = vpop.xlane.xlu1 %2176 }
 0x6eb   : > { %v7128_v53 = vpop.xlane.xlu0 %2191 }
 0x6ec   : > { %v2183_v17 = vpop.xlane.xlu1 %2182 }
 0x6f3   : > { %v7130_v54 = vpop.xlane.xlu0 %2197 }
 0x6f4   : > { %v7132_v51 = vpop.xlane.xlu1 %2188 }
 0x6f7   : > { %v2210_v0 = vpop.xlane.xlu0 %2209 }
 0x6f8   : > { %5741 = vrcp.f32 %v2210_v0  ;;  %v2213_v32 = vpop.xlane.xlu1 %2212 }
 0x6f9   : > { %5743 = vrcp.f32 %v2213_v32 }
 0x6fa   : > { %5745 = vrcp.f32 %v2171_v5  ;;  %v2289_v5 = vmul.f32 %v5740_v55, %v6923_v4 }
 0x6fb   : > { %v2216_v50 = vpop.xlane.xlu0 %2215 }
 0x6fc   : > { %v7134_v14 = vpop.xlane.xlu1 %2194  ;;  %5747 = vrcp.f32 %v2216_v50  ;;  %v5337_v30 = vpack.c.bf16 %v2289_v5, %v2288_v25 }
 0x6fd   : > { %5749 = vrcp.f32 %v2168_v22 }
 0x6ff   : > { %v2222_v13 = vpop.xlane.xlu0 %2221 }
 0x700   : > { %v2219_v8 = vpop.xlane.xlu1 %2218 }
 0x701   : > { %5751 = vrcp.f32 %v2219_v8 }
 0x702   : > { %v5742_v60 = vpop.eup %5741  ;;  %5753 = vrcp.f32 %v2177_v58 }
 0x703   : > { %v5744_v62 = vpop.eup %5743  ;;  %v2228_v23 = vpop.xlane.xlu0 %2227  ;;  %v2304_v0 = vmul.f32 %v5742_v60, %v7019_v43  ;;  %5755 = vrcp.f32 %v2222_v13 }
 0x704   : > { %v7138_v48 = vpop.xlane.xlu1 %2200  ;;  %v2305_v32 = vmul.f32 %v5744_v62, %v7023_v34  ;;  %v5746_v29 = vpop.eup %5745  ;;  %5757 = vrcp.f32 %v2174_v18 }
 0x705   : > { %v2291_v4 = vmul.f32 %v5746_v29, %v6963_v3 }
 0x706   : > { %v5334_v50 = vpack.c.bf16 %v2305_v32, %v2304_v0  ;;  %v5748_v24 = vpop.eup %5747 }
 0x707   : > { %v2234_v22 = vpop.xlane.xlu0 %2233  ;;  %v5750_v43 = vpop.eup %5749  ;;  %v2306_v13 = vmul.f32 %v5748_v24, %v7031_v6 }
 0x708   : > { %5336 = vmatprep.subr.msk.bf16.mxu0 %vm6678_vm3, %v5334_v50  ;;  %v2225_v39 = vpop.xlane.xlu1 %2224  ;;  %v2290_v18 = vmul.f32 %v5750_v43, %v6947_v20 }
 0x709   : > { %5759 = vrcp.f32 %v2225_v39  ;;  %5339 = vmatpush3.bf16.xpose.msk.msra.mxu0 %vm6678_vm3, %v5337_v30 }
 0x70a   : > { %5761 = vrcp.f32 %v2228_v23  ;;  %v5343_v62 = vpack.c.bf16 %v2291_v4, %v2290_v18 }
 0x70b   : > { %v5752_v34 = vpop.eup %5751  ;;  %v2240_v55 = vpop.xlane.xlu0 %2239 }
 0x70c   : > { %v2231_v58 = vpop.xlane.xlu1 %2230  ;;  %v2307_v8 = vmul.f32 %v5752_v34, %v7046_v31  ;;  %v5754_v25 = vpop.eup %5753 }
 0x70d   : > { %5763 = vrcp.f32 %v2231_v58  ;;  %v5756_v30 = vpop.eup %5755  ;;  %v2293_v20 = vmul.f32 %v5754_v25, %v6977_v38 }
 0x70e   : > { %5765 = vrcp.f32 %v2183_v17  ;;  %v5340_v60 = vpack.c.bf16 %v2307_v8, %v2306_v13  ;;  %v5758_v3 = vpop.eup %5757 }
 0x70f   : > { %5767 = vrcp.f32 %v2180_v49  ;;  %v2246_v31 = vpop.xlane.xlu0 %2245  ;;  %v2308_v49 = vmul.f32 %v5756_v30, %v7042_v41  ;;  %v2292_v32 = vmul.f32 %v5758_v3, %v6953_v37 }
 0x710   : > { %5769 = vrcp.f32 %v2234_v22  ;;  %5342 = vmatprep.subr.msk.bf16.mxu0 %vm6678_vm3, %v5340_v60  ;;  %v2237_v29 = vpop.xlane.xlu1 %2236 }
 0x711   : > { %5771 = vrcp.f32 %v2237_v29  ;;  %5345 = vmatpush3.bf16.xpose.msk.msra.mxu0 %vm6678_vm3, %v5343_v62  ;;  %v5349_v39 = vpack.c.bf16 %v2293_v20, %v2292_v32 }
 0x712   : > { %5773 = vrcp.f32 %v7126_v46 }
 0x713   : > { %v5760_v6 = vpop.eup %5759  ;;  %5775 = vrcp.f32 %v7132_v51 }
 0x714   : > { %v2243_v17 = vpop.xlane.xlu1 %2242  ;;  %v2309_v23 = vmul.f32 %v5760_v6, %v7066_v7  ;;  %v5762_v0 = vpop.eup %5761 }
 0x715   : > { %5777 = vrcp.f32 %v2243_v17  ;;  %v2310_v37 = vmul.f32 %v5762_v0, %v7052_v19 }
 0x716   : > { %v5346_v5 = vpack.c.bf16 %v2309_v23, %v2308_v49  ;;  %5779 = vrcp.f32 %v2240_v55 }
 0x717   : > { %v5764_v50 = vpop.eup %5763  ;;  %v380_v22 = vpop.permute.xlu0 %379  ;;  %5781 = vrcp.f32 %v7134_v14 }
 0x718   : > { %v5766_v24 = vpop.eup %5765  ;;  %v479_v38 = vadd.f32 %v6317_v27, %v380_v22  ;;  %v481_v43 = vadd.f32 %v6319_v28, %v380_v22  ;;  %5348 = vmatprep.subr.msk.bf16.mxu0 %vm6678_vm3, %v5346_v5  ;;  %v2249_v41 = vpop.xlane.xlu1 %2248  ;;  %v2311_v7 = vmul.f32 %v5764_v50, %v7076_v9 }
 0x719   : > { %v5768_v46 = vpop.eup %5767  ;;  %5351 = vmatpush3.bf16.xpose.msk.msra.mxu0 %vm6678_vm3, %v5349_v39  ;;  %v2295_v28 = vmul.f32 %v5766_v24, %v6995_v47  ;;  %5783 = vrcp.f32 %v2249_v41 }
 0x71a   : > { %v5770_v51 = vpop.eup %5769  ;;  %2490 = vxpose.xlu0.b32.start.end [1/1] (short) %v479_v38, 128  ;;  %2522 = vxpose.xlu1.b32.start.end [1/1] (short) %v481_v43, 128  ;;  %v5352_v34 = vpack.c.bf16 %v2311_v7, %v2310_v37  ;;  %v2294_v9 = vmul.f32 %v5768_v46, %v6961_v52  ;;  %5785 = vrcp.f32 %v7128_v53 }
 0x71b   : > { %v5772_v27 = vpop.eup %5771  ;;  %v2312_v58 = vmul.f32 %v5770_v51, %v7062_v26  ;;  %5787 = vrcp.f32 %v2246_v31  ;;  %v518_v38 = vpop.permute.xlu0 %517 }
 0x71c   : > { %5354 = vmatprep.subr.msk.bf16.mxu0 %vm6678_vm3, %v5352_v34  ;;  %v2204_v4 = vpop.xlane.xlu1 %2203  ;;  %v2313_v19 = vmul.f32 %v5772_v27, %v7085_v10  ;;  %v5774_v13 = vpop.eup %5773  ;;  %v5355_v8 = vpack.c.bf16 %v2295_v28, %v2294_v9  ;;  %5789 = vrcp.f32 %v7138_v48 }
 0x71d   : > { %v5776_v18 = vpop.eup %5775  ;;  %v2296_v62 = vmul.f32 %v5774_v13, %v6973_v21  ;;  %5791 = vrcp.f32 %v7130_v54 }
 0x71e   : > { %v5358_v47 = vpack.c.bf16 %v2313_v19, %v2312_v58  ;;  %v2297_v10 = vmul.f32 %v5776_v18, %v7013_v35 }
 0x71f   : > { %v5778_v60 = vpop.eup %5777 }
 0x720   : > { %v2207_v55 = vpop.xlane.xlu1 %2206  ;;  %v5780_v52 = vpop.eup %5779  ;;  %v2315_v14 = vmul.f32 %v5778_v60, %v7092_v15  ;;  %v5361_v25 = vpack.c.bf16 %v2297_v10, %v2296_v62 }
 0x721   : > { %5357 = vmatpush3.bf16.xpose.msk.msra.mxu0 %vm6678_vm3, %v5355_v8  ;;  %v2314_v53 = vmul.f32 %v5780_v52, %v7072_v57  ;;  %v5782_v29 = vpop.eup %5781 }
 0x722   : > { %5360 = vmatprep.subr.msk.bf16.mxu0 %vm6678_vm3, %v5358_v47  ;;  %v2299_v48 = vmul.f32 %v5782_v29, %v7036_v61 }
 0x723   : > { %v5364_v3 = vpack.c.bf16 %v2315_v14, %v2314_v53  ;;  %v5784_v6 = vpop.eup %5783 }
 0x724   : > { %v2255_v26 = vpop.xlane.xlu1 %2254  ;;  %v5786_v35 = vpop.eup %5785  ;;  %v2317_v15 = vmul.f32 %v5784_v6, %v7097_v40 }
 0x725   : > { %5793 = vrcp.f32 %v2255_v26  ;;  %v5788_v21 = vpop.eup %5787  ;;  %v2298_v54 = vmul.f32 %v5786_v35, %v6991_v36 }
 0x726   : > { %v2316_v31 = vmul.f32 %v5788_v21, %v7081_v33  ;;  %v5790_v49 = vpop.eup %5789 }
 0x727   : > { %v5367_v17 = vpack.c.bf16 %v2299_v48, %v2298_v54  ;;  %v5792_v0 = vpop.eup %5791 }
 0x728   : > { %v2252_v30 = vpop.xlane.xlu1 %2251  ;;  %v5370_v23 = vpack.c.bf16 %v2317_v15, %v2316_v31  ;;  %v2300_v33 = vmul.f32 %v5792_v0, %v7010_v56  ;;  %v647_v56 = vadd.f32 %v6335_v42, %v518_v38 }
 0x729   : > { %5795 = vrcp.f32 %v2252_v30  ;;  %5363 = vmatpush3.bf16.xpose.msk.msra.mxu0 %vm6678_vm3, %v5361_v25 }
 0x72a   : > { %5366 = vmatprep.subr.msk.bf16.mxu0 %vm6678_vm3, %v5364_v3  ;;  %5797 = vrcp.f32 %v2207_v55 }
 0x72b   : > { %5799 = vrcp.f32 %v2204_v4 }
 0x72c   : > { %v533_v57 = vpop.permute.xlu1 %532 }
 0x72d   : > { %v662_v20 = vadd.f32 %v6338_v44, %v533_v57  ;;  %v2301_v44 = vmul.f32 %v5790_v49, %v7056_v59 }
 0x72f   : > { %4930 = vmatprep.mubr.msk.f32.mxu0 %vm1060_vm2, %v662_v20  ;;  %v5794_v61 = vpop.eup %5793  ;;  %v5373_v5 = vpack.c.bf16 %v2301_v44, %v2300_v33 }
 0x730   : > { %v2319_v32 = vmul.f32 %v5794_v61, %v7109_v12 }
 0x731   : > { %5369 = vmatpush3.bf16.xpose.msk.msra.mxu0 %vm6678_vm3, %v5367_v17 }
 0x732   : > { %5372 = vmatprep.subr.msk.bf16.mxu0 %vm6678_vm3, %v5370_v23 }
 0x733   : > { %v5796_v36 = vpop.eup %5795 }
 0x734   : > { %v2318_v40 = vmul.f32 %v5796_v36, %v7116_v63  ;;  %v5798_v50 = vpop.eup %5797 }
 0x735   : > { %v5800_v39 = vpop.eup %5799  ;;  %v2303_v24 = vmul.f32 %v5798_v50, %v7105_v45 }
 0x736   : > { %v5376_v22 = vpack.c.bf16 %v2319_v32, %v2318_v40  ;;  %v2302_v59 = vmul.f32 %v5800_v39, %v7101_v1 }
 0x738   : > { %v5379_v63 = vpack.c.bf16 %v2303_v24, %v2302_v59 }
 0x739   : > { %5375 = vmatpush3.bf16.xpose.msk.msra.mxu0 %vm6678_vm3, %v5373_v5 }
 0x73a   : > { %5378 = vmatprep.subr.msk.bf16.mxu0 %vm6678_vm3, %v5376_v22 }
 0x741   : > { %5381 = vmatpush3.bf16.xpose.msk.msra.mxu0 %vm6678_vm3, %v5379_v63 }
 0x742   : > { %5182 = vmatprep.subr.mxu0 %v647_v56 }
 0x748   : > { %4931 = vmatmul.mubr.msk.f32.vlgmr.msra.gmra.mrb[48].mxu0 %vm1060_vm2, %v662_v20 }
 0x749   : > { %5183 = vmatpush3.msra.mxu0 %v647_v56 }
 0x79a   : > { %v2506_v12 = vpop.trf.xlu0  ;;  %v2538_v43 = vpop.trf.xlu1 }
 0x79b   : > { %5184 = vmatprep.mubr.msk.f32.mxu0 %vm387_vm0, %v2506_v12 }
 0x79e   : > { %v2507_v41 = vpop.trf.xlu0  ;;  %v2539_v45 = vpop.trf.xlu1 }
 0x79f   : > { %5185 = vmatmul.mubr.msk.f32.vlgmr.msra.gmra.mrb[50].mxu0 %vm387_vm0, %v2507_v41 }
 0x7a2   : > { %v2508_v37 = vpop.trf.xlu0  ;;  %v2540_v42 = vpop.trf.xlu1 }
 0x7a3   : > { %5187 = vmatprep.mubr.msk.f32.mxu0 %vm387_vm0, %v2508_v37 }
 0x7a6   : > { %v2509_v1 = vpop.trf.xlu0  ;;  %v2541_v46 = vpop.trf.xlu1 }
 0x7a7   : > { %5188 = vmatmul.mubr.msk.f32.gmra.mrb[52].mxu0 %vm387_vm0, %v2509_v1 }
 0x7aa   : > { %v2510_v7 = vpop.trf.xlu0  ;;  %v2542_v27 = vpop.trf.xlu1 }
 0x7ab   : > { %5190 = vmatprep.mubr.msk.f32.mxu0 %vm387_vm0, %v2510_v7 }
 0x7ae   : > { %v2511_v51 = vpop.trf.xlu0  ;;  %v2543_v4 = vpop.trf.xlu1 }
 0x7af   : > { %5191 = vmatmul.mubr.msk.f32.gmra.mrb[54].mxu0 %vm387_vm0, %v2511_v51 }
 0x7b2   : > { %v2512_v34 = vpop.trf.xlu0  ;;  %v2544_v58 = vpop.trf.xlu1 }
 0x7b3   : > { %5193 = vmatprep.mubr.msk.f32.mxu0 %vm387_vm0, %v2512_v34 }
 0x7b6   : > { %v2513_v28 = vpop.trf.xlu0  ;;  %v2545_v8 = vpop.trf.xlu1 }
 0x7b7   : > { %5194 = vmatmul.mubr.msk.f32.gmra.mrb[56].mxu0 %vm387_vm0, %v2513_v28 }
 0x7ba   : > { %v2514_v19 = vpop.trf.xlu0  ;;  %v2546_v47 = vpop.trf.xlu1 }
 0x7bb   : > { %5196 = vmatprep.mubr.msk.f32.mxu0 %vm387_vm0, %v2514_v19 }
 0x7be   : > { %v2515_v9 = vpop.trf.xlu0  ;;  %v2547_v52 = vpop.trf.xlu1 }
 0x7bf   : > { %5197 = vmatmul.mubr.msk.f32.gmra.mrb[58].mxu0 %vm387_vm0, %v2515_v9 }
 0x7c2   : > { %v2516_v13 = vpop.trf.xlu0  ;;  %v2548_v14 = vpop.trf.xlu1 }
 0x7c3   : > { %5199 = vmatprep.mubr.msk.f32.mxu0 %vm387_vm0, %v2516_v13 }
 0x7c6   : > { %v2517_v18 = vpop.trf.xlu0  ;;  %v2549_v62 = vpop.trf.xlu1 }
 0x7c7   : > { %5200 = vmatmul.mubr.msk.f32.gmra.mrb[60].mxu0 %vm387_vm0, %v2517_v18 }
 0x7ca   : > { %v2518_v55 = vpop.trf.xlu0  ;;  %v2550_v53 = vpop.trf.xlu1 }
 0x7cb   : > { %5202 = vmatprep.mubr.msk.f32.mxu0 %vm387_vm0, %v2518_v55 }
 0x7ce   : > { %v2519_v60 = vpop.trf.xlu0  ;;  %v2551_v25 = vpop.trf.xlu1 }
 0x7cf   : > { %5203 = vmatmul.mubr.msk.f32.gmra.mrb[62].mxu0 %vm387_vm0, %v2519_v60 }
 0x7d2   : > { %v2520_v10 = vpop.trf.xlu0  ;;  %v2552_v29 = vpop.trf.xlu1 }
 0x7d3   : > { %5205 = vmatprep.mubr.msk.f32.mxu0 %vm387_vm0, %v2520_v10 }
 0x7d6   : > { %v2521_v26 = vpop.trf.xlu0  ;;  %v2553_v30 = vpop.trf.xlu1 }
 0x7d7   : > { %5206 = vmatmul.mubr.msk.f32.gmra.mrb[64].mxu0 %vm387_vm0, %v2521_v26 }
 0x7d8   : > { %5208 = vmatprep.mubr.msk.f32.mxu0 %vm387_vm0, %v2538_v43 }
 0x7db   : > { %5209 = vmatmul.mubr.msk.f32.gmra.mrb[66].mxu0 %vm387_vm0, %v2539_v45 }
 0x7dc   : > { %5211 = vmatprep.mubr.msk.f32.mxu0 %vm387_vm0, %v2540_v42 }
 0x7df   : > { %5212 = vmatmul.mubr.msk.f32.gmra.mrb[68].mxu0 %vm387_vm0, %v2541_v46 }
 0x7e0   : > { %5214 = vmatprep.mubr.msk.f32.mxu0 %vm387_vm0, %v2542_v27 }
 0x7e3   : > { %5215 = vmatmul.mubr.msk.f32.gmra.mrb[70].mxu0 %vm387_vm0, %v2543_v4 }
 0x7e4   : > { %5217 = vmatprep.mubr.msk.f32.mxu0 %vm387_vm0, %v2544_v58 }
 0x7e7   : > { %5218 = vmatmul.mubr.msk.f32.gmra.mrb[72].mxu0 %vm387_vm0, %v2545_v8 }
 0x7e8   : > { %5220 = vmatprep.mubr.msk.f32.mxu0 %vm387_vm0, %v2546_v47 }
 0x7eb   : > { %5221 = vmatmul.mubr.msk.f32.gmra.mrb[74].mxu0 %vm387_vm0, %v2547_v52 }
 0x7ec   : > { %5223 = vmatprep.mubr.msk.f32.mxu0 %vm387_vm0, %v2548_v14 }
 0x7ef   : > { %5224 = vmatmul.mubr.msk.f32.gmra.mrb[76].mxu0 %vm387_vm0, %v2549_v62 }
 0x7f0   : > { %5226 = vmatprep.mubr.msk.f32.mxu0 %vm387_vm0, %v2550_v53 }
 0x7f3   : > { %5227 = vmatmul.mubr.msk.f32.gmra.mrb[78].mxu0 %vm387_vm0, %v2551_v25 }
 0x7f4   : > { %5229 = vmatprep.mubr.msk.f32.mxu0 %vm387_vm0, %v2552_v29 }
 0x7f7   : > { %5230 = vmatmul.mubr.msk.f32.gmra.mrb[80].mxu0 %vm387_vm0, %v2553_v30 }
 0x81b   : > { %v7246_v3 = vpop.f32.mrb[48].mxu0 }
 0x81c   : > { %v5480_v6 = vpack.c.bf16 %v7246_v3, %v6789_v2  ;;  %v7250_v35 = vpop.f32.mrb[49].mxu0 }
 0x81d   : > { %v5478_v21 = vpack.c.bf16 %v7250_v35, %v6791_v16  ;;  %v4304_v16 = vld [vmem:[%s8114_s6] sm:$0xff] }
 0x872   : > { %v7254_v48 = vpop.f32.mrb[50].mxu0 }
 0x873   : > { %v7256_v57 = vpop.f32.mrb[51].mxu0  ;;  %v2878_v15 = vsel %vm1060_vm2, %v7254_v48, -inf }
 0x874   : > { %2879 = vmax.xlane.f32.xlu0 %v2878_v15  ;;  %v2875_v54 = vsel %vm1060_vm2, %v7256_v57, -inf }
 0x878   : > { %2876 = vmax.xlane.f32.xlu0 %v2875_v54 }
 0x87a   : > { %v7262_v20 = vpop.f32.mrb[52].mxu0 }
 0x87b   : > { %v7264_v31 = vpop.f32.mrb[53].mxu0  ;;  %v2884_v51 = vsel %vm1060_vm2, %v7262_v20, -inf }
 0x87c   : > { %v2881_v17 = vsel %vm1060_vm2, %v7264_v31, -inf }
 0x87d   : > { %2882 = vmax.xlane.f32.xlu1 %v2881_v17 }
 0x882   : > { %v7268_v49 = vpop.f32.mrb[54].mxu0 }
 0x883   : > { %v7270_v23 = vpop.f32.mrb[55].mxu0  ;;  %v2890_v13 = vsel %vm1060_vm2, %v7268_v49, -inf }
 0x884   : > { %v2887_v12 = vsel %vm1060_vm2, %v7270_v23, -inf }
 0x88a   : > { %v7272_v0 = vpop.f32.mrb[56].mxu0 }
 0x88b   : > { %v7274_v61 = vpop.f32.mrb[57].mxu0  ;;  %v2896_v26 = vsel %vm1060_vm2, %v7272_v0, -inf }
 0x88c   : > { %v2893_v45 = vsel %vm1060_vm2, %v7274_v61, -inf }
 0x892   : > { %v7276_v36 = vpop.f32.mrb[58].mxu0 }
 0x893   : > { %v7278_v44 = vpop.f32.mrb[59].mxu0  ;;  %v2902_v25 = vsel %vm1060_vm2, %v7276_v36, -inf }
 0x894   : > { %v2899_v27 = vsel %vm1060_vm2, %v7278_v44, -inf }
 0x89a   : > { %v7280_v40 = vpop.f32.mrb[60].mxu0 }
 0x89b   : > { %v7282_v33 = vpop.f32.mrb[61].mxu0  ;;  %v2908_v54 = vsel %vm1060_vm2, %v7280_v40, -inf }
 0x89c   : > { %v2905_v18 = vsel %vm1060_vm2, %v7282_v33, -inf }
 0x8a2   : > { %v7284_v32 = vpop.f32.mrb[62].mxu0 }
 0x8a3   : > { %v7286_v5 = vpop.f32.mrb[63].mxu0 }
 0x8a4   : > { %v2911_v14 = vsel %vm1060_vm2, %v7286_v5, -inf }
 0x8aa   : > { %v7288_v50 = vpop.f32.mrb[64].mxu0 }
 0x8ab   : > { %v7290_v22 = vpop.f32.mrb[65].mxu0 }
 0x8ac   : > { %v2917_v30 = vsel %vm1060_vm2, %v7290_v22, -inf }
 0x8ae   : > { %v7292_v39 = vpop.f32.mrb[66].mxu0 }
 0x8af   : > { %v7294_v24 = vpop.f32.mrb[67].mxu0  ;;  %v2926_v38 = vsel %vm1060_vm2, %v7292_v39, -inf }
 0x8b0   : > { %2927 = vmax.xlane.f32.xlu1 %v2926_v38  ;;  %v2923_v59 = vsel %vm1060_vm2, %v7294_v24, -inf }
 0x8b1   : > { %2924 = vmax.xlane.f32.xlu0 %v2923_v59  ;;  %v2914_v59 = vsel %vm1060_vm2, %v7284_v32, -inf }
 0x8b2   : > { %v7300_v63 = vpop.f32.mrb[68].mxu0 }
 0x8b3   : > { %v7302_v56 = vpop.f32.mrb[69].mxu0  ;;  %v2932_v43 = vsel %vm1060_vm2, %v7300_v63, -inf }
 0x8b4   : > { %2888 = vmax.xlane.f32.xlu1 %v2887_v12  ;;  %v2929_v1 = vsel %vm1060_vm2, %v7302_v56, -inf }
 0x8b5   : > { %2933 = vmax.xlane.f32.xlu0 %v2932_v43  ;;  %v2920_v43 = vsel %vm1060_vm2, %v7288_v50, -inf }
 0x8b6   : > { %v7308_v41 = vpop.f32.mrb[70].mxu0 }
 0x8b7   : > { %v7312_v37 = vpop.f32.mrb[71].mxu0  ;;  %v2938_v4 = vsel %vm1060_vm2, %v7308_v41, -inf }
 0x8b8   : > { %2894 = vmax.xlane.f32.xlu1 %v2893_v45  ;;  %v2935_v42 = vsel %vm1060_vm2, %v7312_v37, -inf }
 0x8b9   : > { %2930 = vmax.xlane.f32.xlu0 %v2929_v1 }
 0x8ba   : > { %v7318_v7 = vpop.f32.mrb[72].mxu0 }
 0x8bb   : > { %v7320_v46 = vpop.f32.mrb[73].mxu0  ;;  %v2944_v47 = vsel %vm1060_vm2, %v7318_v7, -inf }
 0x8bc   : > { %2936 = vmax.xlane.f32.xlu1 %v2935_v42  ;;  %v2941_v19 = vsel %vm1060_vm2, %v7320_v46, -inf }
 0x8bd   : > { %2885 = vmax.xlane.f32.xlu0 %v2884_v51 }
 0x8be   : > { %v7324_v34 = vpop.f32.mrb[74].mxu0 }
 0x8bf   : > { %v7328_v28 = vpop.f32.mrb[75].mxu0  ;;  %v2950_v62 = vsel %vm1060_vm2, %v7324_v34, -inf }
 0x8c0   : > { %2900 = vmax.xlane.f32.xlu1 %v2899_v27  ;;  %v2947_v60 = vsel %vm1060_vm2, %v7328_v28, -inf }
 0x8c1   : > { %2939 = vmax.xlane.f32.xlu0 %v2938_v4 }
 0x8c2   : > { %v7334_v9 = vpop.f32.mrb[76].mxu0 }
 0x8c3   : > { %v7336_v58 = vpop.f32.mrb[77].mxu0  ;;  %v2956_v29 = vsel %vm1060_vm2, %v7334_v9, -inf }
 0x8c4   : > { %2942 = vmax.xlane.f32.xlu1 %v2941_v19  ;;  %v2953_v53 = vsel %vm1060_vm2, %v7336_v58, -inf }
 0x8c5   : > { %2891 = vmax.xlane.f32.xlu0 %v2890_v13 }
 0x8c6   : > { %v7340_v8 = vpop.f32.mrb[78].mxu0 }
 0x8c7   : > { %v7344_v55 = vpop.f32.mrb[79].mxu0  ;;  %v2962_v38 = vsel %vm1060_vm2, %v7340_v8, -inf }
 0x8c8   : > { %2906 = vmax.xlane.f32.xlu1 %v2905_v18  ;;  %v2959_v15 = vsel %vm1060_vm2, %v7344_v55, -inf }
 0x8c9   : > { %2945 = vmax.xlane.f32.xlu0 %v2944_v47 }
 0x8ca   : > { %v7350_v52 = vpop.f32.mrb[80].mxu0 }
 0x8cb   : > { %v7352_v10 = vpop.f32.mrb[81].mxu0  ;;  %v2968_v12 = vsel %vm1060_vm2, %v7350_v52, -inf }
 0x8cc   : > { %2948 = vmax.xlane.f32.xlu1 %v2947_v60  ;;  %v2965_v17 = vsel %vm1060_vm2, %v7352_v10, -inf }
 0x8cd   : > { %2897 = vmax.xlane.f32.xlu0 %v2896_v26 }
 0x8d0   : > { %2912 = vmax.xlane.f32.xlu1 %v2911_v14 }
 0x8d1   : > { %2951 = vmax.xlane.f32.xlu0 %v2950_v62 }
 0x8d4   : > { %2954 = vmax.xlane.f32.xlu1 %v2953_v53 }
 0x8d5   : > { %2903 = vmax.xlane.f32.xlu0 %v2902_v25 }
 0x8d8   : > { %2918 = vmax.xlane.f32.xlu1 %v2917_v30 }
 0x8d9   : > { %2957 = vmax.xlane.f32.xlu0 %v2956_v29 }
 0x8dc   : > { %2960 = vmax.xlane.f32.xlu1 %v2959_v15 }
 0x8dd   : > { %2909 = vmax.xlane.f32.xlu0 %v2908_v54 }
 0x8e0   : > { %2966 = vmax.xlane.f32.xlu1 %v2965_v17 }
 0x8e1   : > { %2963 = vmax.xlane.f32.xlu0 %v2962_v38 }
 0x8e5   : > { %2915 = vmax.xlane.f32.xlu0 %v2914_v59 }
 0x8e9   : > { %2969 = vmax.xlane.f32.xlu0 %v2968_v12 }
 0x8ed   : > { %2921 = vmax.xlane.f32.xlu0 %v2920_v43 }
 0x901   : > { %v2880_v45 = vpop.xlane.xlu0 %2879 }
 0x902   : > { %v2972_v1 = vsub.f32 %v7254_v48, %v2880_v45 }
 0x904   : > { %v3005_v42 = vmul.f32 1.442695, %v2972_v1 }
 0x905   : > { %v2877_v51 = vpop.xlane.xlu0 %2876 }
 0x906   : > { %5801 = vpow2.f32 %v3005_v42  ;;  %v2971_v27 = vsub.f32 %v7256_v57, %v2877_v51 }
 0x908   : > { %v3003_v4 = vmul.f32 1.442695, %v2971_v27 }
 0x90a   : > { %5803 = vpow2.f32 %v3003_v4  ;;  %v2883_v19 = vpop.xlane.xlu1 %2882 }
 0x90b   : > { %v2973_v13 = vsub.f32 %v7264_v31, %v2883_v19 }
 0x90d   : > { %v3007_v18 = vmul.f32 1.442695, %v2973_v13 }
 0x90f   : > { %5805 = vpow2.f32 %v3007_v18 }
 0x910   : > { %v7385_v47 = vpop.eup %5801 }
 0x911   : > { %v3070_v60 = vsel %vm1060_vm2, %v7385_v47, 0.0 }
 0x912   : > { %3071 = vadd.xlane.f32.xlu0 %v3070_v60 }
 0x914   : > { %v7389_v26 = vpop.eup %5803 }
 0x915   : > { %v3067_v48 = vsel %vm1060_vm2, %v7389_v26, 0.0 }
 0x916   : > { %3068 = vadd.xlane.f32.xlu1 %v3067_v48 }
 0x919   : > { %v7393_v57 = vpop.eup %5805 }
 0x91a   : > { %v3073_v14 = vsel %vm1060_vm2, %v7393_v57, 0.0 }
 0x91b   : > { %3074 = vadd.xlane.f32.xlu1 %v3073_v14 }
 0x93d   : > { %v2928_v31 = vpop.xlane.xlu1 %2927 }
 0x93e   : > { %v2925_v62 = vpop.xlane.xlu0 %2924  ;;  %v2988_v19 = vsub.f32 %v7292_v39, %v2928_v31 }
 0x93f   : > { %v2987_v45 = vsub.f32 %v7294_v24, %v2925_v62 }
 0x940   : > { %v3037_v48 = vmul.f32 1.442695, %v2988_v19 }
 0x941   : > { %v2889_v53 = vpop.xlane.xlu1 %2888  ;;  %v3035_v4 = vmul.f32 1.442695, %v2987_v45 }
 0x942   : > { %v2975_v25 = vsub.f32 %v7270_v23, %v2889_v53  ;;  %v2934_v29 = vpop.xlane.xlu0 %2933 }
 0x944   : > { %v3011_v30 = vmul.f32 1.442695, %v2975_v25 }
 0x945   : > { %v2895_v15 = vpop.xlane.xlu1 %2894 }
 0x946   : > { %5807 = vpow2.f32 %v3011_v30  ;;  %v2977_v54 = vsub.f32 %v7274_v61, %v2895_v15  ;;  %v2931_v17 = vpop.xlane.xlu0 %2930  ;;  %v2990_v15 = vsub.f32 %v7300_v63, %v2934_v29 }
 0x948   : > { %v3015_v38 = vmul.f32 1.442695, %v2977_v54 }
 0x949   : > { %v2937_v59 = vpop.xlane.xlu1 %2936 }
 0x94a   : > { %5809 = vpow2.f32 %v3015_v38  ;;  %v2886_v12 = vpop.xlane.xlu0 %2885 }
 0x94b   : > { %v2974_v43 = vsub.f32 %v7262_v20, %v2886_v12  ;;  %v2991_v12 = vsub.f32 %v7312_v37, %v2937_v59 }
 0x94d   : > { %v3009_v1 = vmul.f32 1.442695, %v2974_v43  ;;  %v2901_v42 = vpop.xlane.xlu1 %2900  ;;  %v3041_v43 = vmul.f32 1.442695, %v2990_v15 }
 0x94e   : > { %v2979_v51 = vsub.f32 %v7278_v44, %v2901_v42  ;;  %v7402_v23 = vpop.xlane.xlu0 %2939  ;;  %v2989_v44 = vsub.f32 %v7302_v56, %v2931_v17 }
 0x94f   : > { %5811 = vpow2.f32 %v3009_v1  ;;  %v2992_v37 = vsub.f32 %v7308_v41, %v7402_v23 }
 0x950   : > { %v7404_v27 = vpop.eup %5807  ;;  %v3019_v61 = vmul.f32 1.442695, %v2979_v51  ;;  %v3039_v25 = vmul.f32 1.442695, %v2989_v44 }
 0x951   : > { %v2943_v13 = vpop.xlane.xlu1 %2942  ;;  %v3079_v18 = vsel %vm1060_vm2, %v7404_v27, 0.0  ;;  %v3045_v23 = vmul.f32 1.442695, %v2992_v37 }
 0x952   : > { %5813 = vpow2.f32 %v3019_v61  ;;  %v2892_v20 = vpop.xlane.xlu0 %2891  ;;  %3080 = vadd.xlane.f32.xlu1 %v3079_v18 }
 0x953   : > { %v2976_v24 = vsub.f32 %v7268_v49, %v2892_v20  ;;  %5815 = vpow2.f32 %v3035_v4  ;;  %v2993_v4 = vsub.f32 %v7320_v46, %v2943_v13 }
 0x954   : > { %v7410_v60 = vpop.eup %5809 }
 0x955   : > { %v3013_v14 = vmul.f32 1.442695, %v2976_v24  ;;  %v2907_v62 = vpop.xlane.xlu1 %2906  ;;  %v3085_v39 = vsel %vm1060_vm2, %v7410_v60, 0.0  ;;  %v3047_v24 = vmul.f32 1.442695, %v2993_v4 }
 0x956   : > { %v2981_v31 = vsub.f32 %v7282_v33, %v2907_v62  ;;  %v7416_v53 = vpop.xlane.xlu0 %2945  ;;  %3086 = vadd.xlane.f32.xlu1 %v3085_v39 }
 0x957   : > { %5817 = vpow2.f32 %v3013_v14 }
 0x958   : > { %v3023_v30 = vmul.f32 1.442695, %v2981_v31  ;;  %5819 = vpow2.f32 %v3037_v48 }
 0x959   : > { %v7418_v49 = vpop.eup %5811  ;;  %v2949_v56 = vpop.xlane.xlu1 %2948 }
 0x95a   : > { %5821 = vpow2.f32 %v3023_v30  ;;  %v2898_v54 = vpop.xlane.xlu0 %2897  ;;  %v3076_v17 = vsel %vm1060_vm2, %v7418_v49, 0.0  ;;  %v2995_v41 = vsub.f32 %v7328_v28, %v2949_v56  ;;  %v2994_v28 = vsub.f32 %v7318_v7, %v7416_v53 }
 0x95b   : > { %v2978_v38 = vsub.f32 %v7272_v0, %v2898_v54  ;;  %3077 = vadd.xlane.f32.xlu0 %v3076_v17  ;;  %5823 = vpow2.f32 %v3039_v25  ;;  %v3043_v0 = vmul.f32 1.442695, %v2991_v12 }
 0x95c   : > { %v7424_v33 = vpop.eup %5813  ;;  %v3049_v12 = vmul.f32 1.442695, %v2994_v28 }
 0x95d   : > { %v3017_v45 = vmul.f32 1.442695, %v2978_v38  ;;  %v2913_v1 = vpop.xlane.xlu1 %2912  ;;  %v3091_v63 = vsel %vm1060_vm2, %v7424_v33, 0.0  ;;  %v7429_v29 = vpop.eup %5815 }
 0x95e   : > { %v2983_v42 = vsub.f32 %v7286_v5, %v2913_v1  ;;  %v7432_v51 = vpop.xlane.xlu0 %2951  ;;  %3092 = vadd.xlane.f32.xlu1 %v3091_v63  ;;  %v3115_v59 = vsel %vm1060_vm2, %v7429_v29, 0.0 }
 0x95f   : > { %5825 = vpow2.f32 %v3017_v45  ;;  %v2996_v63 = vsub.f32 %v7324_v34, %v7432_v51 }
 0x960   : > { %v3027_v61 = vmul.f32 1.442695, %v2983_v42  ;;  %5827 = vpow2.f32 %v3041_v43 }
 0x961   : > { %v7435_v19 = vpop.eup %5817  ;;  %v7468_v38 = vpop.xlane.xlu1 %2954 }
 0x962   : > { %5829 = vpow2.f32 %v3027_v61  ;;  %v2904_v18 = vpop.xlane.xlu0 %2903  ;;  %3116 = vadd.xlane.f32.xlu1 %v3115_v59  ;;  %v3082_v5 = vsel %vm1060_vm2, %v7435_v19, 0.0  ;;  %v7443_v20 = vpop.eup %5819 }
 0x963   : > { %v2980_v46 = vsub.f32 %v7276_v36, %v2904_v18  ;;  %3083 = vadd.xlane.f32.xlu0 %v3082_v5  ;;  %5831 = vpow2.f32 %v3043_v0  ;;  %v3118_v39 = vsel %vm1060_vm2, %v7443_v20, 0.0  ;;  %v3051_v36 = vmul.f32 1.442695, %v2995_v41 }
 0x964   : > { %v7446_v13 = vpop.eup %5821  ;;  %v3053_v5 = vmul.f32 1.442695, %v2996_v63 }
 0x965   : > { %v3021_v44 = vmul.f32 1.442695, %v2980_v46  ;;  %v3097_v48 = vsel %vm1060_vm2, %v7446_v13, 0.0  ;;  %v7451_v14 = vpop.eup %5823  ;;  %v2919_v4 = vpop.xlane.xlu1 %2918 }
 0x966   : > { %v2958_v62 = vpop.xlane.xlu0 %2957  ;;  %3098 = vadd.xlane.f32.xlu1 %v3097_v48  ;;  %v3121_v25 = vsel %vm1060_vm2, %v7451_v14, 0.0  ;;  %v2985_v46 = vsub.f32 %v7290_v22, %v2919_v4 }
 0x967   : > { %5833 = vpow2.f32 %v3021_v44  ;;  %3119 = vadd.xlane.f32.xlu0 %v3118_v39  ;;  %v2998_v48 = vsub.f32 %v7334_v9, %v2958_v62 }
 0x968   : > { %5835 = vpow2.f32 %v3047_v24 }
 0x969   : > { %v7455_v31 = vpop.eup %5825  ;;  %5837 = vpow2.f32 %v3045_v23  ;;  %v2961_v9 = vpop.xlane.xlu1 %2960 }
 0x96a   : > { %v2910_v30 = vpop.xlane.xlu0 %2909  ;;  %3122 = vadd.xlane.f32.xlu1 %v3121_v25  ;;  %v3088_v15 = vsel %vm1060_vm2, %v7455_v31, 0.0  ;;  %v7463_v56 = vpop.eup %5827  ;;  %5839 = vpow2.f32 %v3051_v36  ;;  %v3057_v25 = vmul.f32 1.442695, %v2998_v48 }
 0x96b   : > { %v2982_v54 = vsub.f32 %v7280_v40, %v2910_v30  ;;  %3089 = vadd.xlane.f32.xlu0 %v3088_v15  ;;  %v3124_v1 = vsel %vm1060_vm2, %v7463_v56, 0.0 }
 0x96c   : > { %v7466_v17 = vpop.eup %5829 }
 0x96d   : > { %v3025_v7 = vmul.f32 1.442695, %v2982_v54  ;;  %v3103_v53 = vsel %vm1060_vm2, %v7466_v17, 0.0  ;;  %v7472_v43 = vpop.eup %5831  ;;  %v2967_v63 = vpop.xlane.xlu1 %2966 }
 0x96e   : > { %v2964_v45 = vpop.xlane.xlu0 %2963  ;;  %3104 = vadd.xlane.f32.xlu1 %v3103_v53  ;;  %v3127_v42 = vsel %vm1060_vm2, %v7472_v43, 0.0 }
 0x96f   : > { %5841 = vpow2.f32 %v3025_v7  ;;  %3125 = vadd.xlane.f32.xlu0 %v3124_v1  ;;  %v3000_v54 = vsub.f32 %v7340_v8, %v2964_v45  ;;  %v366_v8 = vld [vmem:[%s8111_s3 + $0x18] sm:$0xff]  ;;  %v3001_v45 = vsub.f32 %v7352_v10, %v2967_v63 }
 0x970   : > { %5843 = vpow2.f32 %v3049_v12 }
 0x971   : > { %v7476_v40 = vpop.eup %5833  ;;  %v3061_v1 = vmul.f32 1.442695, %v3000_v54 }
 0x972   : > { %v7482_v0 = vpop.eup %5835  ;;  %v2916_v61 = vpop.xlane.xlu0 %2915  ;;  %3128 = vadd.xlane.f32.xlu1 %v3127_v42  ;;  %v3094_v37 = vsel %vm1060_vm2, %v7476_v40, 0.0 }
 0x973   : > { %v7486_v59 = vpop.eup %5837  ;;  %v2984_v18 = vsub.f32 %v7284_v32, %v2916_v61  ;;  %3095 = vadd.xlane.f32.xlu0 %v3094_v37  ;;  %v3133_v51 = vsel %vm1060_vm2, %v7482_v0, 0.0  ;;  %v3031_v32 = vmul.f32 1.442695, %v2985_v46 }
 0x974   : > { %v7492_v24 = vpop.eup %5839  ;;  %v3130_v23 = vsel %vm1060_vm2, %v7486_v59, 0.0 }
 0x975   : > { %v3029_v34 = vmul.f32 1.442695, %v2984_v18  ;;  %v3139_v22 = vsel %vm1060_vm2, %v7492_v24, 0.0  ;;  %v3063_v18 = vmul.f32 1.442695, %v3001_v45 }
 0x976   : > { %v2970_v41 = vpop.xlane.xlu0 %2969  ;;  %3134 = vadd.xlane.f32.xlu1 %v3133_v51 }
 0x977   : > { %5845 = vpow2.f32 %v3029_v34  ;;  %3131 = vadd.xlane.f32.xlu0 %v3130_v23  ;;  %v2997_v23 = vsub.f32 %v7336_v58, %v7468_v38 }
 0x978   : > { %5847 = vpow2.f32 %v3053_v5 }
 0x979   : > { %v7496_v44 = vpop.eup %5841  ;;  %5849 = vpow2.f32 %v3031_v32 }
 0x97a   : > { %v2922_v39 = vpop.xlane.xlu0 %2921  ;;  %3140 = vadd.xlane.f32.xlu1 %v3139_v22  ;;  %v3100_v36 = vsel %vm1060_vm2, %v7496_v44, 0.0  ;;  %v7503_v28 = vpop.eup %5843  ;;  %5851 = vpow2.f32 %v3057_v25  ;;  %v3055_v22 = vmul.f32 1.442695, %v2997_v23 }
 0x97b   : > { %3101 = vadd.xlane.f32.xlu0 %v3100_v36  ;;  %v2986_v30 = vsub.f32 %v7288_v50, %v2922_v39  ;;  %v3136_v15 = vsel %vm1060_vm2, %v7503_v28, 0.0  ;;  %v3002_v50 = vsub.f32 %v7350_v52, %v2970_v41  ;;  %v2999_v39 = vsub.f32 %v7344_v55, %v2961_v9  ;;  %v500_v55 = vld [vmem:[%s8113_s5 + $0x18] sm:$0xff]  ;;  %v503_v9 = vld [vmem:[%s8113_s5 + $0x30] sm:$0xff] }
 0x97d   : > { %v3033_v12 = vmul.f32 1.442695, %v2986_v30  ;;  %v3065_v61 = vmul.f32 1.442695, %v3002_v50  ;;  %v3059_v25 = vmul.f32 1.442695, %v2999_v39 }
 0x97f   : > { %3137 = vadd.xlane.f32.xlu0 %v3136_v15  ;;  %5853 = vpow2.f32 %v3033_v12 }
 0x980   : > { %5855 = vpow2.f32 %v3061_v1 }
 0x981   : > { %v7508_v62 = vpop.eup %5845  ;;  %5857 = vpow2.f32 %v3065_v61 }
 0x982   : > { %v3106_v7 = vsel %vm1060_vm2, %v7508_v62, 0.0  ;;  %v7513_v53 = vpop.eup %5847  ;;  %5859 = vpow2.f32 %v3063_v18 }
 0x983   : > { %3107 = vadd.xlane.f32.xlu0 %v3106_v7  ;;  %v3142_v42 = vsel %vm1060_vm2, %v7513_v53, 0.0  ;;  %v7518_v4 = vpop.eup %5849  ;;  %5861 = vpow2.f32 %v3055_v22 }
 0x984   : > { %v3109_v37 = vsel %vm1060_vm2, %v7518_v4, 0.0  ;;  %v7526_v52 = vpop.eup %5851  ;;  %5863 = vpow2.f32 %v3059_v25 }
 0x985   : > { %v3148_v5 = vsel %vm1060_vm2, %v7526_v52, 0.0 }
 0x987   : > { %3143 = vadd.xlane.f32.xlu0 %v3142_v42 }
 0x989   : > { %v7530_v46 = vpop.eup %5853 }
 0x98a   : > { %v3112_v10 = vsel %vm1060_vm2, %v7530_v46, 0.0  ;;  %v7534_v34 = vpop.eup %5855 }
 0x98b   : > { %384 = vperm.xlu1 %5544, %v366_v8   ;;  %3110 = vadd.xlane.f32.xlu0 %v3109_v37  ;;  %v3154_v51 = vsel %vm1060_vm2, %v7534_v34, 0.0  ;;  %v7538_v41 = vpop.eup %5857 }
 0x98c   : > { %v3160_v32 = vsel %vm1060_vm2, %v7538_v41, 0.0  ;;  %v7544_v48 = vpop.eup %5859 }
 0x98d   : > { %v3157_v36 = vsel %vm1060_vm2, %v7544_v48, 0.0  ;;  %v7549_v30 = vpop.eup %5861 }
 0x98e   : > { %v3145_v58 = vsel %vm1060_vm2, %v7549_v30, 0.0  ;;  %v7553_v38 = vpop.eup %5863 }
 0x98f   : > { %3149 = vadd.xlane.f32.xlu0 %v3148_v5  ;;  %v3151_v15 = vsel %vm1060_vm2, %v7553_v38, 0.0 }
 0x993   : > { %3113 = vadd.xlane.f32.xlu0 %v3112_v10 }
 0x997   : > { %3155 = vadd.xlane.f32.xlu0 %v3154_v51 }
 0x99b   : > { %3161 = vadd.xlane.f32.xlu0 %v3160_v32 }
 0x99f   : > { %3158 = vadd.xlane.f32.xlu0 %v3157_v36  ;;  %v3072_v50 = vpop.xlane.xlu0 %3071 }
 0x9a3   : > { %v3069_v54 = vpop.xlane.xlu1 %3068 }
 0x9a4   : > { %5865 = vrcp.f32 %v3069_v54 }
 0x9a8   : > { %v3075_v12 = vpop.xlane.xlu1 %3074 }
 0x9ae   : > { %v5866_v51 = vpop.eup %5865 }
 0x9af   : > { %3146 = vadd.xlane.f32.xlu1 %v3145_v58  ;;  %v3195_v36 = vmul.f32 %v5866_v51, %v7389_v26 }
 0x9b3   : > { %3152 = vadd.xlane.f32.xlu1 %v3151_v15 }
 0x9b5   : > { %522 = vperm.xlu0 %5543, %v500_v55  }
 0x9c4   : > { %537 = vperm.xlu1 %5544, %v503_v9  }
 0x9df   : > { %v3081_v7 = vpop.xlane.xlu1 %3080 }
 0x9e3   : > { %v3087_v1 = vpop.xlane.xlu1 %3086 }
 0x9e8   : > { %v3078_v42 = vpop.xlane.xlu0 %3077 }
 0x9eb   : > { %v7563_v63 = vpop.xlane.xlu1 %3092 }
 0x9ef   : > { %v3117_v8 = vpop.xlane.xlu1 %3116 }
 0x9f0   : > { %v3084_v45 = vpop.xlane.xlu0 %3083  ;;  %5867 = vrcp.f32 %v3117_v8 }
 0x9f1   : > { %5869 = vrcp.f32 %v3072_v50 }
 0x9f3   : > { %v7565_v61 = vpop.xlane.xlu1 %3098 }
 0x9f4   : > { %v3120_v37 = vpop.xlane.xlu0 %3119 }
 0x9f5   : > { %5871 = vrcp.f32 %v3120_v37 }
 0x9f6   : > { %5873 = vrcp.f32 %v3078_v42 }
 0x9f7   : > { %v3123_v18 = vpop.xlane.xlu1 %3122 }
 0x9f8   : > { %v3090_v5 = vpop.xlane.xlu0 %3089  ;;  %5875 = vrcp.f32 %v3123_v18 }
 0x9f9   : > { %5877 = vrcp.f32 %v3075_v12 }
 0x9fa   : > { %v5868_v32 = vpop.eup %5867 }
 0x9fb   : > { %v7567_v10 = vpop.xlane.xlu1 %3104  ;;  %v5870_v22 = vpop.eup %5869  ;;  %v3211_v15 = vmul.f32 %v5868_v32, %v7429_v29 }
 0x9fc   : > { %v3126_v23 = vpop.xlane.xlu0 %3125  ;;  %v3196_v9 = vmul.f32 %v5870_v22, %v7385_v47 }
 0x9fd   : > { %5879 = vrcp.f32 %v3126_v23 }
 0x9fe   : > { %5881 = vrcp.f32 %v3084_v45  ;;  %v5385_v12 = vpack.c.bf16 %v3196_v9, %v3195_v36  ;;  %v8129_v36 = vld [vmem:[#allocation6_spill] sm:$0xff] }
 0x9ff   : > { %v5872_v39 = vpop.eup %5871  ;;  %v3129_v25 = vpop.xlane.xlu1 %3128 }
 0xa00   : > { %v3096_v58 = vpop.xlane.xlu0 %3095  ;;  %v3212_v55 = vmul.f32 %v5872_v39, %v7443_v20  ;;  %5883 = vrcp.f32 %v3129_v25  ;;  %v5874_v42 = vpop.eup %5873 }
 0xa01   : > { %5885 = vrcp.f32 %v3081_v7  ;;  %v3198_v47 = vmul.f32 %v5874_v42, %v7418_v49 }
 0xa02   : > { %v5382_v54 = vpack.c.bf16 %v3212_v55, %v3211_v15  ;;  %v5876_v26 = vpop.eup %5875  ;;  %v8130_v15 = vld [vmem:[#allocation7_spill] sm:$0xff] }
 0xa03   : > { %v3135_v50 = vpop.xlane.xlu1 %3134  ;;  %v5878_v29 = vpop.eup %5877  ;;  %v3213_v18 = vmul.f32 %v5876_v26, %v7451_v14 }
 0xa04   : > { %v3132_v8 = vpop.xlane.xlu0 %3131  ;;  %5384 = vmatprep.subr.msk.bf16.mxu1 %vm6678_vm3, %v5382_v54  ;;  %v3197_v51 = vmul.f32 %v5878_v29, %v7393_v57 }
 0xa05   : > { %5887 = vrcp.f32 %v3132_v8  ;;  %5387 = vmatpush3.bf16.xpose.msk.msra.mxu1 %vm6678_vm3, %v5385_v12 }
 0xa06   : > { %5889 = vrcp.f32 %v3090_v5  ;;  %v5391_v22 = vpack.c.bf16 %v3198_v47, %v3197_v51 }
 0xa07   : > { %v5880_v20 = vpop.eup %5879  ;;  %v3141_v45 = vpop.xlane.xlu1 %3140  ;;  %5891 = vrcp.f32 %v3135_v50 }
 0xa08   : > { %v7578_v37 = vpop.xlane.xlu0 %3101  ;;  %v3214_v7 = vmul.f32 %v5880_v20, %v7463_v56  ;;  %v5882_v39 = vpop.eup %5881  ;;  %5893 = vrcp.f32 %v3087_v1 }
 0xa09   : > { %v3200_v5 = vmul.f32 %v5882_v39, %v7435_v19 }
 0xa0a   : > { %v5388_v23 = vpack.c.bf16 %v3214_v7, %v3213_v18  ;;  %v5884_v14 = vpop.eup %5883 }
 0xa0b   : > { %v385_v32 = vpop.permute.xlu1 %384  ;;  %v5886_v57 = vpop.eup %5885  ;;  %v3215_v9 = vmul.f32 %v5884_v14, %v7472_v43  ;;  %v8131_v14 = vld [vmem:[#allocation10_spill] sm:$0xff] }
 0xa0c   : > { %v485_v25 = vadd.f32 %v8129_v36, %v385_v32  ;;  %v487_v49 = vadd.f32 %v8130_v15, %v385_v32  ;;  %v3138_v55 = vpop.xlane.xlu0 %3137  ;;  %5390 = vmatprep.subr.msk.bf16.mxu1 %vm6678_vm3, %v5388_v23  ;;  %v3199_v50 = vmul.f32 %v5886_v57, %v7404_v27 }
 0xa0d   : > { %5895 = vrcp.f32 %v3138_v55  ;;  %5393 = vmatpush3.bf16.xpose.msk.msra.mxu1 %vm6678_vm3, %v5391_v22 }
 0xa0e   : > { %3429 = vxpose.xlu0.b32.start.end [1/1] (short) %v487_v49, 128  ;;  %3397 = vxpose.xlu1.b32.start.end [1/1] (short) %v485_v25, 128  ;;  %5897 = vrcp.f32 %v3096_v58  ;;  %v5397_v42 = vpack.c.bf16 %v3200_v5, %v3199_v50 }
 0xa0f   : > { %v5888_v56 = vpop.eup %5887  ;;  %5899 = vrcp.f32 %v3141_v45 }
 0xa10   : > { %v3108_v1 = vpop.xlane.xlu0 %3107  ;;  %v3216_v54 = vmul.f32 %v5888_v56, %v7486_v59  ;;  %v5890_v8 = vpop.eup %5889  ;;  %5901 = vrcp.f32 %v7563_v63 }
 0xa11   : > { %v5892_v29 = vpop.eup %5891  ;;  %v3202_v27 = vmul.f32 %v5890_v8, %v7455_v31 }
 0xa12   : > { %v5394_v12 = vpack.c.bf16 %v3216_v54, %v3215_v9  ;;  %v5894_v19 = vpop.eup %5893  ;;  %v3217_v59 = vmul.f32 %v5892_v29, %v7482_v0 }
 0xa13   : > { %v3201_v20 = vmul.f32 %v5894_v19, %v7410_v60 }
 0xa14   : > { %v3144_v26 = vpop.xlane.xlu0 %3143  ;;  %5396 = vmatprep.subr.msk.bf16.mxu1 %vm6678_vm3, %v5394_v12 }
 0xa15   : > { %5903 = vrcp.f32 %v3144_v26  ;;  %5399 = vmatpush3.bf16.xpose.msk.msra.mxu1 %vm6678_vm3, %v5397_v42  ;;  %v5403_v47 = vpack.c.bf16 %v3202_v27, %v3201_v20 }
 0xa16   : > { %5905 = vrcp.f32 %v7578_v37 }
 0xa17   : > { %v5896_v43 = vpop.eup %5895 }
 0xa18   : > { %v3218_v58 = vmul.f32 %v5896_v43, %v7503_v28  ;;  %v5898_v45 = vpop.eup %5897  ;;  %v3111_v23 = vpop.xlane.xlu0 %3110 }
 0xa19   : > { %v5900_v18 = vpop.eup %5899  ;;  %v3204_v31 = vmul.f32 %v5898_v45, %v7476_v40 }
 0xa1a   : > { %v5400_v63 = vpack.c.bf16 %v3218_v58, %v3217_v59  ;;  %v5902_v7 = vpop.eup %5901  ;;  %v3219_v0 = vmul.f32 %v5900_v18, %v7492_v24 }
 0xa1b   : > { %v3203_v60 = vmul.f32 %v5902_v7, %v7424_v33 }
 0xa1c   : > { %5402 = vmatprep.subr.msk.bf16.mxu1 %vm6678_vm3, %v5400_v63  ;;  %v3150_v39 = vpop.xlane.xlu0 %3149 }
 0xa1d   : > { %5405 = vmatpush3.bf16.xpose.msk.msra.mxu1 %vm6678_vm3, %v5403_v47  ;;  %v5409_v22 = vpack.c.bf16 %v3204_v31, %v3203_v60  ;;  %5907 = vrcp.f32 %v3150_v39  ;;  %v8132_v47 = vld [vmem:[#allocation8_spill] sm:$0xff] }
 0xa1e   : > { %5909 = vrcp.f32 %v7565_v61 }
 0xa1f   : > { %v5904_v51 = vpop.eup %5903 }
 0xa20   : > { %v3220_v28 = vmul.f32 %v5904_v51, %v7513_v53  ;;  %v3114_v36 = vpop.xlane.xlu0 %3113  ;;  %v5906_v15 = vpop.eup %5905 }
 0xa21   : > { %v3206_v61 = vmul.f32 %v5906_v15, %v7496_v44 }
 0xa22   : > { %v5406_v32 = vpack.c.bf16 %v3220_v28, %v3219_v0 }
 0xa24   : > { %5408 = vmatprep.subr.msk.bf16.mxu1 %vm6678_vm3, %v5406_v32  ;;  %v3156_v25 = vpop.xlane.xlu0 %3155 }
 0xa25   : > { %5411 = vmatpush3.bf16.xpose.msk.msra.mxu1 %vm6678_vm3, %v5409_v22 }
 0xa27   : > { %v5908_v55 = vpop.eup %5907 }
 0xa28   : > { %v3162_v40 = vpop.xlane.xlu0 %3161  ;;  %v5910_v57 = vpop.eup %5909  ;;  %v3222_v9 = vmul.f32 %v5908_v55, %v7526_v52 }
 0xa29   : > { %v3205_v54 = vmul.f32 %v5910_v57, %v7446_v13 }
 0xa2b   : > { %v5415_v12 = vpack.c.bf16 %v3206_v61, %v3205_v54 }
 0xa2c   : > { %v3159_v33 = vpop.xlane.xlu0 %3158 }
 0xa34   : > { %v523_v63 = vpop.permute.xlu0 %522 }
 0xa3c   : > { %v3147_v24 = vpop.xlane.xlu1 %3146 }
 0xa3d   : > { %5911 = vrcp.f32 %v3147_v24 }
 0xa3e   : > { %5913 = vrcp.f32 %v3156_v25 }
 0xa40   : > { %v3153_v53 = vpop.xlane.xlu1 %3152 }
 0xa41   : > { %5915 = vrcp.f32 %v3153_v53 }
 0xa42   : > { %5917 = vrcp.f32 %v3108_v1 }
 0xa43   : > { %5919 = vrcp.f32 %v3159_v33 }
 0xa44   : > { %5921 = vrcp.f32 %v7567_v10  ;;  %v538_v49 = vpop.permute.xlu1 %537 }
 0xa45   : > { %5923 = vrcp.f32 %v3162_v40  ;;  %v667_v37 = vadd.f32 %v8131_v14, %v538_v49 }
 0xa46   : > { %5925 = vrcp.f32 %v3114_v36 }
 0xa47   : > { %v5912_v56 = vpop.eup %5911  ;;  %4997 = vmatprep.mubr.msk.f32.mxu1 %vm1060_vm2, %v667_v37  ;;  %5927 = vrcp.f32 %v3111_v23 }
 0xa48   : > { %v3221_v5 = vmul.f32 %v5912_v56, %v7549_v30  ;;  %v5914_v1 = vpop.eup %5913 }
 0xa49   : > { %v3224_v8 = vmul.f32 %v5914_v1, %v7534_v34 }
 0xa4a   : > { %v5412_v10 = vpack.c.bf16 %v3222_v9, %v3221_v5 }
 0xa4b   : > { %v5916_v50 = vpop.eup %5915 }
 0xa4c   : > { %v5918_v42 = vpop.eup %5917  ;;  %5414 = vmatprep.subr.msk.bf16.mxu1 %vm6678_vm3, %v5412_v10  ;;  %v3223_v44 = vmul.f32 %v5916_v50, %v7553_v38 }
 0xa4d   : > { %v5920_v26 = vpop.eup %5919  ;;  %5417 = vmatpush3.bf16.xpose.msk.msra.mxu1 %vm6678_vm3, %v5415_v12  ;;  %v3208_v29 = vmul.f32 %v5918_v42, %v7508_v62 }
 0xa4e   : > { %v5922_v52 = vpop.eup %5921  ;;  %v5418_v30 = vpack.c.bf16 %v3224_v8, %v3223_v44  ;;  %v3225_v19 = vmul.f32 %v5920_v26, %v7544_v48 }
 0xa4f   : > { %v5924_v13 = vpop.eup %5923  ;;  %v3207_v43 = vmul.f32 %v5922_v52, %v7466_v17  ;;  %v652_v17 = vadd.f32 %v8132_v47, %v523_v63 }
 0xa50   : > { %5420 = vmatprep.subr.msk.bf16.mxu1 %vm6678_vm3, %v5418_v30  ;;  %v3226_v38 = vmul.f32 %v5924_v13, %v7538_v41  ;;  %v5926_v34 = vpop.eup %5925 }
 0xa51   : > { %v5421_v27 = vpack.c.bf16 %v3208_v29, %v3207_v43  ;;  %v5928_v58 = vpop.eup %5927  ;;  %v3210_v62 = vmul.f32 %v5926_v34, %v7530_v46 }
 0xa52   : > { %v5424_v59 = vpack.c.bf16 %v3226_v38, %v3225_v19  ;;  %v3209_v20 = vmul.f32 %v5928_v58, %v7518_v4 }
 0xa54   : > { %v5427_v48 = vpack.c.bf16 %v3210_v62, %v3209_v20 }
 0xa55   : > { %5423 = vmatpush3.bf16.xpose.msk.msra.mxu1 %vm6678_vm3, %v5421_v27 }
 0xa56   : > { %5426 = vmatprep.subr.msk.bf16.mxu1 %vm6678_vm3, %v5424_v59 }
 0xa5d   : > { %5429 = vmatpush3.bf16.xpose.msk.msra.mxu1 %vm6678_vm3, %v5427_v48 }
 0xa5e   : > { %5232 = vmatprep.subr.mxu1 %v652_v17 }
 0xa64   : > { %4998 = vmatmul.mubr.msk.f32.vlgmr.msra.gmra.mrb[34].mxu1 %vm1060_vm2, %v667_v37 }
 0xa65   : > { %5233 = vmatpush3.msra.mxu1 %v652_v17 }
 0xa8e   : > { %v3413_v41 = vpop.trf.xlu1  ;;  %v3445_v45 = vpop.trf.xlu0 }
 0xa8f   : > { %5234 = vmatprep.mubr.msk.f32.mxu1 %vm387_vm0, %v3413_v41 }
 0xa92   : > { %v3414_v18 = vpop.trf.xlu1  ;;  %v3446_v46 = vpop.trf.xlu0 }
 0xa93   : > { %5235 = vmatmul.mubr.msk.f32.vlgmr.msra.gmra.mrb[36].mxu1 %vm387_vm0, %v3414_v18 }
 0xa96   : > { %v3415_v4 = vpop.trf.xlu1  ;;  %v3447_v51 = vpop.trf.xlu0 }
 0xa97   : > { %5237 = vmatprep.mubr.msk.f32.mxu1 %vm387_vm0, %v3415_v4 }
 0xa9a   : > { %v3416_v7 = vpop.trf.xlu1  ;;  %v3448_v0 = vpop.trf.xlu0 }
 0xa9b   : > { %5238 = vmatmul.mubr.msk.f32.gmra.mrb[38].mxu1 %vm387_vm0, %v3416_v7 }
 0xa9e   : > { %v3417_v31 = vpop.trf.xlu1  ;;  %v3449_v23 = vpop.trf.xlu0 }
 0xa9f   : > { %5240 = vmatprep.mubr.msk.f32.mxu1 %vm387_vm0, %v3417_v31 }
 0xaa2   : > { %v3418_v28 = vpop.trf.xlu1  ;;  %v3450_v22 = vpop.trf.xlu0 }
 0xaa3   : > { %5241 = vmatmul.mubr.msk.f32.gmra.mrb[40].mxu1 %vm387_vm0, %v3418_v28 }
 0xaa6   : > { %v3419_v60 = vpop.trf.xlu1  ;;  %v3451_v25 = vpop.trf.xlu0 }
 0xaa7   : > { %5243 = vmatprep.mubr.msk.f32.mxu1 %vm387_vm0, %v3419_v60 }
 0xaaa   : > { %v3420_v32 = vpop.trf.xlu1  ;;  %v3452_v24 = vpop.trf.xlu0 }
 0xaab   : > { %5244 = vmatmul.mubr.msk.f32.gmra.mrb[42].mxu1 %vm387_vm0, %v3420_v32 }
 0xaae   : > { %v3421_v39 = vpop.trf.xlu1  ;;  %v3453_v15 = vpop.trf.xlu0 }
 0xaaf   : > { %5246 = vmatprep.mubr.msk.f32.mxu1 %vm387_vm0, %v3421_v39 }
 0xab2   : > { %v3422_v36 = vpop.trf.xlu1  ;;  %v3454_v55 = vpop.trf.xlu0 }
 0xab3   : > { %5247 = vmatmul.mubr.msk.f32.gmra.mrb[44].mxu1 %vm387_vm0, %v3422_v36 }
 0xab6   : > { %v3423_v40 = vpop.trf.xlu1  ;;  %v3455_v57 = vpop.trf.xlu0 }
 0xab7   : > { %5249 = vmatprep.mubr.msk.f32.mxu1 %vm387_vm0, %v3423_v40 }
 0xaba   : > { %v3424_v33 = vpop.trf.xlu1  ;;  %v3456_v56 = vpop.trf.xlu0 }
 0xabb   : > { %5250 = vmatmul.mubr.msk.f32.gmra.mrb[46].mxu1 %vm387_vm0, %v3424_v33 }
 0xabe   : > { %v3425_v53 = vpop.trf.xlu1  ;;  %v3457_v61 = vpop.trf.xlu0 }
 0xabf   : > { %5252 = vmatprep.mubr.msk.f32.mxu1 %vm387_vm0, %v3425_v53 }
 0xac2   : > { %v3426_v49 = vpop.trf.xlu1  ;;  %v3458_v5 = vpop.trf.xlu0 }
 0xac3   : > { %5253 = vmatmul.mubr.msk.f32.gmra.mrb[48].mxu1 %vm387_vm0, %v3426_v49 }
 0xac6   : > { %v3427_v14 = vpop.trf.xlu1  ;;  %v3459_v9 = vpop.trf.xlu0 }
 0xac7   : > { %5255 = vmatprep.mubr.msk.f32.mxu1 %vm387_vm0, %v3427_v14 }
 0xaca   : > { %v3428_v37 = vpop.trf.xlu1  ;;  %v3460_v1 = vpop.trf.xlu0 }
 0xacb   : > { %5256 = vmatmul.mubr.msk.f32.gmra.mrb[50].mxu1 %vm387_vm0, %v3428_v37 }
 0xacc   : > { %5258 = vmatprep.mubr.msk.f32.mxu1 %vm387_vm0, %v3445_v45 }
 0xacf   : > { %5259 = vmatmul.mubr.msk.f32.gmra.mrb[52].mxu1 %vm387_vm0, %v3446_v46 }
 0xad0   : > { %5261 = vmatprep.mubr.msk.f32.mxu1 %vm387_vm0, %v3447_v51 }
 0xad3   : > { %5262 = vmatmul.mubr.msk.f32.gmra.mrb[54].mxu1 %vm387_vm0, %v3448_v0 }
 0xad4   : > { %5264 = vmatprep.mubr.msk.f32.mxu1 %vm387_vm0, %v3449_v23 }
 0xad7   : > { %5265 = vmatmul.mubr.msk.f32.gmra.mrb[56].mxu1 %vm387_vm0, %v3450_v22 }
 0xad8   : > { %5267 = vmatprep.mubr.msk.f32.mxu1 %vm387_vm0, %v3451_v25 }
 0xadb   : > { %5268 = vmatmul.mubr.msk.f32.gmra.mrb[58].mxu1 %vm387_vm0, %v3452_v24 }
 0xadc   : > { %5270 = vmatprep.mubr.msk.f32.mxu1 %vm387_vm0, %v3453_v15 }
 0xadf   : > { %5271 = vmatmul.mubr.msk.f32.gmra.mrb[60].mxu1 %vm387_vm0, %v3454_v55 }
 0xae0   : > { %5273 = vmatprep.mubr.msk.f32.mxu1 %vm387_vm0, %v3455_v57 }
 0xae3   : > { %5274 = vmatmul.mubr.msk.f32.gmra.mrb[62].mxu1 %vm387_vm0, %v3456_v56 }
 0xae4   : > { %5276 = vmatprep.mubr.msk.f32.mxu1 %vm387_vm0, %v3457_v61 }
 0xae7   : > { %5277 = vmatmul.mubr.msk.f32.gmra.mrb[64].mxu1 %vm387_vm0, %v3458_v5 }
 0xae8   : > { %5279 = vmatprep.mubr.msk.f32.mxu1 %vm387_vm0, %v3459_v9 }
 0xaeb   : > { %5280 = vmatmul.mubr.msk.f32.gmra.mrb[66].mxu1 %vm387_vm0, %v3460_v1 }
 0xb37   : > { %v7677_v54 = vpop.f32.mrb[34].mxu1 }
 0xb38   : > { %v7679_v10 = vpop.f32.mrb[35].mxu1 }
 0xb66   : > { %v7681_v50 = vpop.f32.mrb[36].mxu1 }
 0xb67   : > { %v7683_v12 = vpop.f32.mrb[37].mxu1  ;;  %v3785_v44 = vsel %vm1060_vm2, %v7681_v50, -inf }
 0xb68   : > { %v3782_v42 = vsel %vm1060_vm2, %v7683_v12, -inf }
 0xb69   : > { %3783 = vmax.xlane.f32.xlu1 %v3782_v42 }
 0xb6d   : > { %3786 = vmax.xlane.f32.xlu1 %v3785_v44 }
 0xb6e   : > { %v7689_v8 = vpop.f32.mrb[38].mxu1 }
 0xb6f   : > { %v7691_v26 = vpop.f32.mrb[39].mxu1  ;;  %v3791_v28 = vsel %vm1060_vm2, %v7689_v8, -inf }
 0xb70   : > { %v3788_v45 = vsel %vm1060_vm2, %v7691_v26, -inf }
 0xb76   : > { %v7693_v52 = vpop.f32.mrb[40].mxu1 }
 0xb77   : > { %v7695_v30 = vpop.f32.mrb[41].mxu1  ;;  %v3797_v40 = vsel %vm1060_vm2, %v7693_v52, -inf }
 0xb78   : > { %v3794_v60 = vsel %vm1060_vm2, %v7695_v30, -inf }
 0xb7e   : > { %v7697_v13 = vpop.f32.mrb[42].mxu1 }
 0xb7f   : > { %v7699_v29 = vpop.f32.mrb[43].mxu1  ;;  %v3803_v37 = vsel %vm1060_vm2, %v7697_v13, -inf }
 0xb80   : > { %v3800_v24 = vsel %vm1060_vm2, %v7699_v29, -inf }
 0xb86   : > { %v7701_v19 = vpop.f32.mrb[44].mxu1 }
 0xb87   : > { %v7703_v43 = vpop.f32.mrb[45].mxu1  ;;  %v3809_v5 = vsel %vm1060_vm2, %v7701_v19, -inf }
 0xb88   : > { %v3806_v57 = vsel %vm1060_vm2, %v7703_v43, -inf }
 0xb8e   : > { %v7705_v38 = vpop.f32.mrb[46].mxu1 }
 0xb8f   : > { %v7707_v27 = vpop.f32.mrb[47].mxu1  ;;  %v3815_v44 = vsel %vm1060_vm2, %v7705_v38, -inf }
 0xb90   : > { %v3812_v9 = vsel %vm1060_vm2, %v7707_v27, -inf }
 0xb96   : > { %v7709_v34 = vpop.f32.mrb[48].mxu1 }
 0xb97   : > { %v7711_v59 = vpop.f32.mrb[49].mxu1 }
 0xb9e   : > { %v7713_v58 = vpop.f32.mrb[50].mxu1 }
 0xb9f   : > { %v7715_v62 = vpop.f32.mrb[51].mxu1 }
 0xba2   : > { %v7717_v20 = vpop.f32.mrb[52].mxu1 }
 0xba3   : > { %v7719_v63 = vpop.f32.mrb[53].mxu1  ;;  %v3833_v48 = vsel %vm1060_vm2, %v7717_v20, -inf }
 0xba4   : > { %3834 = vmax.xlane.f32.xlu0 %v3833_v48  ;;  %v3830_v47 = vsel %vm1060_vm2, %v7719_v63, -inf  ;;  %v3818_v48 = vsel %vm1060_vm2, %v7711_v59, -inf }
 0xba5   : > { %3831 = vmax.xlane.f32.xlu1 %v3830_v47 }
 0xba6   : > { %v7725_v17 = vpop.f32.mrb[54].mxu1 }
 0xba7   : > { %v7727_v41 = vpop.f32.mrb[55].mxu1  ;;  %v3839_v18 = vsel %vm1060_vm2, %v7725_v17, -inf }
 0xba8   : > { %3789 = vmax.xlane.f32.xlu0 %v3788_v45  ;;  %v3836_v7 = vsel %vm1060_vm2, %v7727_v41, -inf }
 0xba9   : > { %3840 = vmax.xlane.f32.xlu1 %v3839_v18  ;;  %v3821_v18 = vsel %vm1060_vm2, %v7709_v34, -inf }
 0xbaa   : > { %v7733_v46 = vpop.f32.mrb[56].mxu1 }
 0xbab   : > { %v7735_v4 = vpop.f32.mrb[57].mxu1  ;;  %v3845_v39 = vsel %vm1060_vm2, %v7733_v46, -inf }
 0xbac   : > { %v3842_v51 = vsel %vm1060_vm2, %v7735_v4, -inf }
 0xbad   : > { %3837 = vmax.xlane.f32.xlu1 %v3836_v7  ;;  %3843 = vmax.xlane.f32.xlu0 %v3842_v51  ;;  %v3824_v7 = vsel %vm1060_vm2, %v7715_v62, -inf }
 0xbae   : > { %v7741_v31 = vpop.f32.mrb[58].mxu1 }
 0xbaf   : > { %v7743_v0 = vpop.f32.mrb[59].mxu1  ;;  %v3851_v49 = vsel %vm1060_vm2, %v7741_v31, -inf }
 0xbb0   : > { %v3848_v23 = vsel %vm1060_vm2, %v7743_v0, -inf }
 0xbb1   : > { %3792 = vmax.xlane.f32.xlu1 %v3791_v28  ;;  %3795 = vmax.xlane.f32.xlu0 %v3794_v60  ;;  %v3827_v28 = vsel %vm1060_vm2, %v7713_v58, -inf }
 0xbb2   : > { %v7751_v32 = vpop.f32.mrb[60].mxu1 }
 0xbb3   : > { %v7753_v22 = vpop.f32.mrb[61].mxu1  ;;  %v3857_v61 = vsel %vm1060_vm2, %v7751_v32, -inf }
 0xbb4   : > { %v3854_v33 = vsel %vm1060_vm2, %v7753_v22, -inf }
 0xbb5   : > { %3846 = vmax.xlane.f32.xlu1 %v3845_v39  ;;  %3849 = vmax.xlane.f32.xlu0 %v3848_v23 }
 0xbb6   : > { %v7757_v36 = vpop.f32.mrb[62].mxu1 }
 0xbb7   : > { %v7759_v25 = vpop.f32.mrb[63].mxu1  ;;  %v3863_v42 = vsel %vm1060_vm2, %v7757_v36, -inf }
 0xbb8   : > { %v3860_v56 = vsel %vm1060_vm2, %v7759_v25, -inf }
 0xbb9   : > { %3798 = vmax.xlane.f32.xlu1 %v3797_v40  ;;  %3801 = vmax.xlane.f32.xlu0 %v3800_v24 }
 0xbba   : > { %v7767_v53 = vpop.f32.mrb[64].mxu1 }
 0xbbb   : > { %v7769_v15 = vpop.f32.mrb[65].mxu1  ;;  %v3869_v45 = vsel %vm1060_vm2, %v7767_v53, -inf }
 0xbbc   : > { %v3866_v1 = vsel %vm1060_vm2, %v7769_v15, -inf }
 0xbbd   : > { %3852 = vmax.xlane.f32.xlu1 %v3851_v49  ;;  %3855 = vmax.xlane.f32.xlu0 %v3854_v33 }
 0xbbe   : > { %v7773_v55 = vpop.f32.mrb[66].mxu1 }
 0xbbf   : > { %v7775_v14 = vpop.f32.mrb[67].mxu1  ;;  %v3875_v51 = vsel %vm1060_vm2, %v7773_v55, -inf }
 0xbc0   : > { %v3872_v47 = vsel %vm1060_vm2, %v7775_v14, -inf }
 0xbc1   : > { %3804 = vmax.xlane.f32.xlu1 %v3803_v37  ;;  %3807 = vmax.xlane.f32.xlu0 %v3806_v57 }
 0xbc5   : > { %3858 = vmax.xlane.f32.xlu1 %v3857_v61  ;;  %3861 = vmax.xlane.f32.xlu0 %v3860_v56 }
 0xbc9   : > { %3810 = vmax.xlane.f32.xlu1 %v3809_v5  ;;  %3813 = vmax.xlane.f32.xlu0 %v3812_v9 }
 0xbcd   : > { %3864 = vmax.xlane.f32.xlu1 %v3863_v42  ;;  %3867 = vmax.xlane.f32.xlu0 %v3866_v1 }
 0xbd1   : > { %3816 = vmax.xlane.f32.xlu1 %v3815_v44  ;;  %3819 = vmax.xlane.f32.xlu0 %v3818_v48 }
 0xbd5   : > { %3870 = vmax.xlane.f32.xlu1 %v3869_v45  ;;  %3873 = vmax.xlane.f32.xlu0 %v3872_v47 }
 0xbd9   : > { %3822 = vmax.xlane.f32.xlu1 %v3821_v18  ;;  %3825 = vmax.xlane.f32.xlu0 %v3824_v7 }
 0xbdd   : > { %3876 = vmax.xlane.f32.xlu1 %v3875_v51 }
 0xbe1   : > { %3828 = vmax.xlane.f32.xlu1 %v3827_v28 }
 0xbf6   : > { %v3784_v60 = vpop.xlane.xlu1 %3783 }
 0xbf7   : > { %v3878_v23 = vsub.f32 %v7683_v12, %v3784_v60 }
 0xbf9   : > { %v3910_v39 = vmul.f32 1.442695, %v3878_v23 }
 0xbfa   : > { %v3787_v33 = vpop.xlane.xlu1 %3786 }
 0xbfb   : > { %5929 = vpow2.f32 %v3910_v39  ;;  %v3879_v49 = vsub.f32 %v7681_v50, %v3787_v33 }
 0xbfd   : > { %v3912_v5 = vmul.f32 1.442695, %v3879_v49 }
 0xc05   : > { %v7810_v40 = vpop.eup %5929 }
 0xc06   : > { %v3974_v24 = vsel %vm1060_vm2, %v7810_v40, 0.0 }
 0xc07   : > { %3975 = vadd.xlane.f32.xlu0 %v3974_v24 }
 0xc31   : > { %v3835_v37 = vpop.xlane.xlu0 %3834 }
 0xc32   : > { %v3895_v57 = vsub.f32 %v7717_v20, %v3835_v37  ;;  %v3832_v56 = vpop.xlane.xlu1 %3831 }
 0xc33   : > { %v3894_v61 = vsub.f32 %v7719_v63, %v3832_v56 }
 0xc34   : > { %v3944_v9 = vmul.f32 1.442695, %v3895_v57 }
 0xc35   : > { %v3790_v12 = vpop.xlane.xlu0 %3789  ;;  %v3942_v44 = vmul.f32 1.442695, %v3894_v61 }
 0xc36   : > { %5931 = vpow2.f32 %v3944_v9  ;;  %v3880_v1 = vsub.f32 %v7691_v26, %v3790_v12  ;;  %v3841_v42 = vpop.xlane.xlu1 %3840 }
 0xc37   : > { %v3897_v48 = vsub.f32 %v7725_v17, %v3841_v42  ;;  %5933 = vpow2.f32 %v3912_v5 }
 0xc38   : > { %v3914_v47 = vmul.f32 1.442695, %v3880_v1 }
 0xc39   : > { %v3948_v45 = vmul.f32 1.442695, %v3897_v48 }
 0xc3a   : > { %5935 = vpow2.f32 %v3914_v47  ;;  %v3844_v50 = vpop.xlane.xlu0 %3843  ;;  %v3838_v18 = vpop.xlane.xlu1 %3837 }
 0xc3b   : > { %5937 = vpow2.f32 %v3942_v44  ;;  %v3896_v20 = vsub.f32 %v7727_v41, %v3838_v18 }
 0xc3c   : > { %5939 = vpow2.f32 %v3948_v45 }
 0xc3d   : > { %v3946_v60 = vmul.f32 1.442695, %v3896_v20 }
 0xc3e   : > { %v3796_v63 = vpop.xlane.xlu0 %3795  ;;  %v3793_v7 = vpop.xlane.xlu1 %3792 }
 0xc3f   : > { %v3882_v51 = vsub.f32 %v7695_v30, %v3796_v63  ;;  %v3881_v26 = vsub.f32 %v7689_v8, %v3793_v7  ;;  %v3898_v8 = vsub.f32 %v7735_v4, %v3844_v50 }
 0xc40   : > { %v7822_v28 = vpop.eup %5931 }
 0xc41   : > { %v3918_v17 = vmul.f32 1.442695, %v3882_v51  ;;  %v3916_v23 = vmul.f32 1.442695, %v3881_v26  ;;  %v4025_v39 = vsel %vm1060_vm2, %v7822_v28, 0.0  ;;  %v7826_v24 = vpop.eup %5933 }
 0xc42   : > { %v3850_v33 = vpop.xlane.xlu0 %3849  ;;  %4026 = vadd.xlane.f32.xlu1 %v4025_v39  ;;  %v3847_v49 = vpop.xlane.xlu1 %3846  ;;  %v3977_v61 = vsel %vm1060_vm2, %v7826_v24, 0.0  ;;  %v3950_v1 = vmul.f32 1.442695, %v3898_v8 }
 0xc43   : > { %5941 = vpow2.f32 %v3918_v17  ;;  %v3899_v41 = vsub.f32 %v7733_v46, %v3847_v49 }
 0xc44   : > { %v7829_v37 = vpop.eup %5935  ;;  %5943 = vpow2.f32 %v3916_v23 }
 0xc45   : > { %v7832_v30 = vpop.eup %5937  ;;  %5945 = vpow2.f32 %v3946_v60  ;;  %v3952_v57 = vmul.f32 1.442695, %v3899_v41  ;;  %v3980_v56 = vsel %vm1060_vm2, %v7829_v37, 0.0 }
 0xc46   : > { %v7838_v5 = vpop.eup %5939  ;;  %v3802_v9 = vpop.xlane.xlu0 %3801  ;;  %3981 = vadd.xlane.f32.xlu0 %v3980_v56  ;;  %3978 = vadd.xlane.f32.xlu1 %v3977_v61  ;;  %v4022_v48 = vsel %vm1060_vm2, %v7832_v30, 0.0 }
 0xc47   : > { %v3799_v46 = vpop.xlane.xlu1 %3798  ;;  %v3884_v12 = vsub.f32 %v7699_v29, %v3802_v9  ;;  %5947 = vpow2.f32 %v3952_v57  ;;  %v4031_v47 = vsel %vm1060_vm2, %v7838_v5, 0.0 }
 0xc48   : > { %v3883_v4 = vsub.f32 %v7693_v52, %v3799_v46  ;;  %v3900_v52 = vsub.f32 %v7743_v0, %v3850_v33 }
 0xc49   : > { %v3922_v42 = vmul.f32 1.442695, %v3884_v12 }
 0xc4a   : > { %v3920_v44 = vmul.f32 1.442695, %v3883_v4  ;;  %v3856_v45 = vpop.xlane.xlu0 %3855  ;;  %4023 = vadd.xlane.f32.xlu0 %v4022_v48  ;;  %4032 = vadd.xlane.f32.xlu1 %v4031_v47  ;;  %v3954_v0 = vmul.f32 1.442695, %v3900_v52 }
 0xc4b   : > { %v3853_v50 = vpop.xlane.xlu1 %3852  ;;  %5949 = vpow2.f32 %v3922_v42  ;;  %v3902_v61 = vsub.f32 %v7753_v22, %v3856_v45 }
 0xc4c   : > { %v3901_v18 = vsub.f32 %v7741_v31, %v3853_v50  ;;  %5951 = vpow2.f32 %v3920_v44 }
 0xc4d   : > { %v7847_v29 = vpop.eup %5941  ;;  %5953 = vpow2.f32 %v3950_v1  ;;  %v3958_v22 = vmul.f32 1.442695, %v3902_v61 }
 0xc4e   : > { %v3956_v20 = vmul.f32 1.442695, %v3901_v18  ;;  %v7850_v63 = vpop.eup %5943  ;;  %v3808_v7 = vpop.xlane.xlu0 %3807  ;;  %v3986_v26 = vsel %vm1060_vm2, %v7847_v29, 0.0 }
 0xc4f   : > { %v3805_v51 = vpop.xlane.xlu1 %3804  ;;  %v7854_v60 = vpop.eup %5945  ;;  %v3886_v17 = vsub.f32 %v7703_v43, %v3808_v7  ;;  %3987 = vadd.xlane.f32.xlu0 %v3986_v26  ;;  %v3983_v23 = vsel %vm1060_vm2, %v7850_v63, 0.0 }
 0xc50   : > { %v3885_v31 = vsub.f32 %v7697_v13, %v3805_v51  ;;  %5955 = vpow2.f32 %v3956_v20  ;;  %3984 = vadd.xlane.f32.xlu1 %v3983_v23  ;;  %v4028_v57 = vsel %vm1060_vm2, %v7854_v60, 0.0 }
 0xc51   : > { %v3926_v39 = vmul.f32 1.442695, %v3886_v17  ;;  %v7860_v49 = vpop.eup %5947 }
 0xc52   : > { %v3924_v33 = vmul.f32 1.442695, %v3885_v31  ;;  %v3862_v41 = vpop.xlane.xlu0 %3861  ;;  %v4037_v13 = vsel %vm1060_vm2, %v7860_v49, 0.0 }
 0xc53   : > { %v3859_v8 = vpop.xlane.xlu1 %3858  ;;  %5957 = vpow2.f32 %v3926_v39  ;;  %4029 = vadd.xlane.f32.xlu0 %v4028_v57  ;;  %v3904_v51 = vsub.f32 %v7759_v25, %v3862_v41 }
 0xc54   : > { %v3903_v43 = vsub.f32 %v7751_v32, %v3859_v8  ;;  %5959 = vpow2.f32 %v3924_v33  ;;  %4038 = vadd.xlane.f32.xlu1 %v4037_v13 }
 0xc55   : > { %v7867_v56 = vpop.eup %5949  ;;  %5961 = vpow2.f32 %v3954_v0  ;;  %v3962_v25 = vmul.f32 1.442695, %v3904_v51 }
 0xc56   : > { %v3960_v9 = vmul.f32 1.442695, %v3903_v43  ;;  %v7870_v46 = vpop.eup %5951  ;;  %v3814_v12 = vpop.xlane.xlu0 %3813  ;;  %v3992_v1 = vsel %vm1060_vm2, %v7867_v56, 0.0 }
 0xc57   : > { %v3811_v4 = vpop.xlane.xlu1 %3810  ;;  %v7874_v32 = vpop.eup %5953  ;;  %v3888_v42 = vsub.f32 %v7707_v27, %v3814_v12  ;;  %3993 = vadd.xlane.f32.xlu0 %v3992_v1  ;;  %v3989_v48 = vsel %vm1060_vm2, %v7870_v46, 0.0 }
 0xc58   : > { %v3887_v44 = vsub.f32 %v7701_v19, %v3811_v4  ;;  %5963 = vpow2.f32 %v3960_v9  ;;  %3990 = vadd.xlane.f32.xlu1 %v3989_v48  ;;  %v4034_v20 = vsel %vm1060_vm2, %v7874_v32, 0.0 }
 0xc59   : > { %v3930_v47 = vmul.f32 1.442695, %v3888_v42 }
 0xc5a   : > { %v3928_v45 = vmul.f32 1.442695, %v3887_v44  ;;  %v7880_v50 = vpop.eup %5955  ;;  %v3868_v18 = vpop.xlane.xlu0 %3867 }
 0xc5b   : > { %v3865_v52 = vpop.xlane.xlu1 %3864  ;;  %5965 = vpow2.f32 %v3930_v47  ;;  %4035 = vadd.xlane.f32.xlu0 %v4034_v20  ;;  %v4043_v19 = vsel %vm1060_vm2, %v7880_v50, 0.0  ;;  %v3906_v4 = vsub.f32 %v7769_v15, %v3868_v18 }
 0xc5c   : > { %v3905_v27 = vsub.f32 %v7757_v36, %v3865_v52  ;;  %5967 = vpow2.f32 %v3928_v45  ;;  %4044 = vadd.xlane.f32.xlu1 %v4043_v19 }
 0xc5d   : > { %v7887_v7 = vpop.eup %5957  ;;  %5969 = vpow2.f32 %v3958_v22  ;;  %v3966_v15 = vmul.f32 1.442695, %v3906_v4 }
 0xc5e   : > { %v3964_v26 = vmul.f32 1.442695, %v3905_v27  ;;  %v7890_v17 = vpop.eup %5959  ;;  %v3820_v31 = vpop.xlane.xlu0 %3819  ;;  %v3998_v0 = vsel %vm1060_vm2, %v7887_v7, 0.0 }
 0xc5f   : > { %v3817_v23 = vpop.xlane.xlu1 %3816  ;;  %v7894_v36 = vpop.eup %5961  ;;  %v3890_v39 = vsub.f32 %v7711_v59, %v3820_v31  ;;  %3999 = vadd.xlane.f32.xlu0 %v3998_v0  ;;  %v3995_v8 = vsel %vm1060_vm2, %v7890_v17, 0.0 }
 0xc60   : > { %v3889_v33 = vsub.f32 %v7705_v38, %v3817_v23  ;;  %5971 = vpow2.f32 %v3964_v26  ;;  %3996 = vadd.xlane.f32.xlu1 %v3995_v8  ;;  %v4040_v9 = vsel %vm1060_vm2, %v7894_v36, 0.0 }
 0xc61   : > { %v3934_v41 = vmul.f32 1.442695, %v3890_v39 }
 0xc62   : > { %v3932_v57 = vmul.f32 1.442695, %v3889_v33  ;;  %v7900_v43 = vpop.eup %5963  ;;  %v3874_v13 = vpop.xlane.xlu0 %3873 }
 0xc63   : > { %v3871_v61 = vpop.xlane.xlu1 %3870  ;;  %5973 = vpow2.f32 %v3934_v41  ;;  %4041 = vadd.xlane.f32.xlu0 %v4040_v9  ;;  %v4049_v38 = vsel %vm1060_vm2, %v7900_v43, 0.0  ;;  %v3908_v18 = vsub.f32 %v7775_v14, %v3874_v13 }
 0xc64   : > { %v3907_v59 = vsub.f32 %v7767_v53, %v3871_v61  ;;  %5975 = vpow2.f32 %v3932_v57  ;;  %4050 = vadd.xlane.f32.xlu1 %v4049_v38 }
 0xc65   : > { %v7907_v12 = vpop.eup %5965  ;;  %5977 = vpow2.f32 %v3962_v25  ;;  %v3970_v14 = vmul.f32 1.442695, %v3908_v18  ;;  %v504_v18 = vld [vmem:[%s8113_s5 + $0x38] sm:$0xff] }
 0xc66   : > { %v3968_v1 = vmul.f32 1.442695, %v3907_v59  ;;  %v7910_v42 = vpop.eup %5967  ;;  %v3826_v44 = vpop.xlane.xlu0 %3825  ;;  %v4004_v22 = vsel %vm1060_vm2, %v7907_v12, 0.0 }
 0xc67   : > { %v3823_v48 = vpop.xlane.xlu1 %3822  ;;  %v7914_v53 = vpop.eup %5969  ;;  %v3892_v47 = vsub.f32 %v7715_v62, %v3826_v44  ;;  %4005 = vadd.xlane.f32.xlu0 %v4004_v22  ;;  %v4001_v52 = vsel %vm1060_vm2, %v7910_v42, 0.0 }
 0xc68   : > { %v3891_v45 = vsub.f32 %v7709_v34, %v3823_v48  ;;  %5979 = vpow2.f32 %v3968_v1  ;;  %4002 = vadd.xlane.f32.xlu1 %v4001_v52  ;;  %v4046_v26 = vsel %vm1060_vm2, %v7914_v53, 0.0 }
 0xc69   : > { %v3938_v20 = vmul.f32 1.442695, %v3892_v47 }
 0xc6a   : > { %v3936_v27 = vmul.f32 1.442695, %v3891_v45  ;;  %v7921_v19 = vpop.eup %5971 }
 0xc6b   : > { %v3877_v51 = vpop.xlane.xlu1 %3876  ;;  %5981 = vpow2.f32 %v3938_v20  ;;  %4047 = vadd.xlane.f32.xlu0 %v4046_v26  ;;  %v4055_v62 = vsel %vm1060_vm2, %v7921_v19, 0.0 }
 0xc6c   : > { %v3909_v34 = vsub.f32 %v7773_v55, %v3877_v51  ;;  %5983 = vpow2.f32 %v3936_v27  ;;  %4056 = vadd.xlane.f32.xlu1 %v4055_v62 }
 0xc6d   : > { %v7928_v31 = vpop.eup %5973  ;;  %5985 = vpow2.f32 %v3966_v15  ;;  %v4305_v15 = vld [vmem:[%s8115_s7] sm:$0xff] }
 0xc6e   : > { %v3972_v23 = vmul.f32 1.442695, %v3909_v34  ;;  %v7930_v0 = vpop.eup %5975  ;;  %v4010_v33 = vsel %vm1060_vm2, %v7928_v31, 0.0 }
 0xc6f   : > { %v3829_v39 = vpop.xlane.xlu1 %3828  ;;  %v7934_v8 = vpop.eup %5977  ;;  %4011 = vadd.xlane.f32.xlu0 %v4010_v33  ;;  %v4007_v25 = vsel %vm1060_vm2, %v7930_v0, 0.0 }
 0xc70   : > { %5987 = vpow2.f32 %v3972_v23  ;;  %v3893_v55 = vsub.f32 %v7713_v58, %v3829_v39  ;;  %4008 = vadd.xlane.f32.xlu1 %v4007_v25  ;;  %v4052_v13 = vsel %vm1060_vm2, %v7934_v8, 0.0 }
 0xc71   : > { %5989 = vpow2.f32 %v3970_v14 }
 0xc72   : > { %v3940_v41 = vmul.f32 1.442695, %v3893_v55  ;;  %v7939_v57 = vpop.eup %5979 }
 0xc73   : > { %4053 = vadd.xlane.f32.xlu0 %v4052_v13  ;;  %v4061_v61 = vsel %vm1060_vm2, %v7939_v57, 0.0 }
 0xc74   : > { %5991 = vpow2.f32 %v3940_v41  ;;  %4062 = vadd.xlane.f32.xlu1 %v4061_v61 }
 0xc75   : > { %v7945_v9 = vpop.eup %5981 }
 0xc76   : > { %v7947_v58 = vpop.eup %5983  ;;  %v4016_v59 = vsel %vm1060_vm2, %v7945_v9, 0.0 }
 0xc77   : > { %v7951_v38 = vpop.eup %5985  ;;  %4017 = vadd.xlane.f32.xlu0 %v4016_v59  ;;  %v4013_v4 = vsel %vm1060_vm2, %v7947_v58, 0.0 }
 0xc78   : > { %4014 = vadd.xlane.f32.xlu1 %v4013_v4  ;;  %v4058_v44 = vsel %vm1060_vm2, %v7951_v38, 0.0 }
 0xc7a   : > { %v7955_v1 = vpop.eup %5987 }
 0xc7b   : > { %v4067_v48 = vsel %vm1060_vm2, %v7955_v1, 0.0  ;;  %v7961_v22 = vpop.eup %5989  ;;  %4059 = vadd.xlane.f32.xlu0 %v4058_v44 }
 0xc7c   : > { %4068 = vadd.xlane.f32.xlu1 %v4067_v48  ;;  %v4064_v45 = vsel %vm1060_vm2, %v7961_v22, 0.0 }
 0xc7e   : > { %v7963_v47 = vpop.eup %5991 }
 0xc7f   : > { %v4019_v52 = vsel %vm1060_vm2, %v7963_v47, 0.0  ;;  %4065 = vadd.xlane.f32.xlu0 %v4064_v45 }
 0xc80   : > { %4020 = vadd.xlane.f32.xlu1 %v4019_v52 }
 0xc91   : > { %4308 = vperm.xlu1 %5544, %v4305_v15  }
 0xc94   : > { %v3976_v20 = vpop.xlane.xlu0 %3975 }
 0xc95   : > { %542 = vperm.xlu0 %5543, %v504_v18  }
 0xccf   : > { %v4027_v27 = vpop.xlane.xlu1 %4026 }
 0xcd3   : > { %v3982_v51 = vpop.xlane.xlu0 %3981  ;;  %v3979_v26 = vpop.xlane.xlu1 %3978 }
 0xcd4   : > { %5993 = vrcp.f32 %v3979_v26 }
 0xcd5   : > { %5995 = vrcp.f32 %v4027_v27 }
 0xcd6   : > { %5997 = vrcp.f32 %v3976_v20 }
 0xcd7   : > { %v4024_v34 = vpop.xlane.xlu0 %4023  ;;  %v4033_v62 = vpop.xlane.xlu1 %4032 }
 0xcd8   : > { %5999 = vrcp.f32 %v4024_v34 }
 0xcdc   : > { %v3988_v14 = vpop.xlane.xlu0 %3987 }
 0xcdd   : > { %v3985_v23 = vpop.xlane.xlu1 %3984 }
 0xcde   : > { %6001 = vrcp.f32 %v3985_v23  ;;  %v5994_v39 = vpop.eup %5993 }
 0xcdf   : > { %6003 = vrcp.f32 %v4033_v62  ;;  %v5996_v33 = vpop.eup %5995  ;;  %v4103_v61 = vmul.f32 %v5994_v39, %v7826_v24 }
 0xce0   : > { %6005 = vrcp.f32 %v3982_v51  ;;  %v4030_v55 = vpop.xlane.xlu0 %4029  ;;  %v5998_v25 = vpop.eup %5997  ;;  %v4119_v4 = vmul.f32 %v5996_v33, %v7822_v28 }
 0xce1   : > { %6007 = vrcp.f32 %v4030_v55  ;;  %v4039_v41 = vpop.xlane.xlu1 %4038  ;;  %v4102_v44 = vmul.f32 %v5998_v25, %v7810_v40 }
 0xce2   : > { %v6000_v13 = vpop.eup %5999 }
 0xce3   : > { %v4118_v59 = vmul.f32 %v6000_v13, %v7832_v30  ;;  %v5433_v15 = vpack.c.bf16 %v4103_v61, %v4102_v44 }
 0xce4   : > { %v3994_v48 = vpop.xlane.xlu0 %3993 }
 0xce5   : > { %v3991_v45 = vpop.xlane.xlu1 %3990  ;;  %v5430_v52 = vpack.c.bf16 %v4119_v4, %v4118_v59 }
 0xce6   : > { %6009 = vrcp.f32 %v3991_v45 }
 0xce7   : > { %6011 = vrcp.f32 %v4039_v41  ;;  %5432 = vmatprep.subr.msk.bf16.mxu0 %vm6678_vm3, %v5430_v52 }
 0xce8   : > { %v6002_v18 = vpop.eup %6001  ;;  %6013 = vrcp.f32 %v3988_v14  ;;  %v4036_v20 = vpop.xlane.xlu0 %4035  ;;  %5435 = vmatpush3.bf16.xpose.msk.msra.mxu0 %vm6678_vm3, %v5433_v15 }
 0xce9   : > { %v6004_v24 = vpop.eup %6003  ;;  %6015 = vrcp.f32 %v4036_v20  ;;  %v4045_v28 = vpop.xlane.xlu1 %4044  ;;  %v4105_v27 = vmul.f32 %v6002_v18, %v7850_v63 }
 0xcea   : > { %v6006_v30 = vpop.eup %6005  ;;  %v4121_v34 = vmul.f32 %v6004_v24, %v7838_v5 }
 0xceb   : > { %v6008_v40 = vpop.eup %6007  ;;  %v4104_v62 = vmul.f32 %v6006_v30, %v7829_v37 }
 0xcec   : > { %v4000_v51 = vpop.xlane.xlu0 %3999  ;;  %v4120_v26 = vmul.f32 %v6008_v40, %v7854_v60 }
 0xced   : > { %v3997_v23 = vpop.xlane.xlu1 %3996  ;;  %v5439_v39 = vpack.c.bf16 %v4105_v27, %v4104_v62 }
 0xcee   : > { %6017 = vrcp.f32 %v3997_v23  ;;  %v5436_v14 = vpack.c.bf16 %v4121_v34, %v4120_v26 }
 0xcef   : > { %6019 = vrcp.f32 %v4045_v28 }
 0xcf0   : > { %v6010_v33 = vpop.eup %6009  ;;  %6021 = vrcp.f32 %v3994_v48  ;;  %v4042_v55 = vpop.xlane.xlu0 %4041  ;;  %5438 = vmatprep.subr.msk.bf16.mxu0 %vm6678_vm3, %v5436_v14 }
 0xcf1   : > { %v6012_v25 = vpop.eup %6011  ;;  %6023 = vrcp.f32 %v4042_v55  ;;  %v4051_v63 = vpop.xlane.xlu1 %4050  ;;  %5441 = vmatpush3.bf16.xpose.msk.msra.mxu0 %vm6678_vm3, %v5439_v39  ;;  %v4107_v37 = vmul.f32 %v6010_v33, %v7870_v46 }
 0xcf2   : > { %v6014_v5 = vpop.eup %6013  ;;  %v4123_v61 = vmul.f32 %v6012_v25, %v7860_v49 }
 0xcf3   : > { %v6016_v60 = vpop.eup %6015  ;;  %v4106_v59 = vmul.f32 %v6014_v5, %v7847_v29 }
 0xcf4   : > { %v4006_v41 = vpop.xlane.xlu0 %4005  ;;  %v4122_v13 = vmul.f32 %v6016_v60, %v7874_v32 }
 0xcf5   : > { %v4003_v4 = vpop.xlane.xlu1 %4002  ;;  %v5445_v48 = vpack.c.bf16 %v4107_v37, %v4106_v59 }
 0xcf6   : > { %6025 = vrcp.f32 %v4003_v4  ;;  %v5442_v44 = vpack.c.bf16 %v4123_v61, %v4122_v13 }
 0xcf7   : > { %6027 = vrcp.f32 %v4051_v63 }
 0xcf8   : > { %v6018_v45 = vpop.eup %6017  ;;  %6029 = vrcp.f32 %v4000_v51  ;;  %v4048_v52 = vpop.xlane.xlu0 %4047  ;;  %5444 = vmatprep.subr.msk.bf16.mxu0 %vm6678_vm3, %v5442_v44 }
 0xcf9   : > { %v6020_v15 = vpop.eup %6019  ;;  %6031 = vrcp.f32 %v4048_v52  ;;  %v4057_v46 = vpop.xlane.xlu1 %4056  ;;  %5447 = vmatpush3.bf16.xpose.msk.msra.mxu0 %vm6678_vm3, %v5445_v48  ;;  %v4109_v29 = vmul.f32 %v6018_v45, %v7890_v17 }
 0xcfa   : > { %v6022_v49 = vpop.eup %6021  ;;  %v4125_v24 = vmul.f32 %v6020_v15, %v7880_v50 }
 0xcfb   : > { %v6024_v32 = vpop.eup %6023  ;;  %v4108_v28 = vmul.f32 %v6022_v49, %v7867_v56 }
 0xcfc   : > { %v4012_v18 = vpop.xlane.xlu0 %4011  ;;  %v4124_v20 = vmul.f32 %v6024_v32, %v7894_v36  ;;  %v8133_v32 = vld [vmem:[#allocation9_spill] sm:$0xff] }
 0xcfd   : > { %v4009_v30 = vpop.xlane.xlu1 %4008  ;;  %v5451_v27 = vpack.c.bf16 %v4109_v29, %v4108_v28 }
 0xcfe   : > { %6033 = vrcp.f32 %v4009_v30  ;;  %v5448_v40 = vpack.c.bf16 %v4125_v24, %v4124_v20 }
 0xcff   : > { %6035 = vrcp.f32 %v4057_v46 }
 0xd00   : > { %v6026_v51 = vpop.eup %6025  ;;  %6037 = vrcp.f32 %v4006_v41  ;;  %v4054_v26 = vpop.xlane.xlu0 %4053  ;;  %5450 = vmatprep.subr.msk.bf16.mxu0 %vm6678_vm3, %v5448_v40 }
 0xd01   : > { %v6028_v34 = vpop.eup %6027  ;;  %6039 = vrcp.f32 %v4054_v26  ;;  %v4063_v17 = vpop.xlane.xlu1 %4062  ;;  %5453 = vmatpush3.bf16.xpose.msk.msra.mxu0 %vm6678_vm3, %v5451_v27  ;;  %v4111_v56 = vmul.f32 %v6026_v51, %v7910_v42  ;;  %v6057_v51 = vld [vmem:[%s6255_s11] sm:$0xff] }
 0xd02   : > { %v6030_v50 = vpop.eup %6029  ;;  %v4127_v14 = vmul.f32 %v6028_v34, %v7900_v43  ;;  %v6058_v34 = vld [vmem:[%s6255_s11 + $0x8] sm:$0xff]  ;;  %s6141_s11 = smov [#allocation2]  }
 0xd03   : > { %v6032_v36 = vpop.eup %6031  ;;  %v4110_v39 = vmul.f32 %v6030_v50, %v7887_v7  ;;  %s6063_s26 = sshll.u32 %s6141_s11, 4  ;;  %s6064_s26 = int_to_ptr.vmem [resolvable:$false] %s6063_s26 }
 0xd04   : > { %v4018_v62 = vpop.xlane.xlu0 %4017  ;;  %v4126_v23 = vmul.f32 %v6032_v36, %v7914_v53  ;;  %s6065_s12 = scalar_lea.vmem %s6064_s26, 512  ;;  %p6066_p1 = scmp.lt.s32.totalorder %s8063_s13, %s6064_s26 }
 0xd05   : > { %v4015_v33 = vpop.xlane.xlu1 %4014  ;;  %v5457_v25 = vpack.c.bf16 %v4111_v56, %v4110_v39  ;;  %p6067_p2 = scmp.lt.s32.totalorder %s6065_s12, %s6059_s25 }
 0xd06   : > { %6041 = vrcp.f32 %v4015_v33  ;;  %v5454_v55 = vpack.c.bf16 %v4127_v14, %v4126_v23 }
 0xd07   : > { %6043 = vrcp.f32 %v4063_v17  ;;  %p6068_p3 = por %p6067_p2, %p6066_p1 }
 0xd08   : > { %v6034_v63 = vpop.eup %6033  ;;  %6045 = vrcp.f32 %v4012_v18  ;;  %v4060_v5 = vpop.xlane.xlu0 %4059  ;;  %5456 = vmatprep.subr.msk.bf16.mxu0 %vm6678_vm3, %v5454_v55 }
 0xd09   : > { %v6036_v60 = vpop.eup %6035  ;;  %6047 = vrcp.f32 %v4060_v5  ;;  %v4069_v42 = vpop.xlane.xlu1 %4068  ;;  %5459 = vmatpush3.bf16.xpose.msk.msra.mxu0 %vm6678_vm3, %v5457_v25  ;;  %v4113_v7 = vmul.f32 %v6034_v63, %v7930_v0  ;;  %p6069_p5 = pnand %p6068_p3, %p6062_p0 }
 0xd0a   : > { %v6038_v43 = vpop.eup %6037  ;;  %6049 = vrcp.f32 %v4069_v42  ;;  %v4129_v13 = vmul.f32 %v6036_v60, %v7921_v19 }
 0xd0b   : > { %v6040_v53 = vpop.eup %6039  ;;  %v4112_v61 = vmul.f32 %v6038_v43, %v7907_v12 }
 0xd0c   : > { %v4066_v37 = vpop.xlane.xlu0 %4065  ;;  %v4128_v41 = vmul.f32 %v6040_v53, %v7934_v8 }
 0xd0d   : > { %6051 = vrcp.f32 %v4066_v37  ;;  %v4021_v59 = vpop.xlane.xlu1 %4020  ;;  %v5463_v44 = vpack.c.bf16 %v4113_v7, %v4112_v61 }
 0xd0e   : > { %6053 = vrcp.f32 %v4021_v59  ;;  %v5460_v4 = vpack.c.bf16 %v4129_v13, %v4128_v41 }
 0xd0f   : > { %6055 = vrcp.f32 %v4018_v62 }
 0xd10   : > { %v6042_v48 = vpop.eup %6041  ;;  %5462 = vmatprep.subr.msk.bf16.mxu0 %vm6678_vm3, %v5460_v4 }
 0xd11   : > { %v6044_v45 = vpop.eup %6043  ;;  %5465 = vmatpush3.bf16.xpose.msk.msra.mxu0 %vm6678_vm3, %v5463_v44  ;;  %v4115_v19 = vmul.f32 %v6042_v48, %v7947_v58  ;;  %v4309_v2 = vpop.permute.xlu1 %4308 }
 0xd12   : > { %v6046_v0 = vpop.eup %6045  ;;  %v4131_v15 = vmul.f32 %v6044_v45, %v7939_v57 }
 0xd13   : > { %v6048_v8 = vpop.eup %6047  ;;  %v4114_v49 = vmul.f32 %v6046_v0, %v7928_v31 }
 0xd14   : > { %v543_v52 = vpop.permute.xlu0 %542  ;;  %v4130_v12 = vmul.f32 %v6048_v8, %v7951_v38  ;;  %v6050_v46 = vpop.eup %6049 }
 0xd15   : > { %v672_v29 = vadd.f32 %v8133_v32, %v543_v52  ;;  %v5469_v24 = vpack.c.bf16 %v4115_v19, %v4114_v49  ;;  %v4133_v38 = vmul.f32 %v6050_v46, %v7955_v1  ;;  %v8134_v1 = vmov 0.0  }
 0xd16   : > { %v5466_v18 = vpack.c.bf16 %v4131_v15, %v4130_v12 }
 0xd17   : > { %v6052_v20 = vpop.eup %6051  ;;  %5064 = vmatprep.mubr.msk.f32.mxu0 %vm1060_vm2, %v672_v29 }
 0xd18   : > { %v6054_v28 = vpop.eup %6053  ;;  %5468 = vmatprep.subr.msk.bf16.mxu0 %vm6678_vm3, %v5466_v18  ;;  %v4132_v58 = vmul.f32 %v6052_v20, %v7961_v22 }
 0xd19   : > { %5471 = vmatpush3.bf16.xpose.msk.msra.mxu0 %vm6678_vm3, %v5469_v24  ;;  %v6056_v57 = vpop.eup %6055  ;;  %v4117_v30 = vmul.f32 %v6054_v28, %v7963_v47 }
 0xd1a   : > { %v5472_v31 = vpack.c.bf16 %v4133_v38, %v4132_v58  ;;  %v4116_v40 = vmul.f32 %v6056_v57, %v7945_v9 }
 0xd1c   : > { %5474 = vmatprep.subr.msk.bf16.mxu0 %vm6678_vm3, %v5472_v31  ;;  %v5475_v27 = vpack.c.bf16 %v4117_v30, %v4116_v40 }
 0xd21   : > { %5477 = vmatpush3.bf16.xpose.msk.msra.mxu0 %vm6678_vm3, %v5475_v27 }
 0xd22   : > { %5479 = vmatprep.subr.bf16.mxu0 %v5478_v21 }
 0xd28   : > { %5065 = vmatmul.mubr.msk.f32.vlgmr.msra.gmra.mrb[82].mxu0 %vm1060_vm2, %v672_v29 }
 0xd29   : > { %5481 = vmatpush1.bf16.msra.mxu0 %v5480_v6  ;;  %4379 = vmatprep.mubr.f32.mxu0 %v8134_v1 }
 0xdfb   : > { %v4299_v22 = vpop.f32.mrb[82].mxu0 }
 0xdfc   : > { %v5484_v9 = vpack.c.bf16 %v4299_v22, %v7677_v54  ;;  %v4301_v47 = vpop.f32.mrb[83].mxu0 }
 0xdfd   : > { %v5482_v11 = vpack.c.bf16 %v4301_v47, %v7679_v10 }
 0xdff   : > { %5483 = vmatprep.subr.bf16.mxu0 %v5482_v11 }
 0xe00   : > { %5485 = vmatpush1.bf16.msra.mxu0 %v5484_v9 }
 0xe03   : > { %4779 = vmatmul.mubr.msk.f32.vlgmr.msra.gmra.mrb[84].mxu0 %vm4311_vm4, %v4304_v16 }
 0xed6   : > { %v4381_v3 = vpop.f32.mrb[84].mxu0 }
 0xed7   : > { %v4382_v6 = vadd.f32 %v4381_v3, %v4309_v2  ;;  %v4383_v35 = vpop.f32.mrb[85].mxu0 }
 0xed8   : > { %v4384_v21 = vadd.f32 %v4383_v35, %v4309_v2 }
 0xed9   : > { %v4386_v54 = vmax.f32 %v4382_v6, 0.0 }
 0xeda   : > { %v4387_v10 = vmax.f32 %v4384_v21, 0.0 }
 0xedb   : > { %v4388_v26 = vadd.f32 %v6057_v51, %v4386_v54 }
 0xedc   : > { %v4389_v17 = vadd.f32 %v6058_v34, %v4387_v10 }
 0xedd   : > { %4390 = vst [vmem:[%s338_s21] sm:$0xff] %v4388_v26 }
 0xede   : > { %4391 = vst [vmem:[%s338_s21 + $0x8] sm:$0xff] %v4389_v17 }
 0xedf   : > { %6072 = shalt.err (!%p6069_p5)
}
 0xee0   : > { %s6073_s14 = scalar_lea.hbm %s8061_s24, 256  ;;  %s6077_s19 = scalar_lea.hbm %s8116_s8, 512 }
 0xee1   : > { %p6074_p6 = scmp.ne.s32.totalorder %s8061_s24, %s6073_s14  ;;  %p6078_p10 = scmp.lt.u32.totalorder %s8061_s24, %s8116_s8 }
 0xee2   : > { %p6079_p11 = scmp.lt.u32.totalorder %s6077_s19, %s6073_s14  ;;  %p6081_p13 = scmp.lt.u32.totalorder %s6073_s14, %s8061_s24 }
 0xee3   : > { %p6075_p7 = pnand %p6074_p6, %p6227_p4 }
 0xee4   : > { %p6080_p12 = por %p6079_p11, %p6078_p10 }
 0xee5   : > { %p6076_p9 = pneg %p6075_p7 }
 0xee6   : > { %p6082_p0 = por %p6081_p13, %p6080_p12 }
 0xee8   : > { %p6083_p1 = pnand %p6082_p0, %p6076_p9 }
 0xeea   : > { %6086 = shalt.err (!%p6083_p1)
}
 0xeeb   : > { %5486 = dma.vmem_to_hbm [thread:$0]  (%p6227_p4), %s8063_s13, 256, %s8061_s24, %s4393_s30  }
 0xeec PF: > { %p5492_p2 = scmp.ge.s32.totalorder %s6137_s10, 2  ;;  %s4421_s23 = sand.u32 1, %s6117_s27  }
 0xeed   : > { %s4422_s25 = scalar_lea.sflag [#allocation3], %s4421_s23 }
 0xeee   : > { %p5489_p3 = pnand %p5492_p2, %p6234_p8 }
 0xef0   : > { %6112 = dma.done.wait (!%p5489_p3), %s4422_s25, 256  }
 0xef1   : > { %6114 = vsyncadd (!%p5489_p3), %s4422_s25, 4294967040  ;;  %s21_s10 = sadd.s32 1, %s6137_s10   ;;  %s8135_s15 = sld [smem:[#allocation5_spill]] }
 0xef2   : > { %p18_p5 = scmp.ge.s32.totalorder %s21_s10, 4   ;;  %s8136_s27 = smov %s6121_s28 }
 0xef3   : > { %s8137_s28 = smov %s6125_s29  ;;  %s8138_s29 = smov %s6240_s18 }
 0xef4   : > { %s8139_s30 = smov %s6133_s9  ;;  %20 = sbr.rel (!%p18_p5) target bundleno = 4 (0x4), region = 90 }
 0xef7   : > { %s8140_s9 = smov %s8135_s15 }
 0xefb   :  { %4427 = vsyncpa [#allocation3], 1 }
 0xefc   :  { %4429 = vsyncpa [#allocation3 + $0x1], 1 }

</bundles_post_ra>
